<compile_context>
chip_gen: v7x
topology: tpu7x:2x2x1
jax: 0.10.0
libtpu: 0.0.40
codegen_flags: <defaults>
</compile_context>

<pallas_src>
import functools
import math

import jax
import jax.numpy as jnp
from jax.experimental import pallas as pl
from jax.experimental.pallas import tpu as pltpu


# ----------------------------------------------------------------------------
# In-kernel helpers (pure-value math; only the sequence slabs touch a ref)
# ----------------------------------------------------------------------------

def _lstm_layer(seq_in, wih_t, whh_t, bias, seq_ref, *, seq_len, batch, hidden):
    """One LSTM layer over a time-major flattened sequence.

    seq_in : (W*B, Din) value; rows ordered [t0b0, t0b1, t1b0, ...]
    wih_t  : (Din, 4H)  transposed input weights  (gate order i, f, o, g)
    whh_t  : (H, 4H)    transposed recurrent weights (same gate order)
    bias   : (1, 4H)    combined bias (b_ih + b_hh), same gate order
    seq_ref: (W*B, H)   VMEM scratch slab receiving the hidden-state sequence
    Returns the (W*B, H) hidden-state sequence as a value.
    """
    H = hidden
    # Hoisted input projection: one MXU matmul + one bias broadcast for ALL
    # timesteps (removes W tiny per-step matmuls / broadcasts).
    pre = jnp.dot(seq_in, wih_t, preferred_element_type=jnp.float32) + bias

    h = jnp.zeros((batch, H), jnp.float32)
    c = jnp.zeros((batch, H), jnp.float32)
    for t in range(seq_len):                       # static unroll (W is small)
        r0 = t * batch
        gates = pre[r0:r0 + batch, :] + jnp.dot(
            h, whh_t, preferred_element_type=jnp.float32)        # (B, 4H)
        # Gate order (i, f, o, g): sigmoid over the contiguous first 3H lanes,
        # tanh only over the last H lanes (half the EUP work of full-width
        # sigmoid + full-width tanh once 4H spans multiple vregs).
        sig = jax.nn.sigmoid(gates[:, :3 * H])
        g_g = jnp.tanh(gates[:, 3 * H:])
        i_g = sig[:, 0 * H:1 * H]
        f_g = sig[:, 1 * H:2 * H]
        o_g = sig[:, 2 * H:3 * H]
        c = f_g * c + i_g * g_g
        h = o_g * jnp.tanh(c)
        seq_ref[r0:r0 + batch, :] = h              # tiny VMEM scratch store
    return seq_ref[...]


def _lstmvae_kernel(seq_len, batch, hidden, z_dim, n_layers, *refs):
    """Fused LSTMVAE forward. refs = inputs..., outputs..., scratch...."""
    n_lstm = 3 * n_layers
    i = 0
    x_ref = refs[i]; i += 1                        # (W*B, C) time-major flat
    noise_ref = refs[i]; i += 1                    # (W*B, Z) uniform [0,1)
    enc_refs = refs[i:i + n_lstm]; i += n_lstm
    whead_ref, bhead_ref = refs[i:i + 2]; i += 2   # fused mu|logvar head
    dec_refs = refs[i:i + n_lstm]; i += n_lstm
    wf_ref, bf_ref = refs[i:i + 2]; i += 2
    out_ref, head_ref = refs[i:i + 2]; i += 2
    slabs = refs[i:i + 2]                          # two (W*B, H) VMEM slabs

    def run_stack(seq_val, layer_refs):
        for l in range(n_layers):
            wih_t = layer_refs[3 * l][...]
            whh_t = layer_refs[3 * l + 1][...]
            bias = layer_refs[3 * l + 2][...]
            seq_val = _lstm_layer(seq_val, wih_t, whh_t, bias, slabs[l % 2],
                                  seq_len=seq_len, batch=batch, hidden=hidden)
        return seq_val

    # ---- encoder LSTM stack ----
    enc = run_stack(x_ref[...], enc_refs)                        # (W*B, H)

    # ---- fused VAE head: [mu | logvar] in ONE matmul, then reparameterize ----
    head = jnp.dot(enc, whead_ref[...],
                   preferred_element_type=jnp.float32) + bhead_ref[...]
    mu = head[:, :z_dim]
    lv = head[:, z_dim:]
    z = mu + noise_ref[...] * jnp.exp(0.5 * lv)                  # (W*B, Z)

    # ---- decoder LSTM stack ----
    dec = run_stack(z, dec_refs)                                 # (W*B, H)

    # ---- final projection ----
    out = jnp.dot(dec, wf_ref[...],
                  preferred_element_type=jnp.float32) + bf_ref[...]

    # Whole-slab output stores (done exactly once each).
    out_ref[...] = out
    head_ref[...] = head                           # packed [mu | logvar]


# ----------------------------------------------------------------------------
# Parameter init (PyTorch-style uniform; stored in kernel-ready layout)
# ----------------------------------------------------------------------------

def init_lstm_params(key, input_dim, hidden_dim, n_layers):
    layers = []
    H = hidden_dim
    bound = 1.0 / math.sqrt(H)

    def reorder(w):
        # PyTorch gate order (i, f, g, o) -> kernel order (i, f, o, g)
        return jnp.concatenate([w[:2 * H], w[3 * H:4 * H], w[2 * H:3 * H]],
                               axis=0)

    for layer in range(n_layers):
        din = input_dim if layer == 0 else H
        key, k1, k2, k3, k4 = jax.random.split(key, 5)
        w_ih = jax.random.uniform(k1, (4 * H, din), jnp.float32, -bound, bound)
        w_hh = jax.random.uniform(k2, (4 * H, H), jnp.float32, -bound, bound)
        b_ih = jax.random.uniform(k3, (4 * H,), jnp.float32, -bound, bound)
        b_hh = jax.random.uniform(k4, (4 * H,), jnp.float32, -bound, bound)
        # Pre-transposed weights + combined bias + gate reorder, done ONCE.
        layers.append((jnp.transpose(reorder(w_ih)),             # (Din, 4H)
                       jnp.transpose(reorder(w_hh)),             # (H, 4H)
                       reorder(b_ih + b_hh).reshape(1, 4 * H)))
    return key, layers


def init_linear_params(key, in_dim, out_dim):
    bound = 1.0 / math.sqrt(in_dim)
    key, k1, k2 = jax.random.split(key, 3)
    w = jax.random.uniform(k1, (out_dim, in_dim), jnp.float32, -bound, bound)
    b = jax.random.uniform(k2, (out_dim,), jnp.float32, -bound, bound)
    return key, (jnp.transpose(w), b.reshape(1, out_dim))        # (in,out),(1,out)


def init_lstmvae_params(key, input_dim, hidden_dim, z_dim, n_layers):
    key, enc = init_lstm_params(key, input_dim, hidden_dim, n_layers)
    key, mu = init_linear_params(key, hidden_dim, z_dim)
    key, logvar = init_linear_params(key, hidden_dim, z_dim)
    key, dec = init_lstm_params(key, z_dim, hidden_dim, n_layers)
    key, final = init_linear_params(key, hidden_dim, input_dim)
    # Fuse the mu / logvar heads into one (H, 2Z) weight + (1, 2Z) bias.
    w_head = jnp.concatenate([mu[0], logvar[0]], axis=1)
    b_head = jnp.concatenate([mu[1], logvar[1]], axis=1)
    return dict(encoder=enc, head=(w_head, b_head), decoder=dec, final=final)


def _flatten_params(params):
    flat = []
    for layer in params["encoder"]:
        flat.extend(layer)
    flat.extend([params["head"][0], params["head"][1]])
    for layer in params["decoder"]:
        flat.extend(layer)
    flat.extend([params["final"][0], params["final"][1]])
    return flat


# ----------------------------------------------------------------------------
# Forward pass (mirrors LSTMVAE.forward) — ONE pallas_call
# ----------------------------------------------------------------------------

@jax.jit
def lstmvae_forward(params, X, noise_flat):
    """X: (B, W, C) f32; noise_flat: (W*B, Z) uniform[0,1) (time-major rows).

    Returns (out, mu, logvar) with shapes (B,W,C), (B,W,Z), (B,W,Z).
    """
    B, W, C = X.shape
    H = params["encoder"][0][1].shape[0]           # whh_t: (H, 4H)
    Z = params["head"][0].shape[1] // 2            # w_head: (H, 2Z)
    L = len(params["encoder"])
    N = W * B

    # Single layout change on the way in: batch-first -> time-major flat rows.
    x_flat = jnp.transpose(X, (1, 0, 2)).reshape(N, C)

    inputs = [x_flat, noise_flat] + _flatten_params(params)
    vmem = pl.BlockSpec(memory_space=pltpu.MemorySpace.VMEM)

    # NOTE: f32 MXU operands kept for exactness at these tiny shapes; cast
    # weights/activations to bf16 (f32 accumulate) when H/B scale on v6e/v7x.
    out_flat, head_flat = pl.pallas_call(
        functools.partial(_lstmvae_kernel, W, B, H, Z, L),
        out_shape=(jax.ShapeDtypeStruct((N, C), jnp.float32),
                   jax.ShapeDtypeStruct((N, 2 * Z), jnp.float32)),
        in_specs=[vmem] * len(inputs),
        out_specs=(vmem, vmem),
        scratch_shapes=[pltpu.VMEM((N, H), jnp.float32),
                        pltpu.VMEM((N, H), jnp.float32)],
    )(*inputs)

    mu_flat = head_flat[:, :Z]
    lv_flat = head_flat[:, Z:]

    def to_batch_first(a):
        return jnp.transpose(a.reshape(W, B, -1), (1, 0, 2))

    return (to_batch_first(out_flat), to_batch_first(mu_flat),
            to_batch_first(lv_flat))


# ----------------------------------------------------------------------------
# main
# ----------------------------------------------------------------------------

if __name__ == "__main__":
    # Small, module-consistent shapes: X is (B, W, C)
    B, W = 2, 8
    input_dim, hidden_dim, z_dim, n_layers = 16, 32, 8, 2

    key = jax.random.PRNGKey(0)
    key, kx, kn, kp = jax.random.split(key, 4)

    X = jax.random.normal(kx, (B, W, input_dim), jnp.float32)
    # torch.rand_like -> uniform [0,1); generated host-side, consumed in-kernel.
    noise_flat = jax.random.uniform(kn, (W * B, z_dim), jnp.float32)

    params = init_lstmvae_params(kp, input_dim, hidden_dim, z_dim, n_layers)

    out, mu, logvar = lstmvae_forward(params, X, noise_flat)
    jax.block_until_ready((out, mu, logvar))

    assert out.shape == (B, W, input_dim)
    assert mu.shape == (B, W, z_dim)
    assert logvar.shape == (B, W, z_dim)
    assert bool(jnp.all(jnp.isfinite(out)))
    assert bool(jnp.all(jnp.isfinite(mu)))
    assert bool(jnp.all(jnp.isfinite(logvar)))

    print("KERNEL_OK")
</pallas_src>

<mosaic_0001>
module attributes {stable_mosaic.version = 11 : i64} {
  func.func @_lstmvae_kernel(%arg0: memref<16x16xf32, #tpu.memory_space<vmem>>, %arg1: memref<16x8xf32, #tpu.memory_space<vmem>>, %arg2: memref<16x128xf32, #tpu.memory_space<vmem>>, %arg3: memref<32x128xf32, #tpu.memory_space<vmem>>, %arg4: memref<1x128xf32, #tpu.memory_space<vmem>>, %arg5: memref<32x128xf32, #tpu.memory_space<vmem>>, %arg6: memref<32x128xf32, #tpu.memory_space<vmem>>, %arg7: memref<1x128xf32, #tpu.memory_space<vmem>>, %arg8: memref<32x16xf32, #tpu.memory_space<vmem>>, %arg9: memref<1x16xf32, #tpu.memory_space<vmem>>, %arg10: memref<8x128xf32, #tpu.memory_space<vmem>>, %arg11: memref<32x128xf32, #tpu.memory_space<vmem>>, %arg12: memref<1x128xf32, #tpu.memory_space<vmem>>, %arg13: memref<32x128xf32, #tpu.memory_space<vmem>>, %arg14: memref<32x128xf32, #tpu.memory_space<vmem>>, %arg15: memref<1x128xf32, #tpu.memory_space<vmem>>, %arg16: memref<32x16xf32, #tpu.memory_space<vmem>>, %arg17: memref<1x16xf32, #tpu.memory_space<vmem>>, %arg18: memref<16x16xf32, #tpu.memory_space<vmem>>, %arg19: memref<16x16xf32, #tpu.memory_space<vmem>>, %arg20: memref<16x32xf32, #tpu.memory_space<vmem>>, %arg21: memref<16x32xf32, #tpu.memory_space<vmem>>) attributes {dimension_semantics = [], scalar_prefetch = 0 : i64, scratch_operands = 2 : i64, tpu.core_type = #tpu.core_type<tc>} {
    %c0 = arith.constant 0 : index
    %c0_0 = arith.constant 0 : index
    %0 = vector.load %arg0[%c0, %c0_0] : memref<16x16xf32, #tpu.memory_space<vmem>>, vector<16x16xf32>
    %c0_1 = arith.constant 0 : index
    %c0_2 = arith.constant 0 : index
    %1 = vector.load %arg2[%c0_1, %c0_2] : memref<16x128xf32, #tpu.memory_space<vmem>>, vector<16x128xf32>
    %c0_3 = arith.constant 0 : index
    %c0_4 = arith.constant 0 : index
    %2 = vector.load %arg3[%c0_3, %c0_4] : memref<32x128xf32, #tpu.memory_space<vmem>>, vector<32x128xf32>
    %c0_5 = arith.constant 0 : index
    %c0_6 = arith.constant 0 : index
    %3 = vector.load %arg4[%c0_5, %c0_6] : memref<1x128xf32, #tpu.memory_space<vmem>>, vector<1x128xf32>
    %cst = arith.constant dense<0.000000e+00> : vector<16x128xf32>
    %4 = tpu.matmul %0, %1, %cst {dimension_numbers = #tpu.dot_dimension_numbers<[1], [0], [0], [1], [0, 0, 1, 1], [], []>} : vector<16x16xf32>, vector<16x128xf32>, vector<16x128xf32> -> vector<16x128xf32>
    %5 = vector.broadcast %3 : vector<1x128xf32> to vector<16x128xf32>
    %6 = arith.addf %4, %5 : vector<16x128xf32>
    %cst_7 = arith.constant 0.000000e+00 : f32
    %7 = vector.broadcast %cst_7 : f32 to vector<2x32xf32>
    %cst_8 = arith.constant 0.000000e+00 : f32
    %8 = vector.broadcast %cst_8 : f32 to vector<2x32xf32>
    %9 = vector.extract_strided_slice %6 {offsets = [0, 0], sizes = [2, 128], strides = [1, 1]} : vector<16x128xf32> to vector<2x128xf32>
    %cst_9 = arith.constant dense<0.000000e+00> : vector<2x128xf32>
    %10 = tpu.matmul %7, %2, %cst_9 {dimension_numbers = #tpu.dot_dimension_numbers<[1], [0], [0], [1], [0, 0, 1, 1], [], []>} : vector<2x32xf32>, vector<32x128xf32>, vector<2x128xf32> -> vector<2x128xf32>
    %11 = arith.addf %9, %10 : vector<2x128xf32>
    %12 = vector.extract_strided_slice %11 {offsets = [0, 0], sizes = [2, 96], strides = [1, 1]} : vector<2x128xf32> to vector<2x96xf32>
    %13 = arith.negf %12 : vector<2x96xf32>
    %14 = math.exp %13 : vector<2x96xf32>
    %cst_10 = arith.constant 1.000000e+00 : f32
    %15 = vector.broadcast %cst_10 : f32 to vector<2x96xf32>
    %16 = arith.addf %15, %14 : vector<2x96xf32>
    %17 = arith.divf %15, %16 : vector<2x96xf32>
    %18 = vector.extract_strided_slice %11 {offsets = [0, 96], sizes = [2, 32], strides = [1, 1]} : vector<2x128xf32> to vector<2x32xf32>
    %19 = math.tanh %18 : vector<2x32xf32>
    %20 = vector.extract_strided_slice %17 {offsets = [0, 0], sizes = [2, 32], strides = [1, 1]} : vector<2x96xf32> to vector<2x32xf32>
    %21 = vector.extract_strided_slice %17 {offsets = [0, 32], sizes = [2, 32], strides = [1, 1]} : vector<2x96xf32> to vector<2x32xf32>
    %22 = vector.extract_strided_slice %17 {offsets = [0, 64], sizes = [2, 32], strides = [1, 1]} : vector<2x96xf32> to vector<2x32xf32>
    %23 = arith.mulf %21, %8 : vector<2x32xf32>
    %24 = arith.mulf %20, %19 : vector<2x32xf32>
    %25 = arith.addf %23, %24 : vector<2x32xf32>
    %26 = math.tanh %25 : vector<2x32xf32>
    %27 = arith.mulf %22, %26 : vector<2x32xf32>
    %c0_11 = arith.constant 0 : index
    %c0_12 = arith.constant 0 : index
    %28 = vector.load %arg20[%c0_11, %c0_12] : memref<16x32xf32, #tpu.memory_space<vmem>>, vector<2x32xf32>
    tpu.vector_store %arg20[%c0_11, %c0_12], %27 {strides = array<i32>} : memref<16x32xf32, #tpu.memory_space<vmem>>, vector<2x32xf32>,
    %29 = vector.extract_strided_slice %6 {offsets = [2, 0], sizes = [2, 128], strides = [1, 1]} : vector<16x128xf32> to vector<2x128xf32>
    %cst_13 = arith.constant dense<0.000000e+00> : vector<2x128xf32>
    %30 = tpu.matmul %27, %2, %cst_13 {dimension_numbers = #tpu.dot_dimension_numbers<[1], [0], [0], [1], [0, 0, 1, 1], [], []>} : vector<2x32xf32>, vector<32x128xf32>, vector<2x128xf32> -> vector<2x128xf32>
    %31 = arith.addf %29, %30 : vector<2x128xf32>
    %32 = vector.extract_strided_slice %31 {offsets = [0, 0], sizes = [2, 96], strides = [1, 1]} : vector<2x128xf32> to vector<2x96xf32>
    %33 = arith.negf %32 : vector<2x96xf32>
    %34 = math.exp %33 : vector<2x96xf32>
    %cst_14 = arith.constant 1.000000e+00 : f32
    %35 = vector.broadcast %cst_14 : f32 to vector<2x96xf32>
    %36 = arith.addf %35, %34 : vector<2x96xf32>
    %37 = arith.divf %35, %36 : vector<2x96xf32>
    %38 = vector.extract_strided_slice %31 {offsets = [0, 96], sizes = [2, 32], strides = [1, 1]} : vector<2x128xf32> to vector<2x32xf32>
    %39 = math.tanh %38 : vector<2x32xf32>
    %40 = vector.extract_strided_slice %37 {offsets = [0, 0], sizes = [2, 32], strides = [1, 1]} : vector<2x96xf32> to vector<2x32xf32>
    %41 = vector.extract_strided_slice %37 {offsets = [0, 32], sizes = [2, 32], strides = [1, 1]} : vector<2x96xf32> to vector<2x32xf32>
    %42 = vector.extract_strided_slice %37 {offsets = [0, 64], sizes = [2, 32], strides = [1, 1]} : vector<2x96xf32> to vector<2x32xf32>
    %43 = arith.mulf %41, %25 : vector<2x32xf32>
    %44 = arith.mulf %40, %39 : vector<2x32xf32>
    %45 = arith.addf %43, %44 : vector<2x32xf32>
    %46 = math.tanh %45 : vector<2x32xf32>
    %47 = arith.mulf %42, %46 : vector<2x32xf32>
    %c2 = arith.constant 2 : index
    %c0_15 = arith.constant 0 : index
    %48 = vector.load %arg20[%c2, %c0_15] : memref<16x32xf32, #tpu.memory_space<vmem>>, vector<2x32xf32>
    tpu.vector_store %arg20[%c2, %c0_15], %47 {strides = array<i32>} : memref<16x32xf32, #tpu.memory_space<vmem>>, vector<2x32xf32>,
    %49 = vector.extract_strided_slice %6 {offsets = [4, 0], sizes = [2, 128], strides = [1, 1]} : vector<16x128xf32> to vector<2x128xf32>
    %cst_16 = arith.constant dense<0.000000e+00> : vector<2x128xf32>
    %50 = tpu.matmul %47, %2, %cst_16 {dimension_numbers = #tpu.dot_dimension_numbers<[1], [0], [0], [1], [0, 0, 1, 1], [], []>} : vector<2x32xf32>, vector<32x128xf32>, vector<2x128xf32> -> vector<2x128xf32>
    %51 = arith.addf %49, %50 : vector<2x128xf32>
    %52 = vector.extract_strided_slice %51 {offsets = [0, 0], sizes = [2, 96], strides = [1, 1]} : vector<2x128xf32> to vector<2x96xf32>
    %53 = arith.negf %52 : vector<2x96xf32>
    %54 = math.exp %53 : vector<2x96xf32>
    %cst_17 = arith.constant 1.000000e+00 : f32
    %55 = vector.broadcast %cst_17 : f32 to vector<2x96xf32>
    %56 = arith.addf %55, %54 : vector<2x96xf32>
    %57 = arith.divf %55, %56 : vector<2x96xf32>
    %58 = vector.extract_strided_slice %51 {offsets = [0, 96], sizes = [2, 32], strides = [1, 1]} : vector<2x128xf32> to vector<2x32xf32>
    %59 = math.tanh %58 : vector<2x32xf32>
    %60 = vector.extract_strided_slice %57 {offsets = [0, 0], sizes = [2, 32], strides = [1, 1]} : vector<2x96xf32> to vector<2x32xf32>
    %61 = vector.extract_strided_slice %57 {offsets = [0, 32], sizes = [2, 32], strides = [1, 1]} : vector<2x96xf32> to vector<2x32xf32>
    %62 = vector.extract_strided_slice %57 {offsets = [0, 64], sizes = [2, 32], strides = [1, 1]} : vector<2x96xf32> to vector<2x32xf32>
    %63 = arith.mulf %61, %45 : vector<2x32xf32>
    %64 = arith.mulf %60, %59 : vector<2x32xf32>
    %65 = arith.addf %63, %64 : vector<2x32xf32>
    %66 = math.tanh %65 : vector<2x32xf32>
    %67 = arith.mulf %62, %66 : vector<2x32xf32>
    %c4 = arith.constant 4 : index
    %c0_18 = arith.constant 0 : index
    %68 = vector.load %arg20[%c4, %c0_18] : memref<16x32xf32, #tpu.memory_space<vmem>>, vector<2x32xf32>
    tpu.vector_store %arg20[%c4, %c0_18], %67 {strides = array<i32>} : memref<16x32xf32, #tpu.memory_space<vmem>>, vector<2x32xf32>,
    %69 = vector.extract_strided_slice %6 {offsets = [6, 0], sizes = [2, 128], strides = [1, 1]} : vector<16x128xf32> to vector<2x128xf32>
    %cst_19 = arith.constant dense<0.000000e+00> : vector<2x128xf32>
    %70 = tpu.matmul %67, %2, %cst_19 {dimension_numbers = #tpu.dot_dimension_numbers<[1], [0], [0], [1], [0, 0, 1, 1], [], []>} : vector<2x32xf32>, vector<32x128xf32>, vector<2x128xf32> -> vector<2x128xf32>
    %71 = arith.addf %69, %70 : vector<2x128xf32>
    %72 = vector.extract_strided_slice %71 {offsets = [0, 0], sizes = [2, 96], strides = [1, 1]} : vector<2x128xf32> to vector<2x96xf32>
    %73 = arith.negf %72 : vector<2x96xf32>
    %74 = math.exp %73 : vector<2x96xf32>
    %cst_20 = arith.constant 1.000000e+00 : f32
    %75 = vector.broadcast %cst_20 : f32 to vector<2x96xf32>
    %76 = arith.addf %75, %74 : vector<2x96xf32>
    %77 = arith.divf %75, %76 : vector<2x96xf32>
    %78 = vector.extract_strided_slice %71 {offsets = [0, 96], sizes = [2, 32], strides = [1, 1]} : vector<2x128xf32> to vector<2x32xf32>
    %79 = math.tanh %78 : vector<2x32xf32>
    %80 = vector.extract_strided_slice %77 {offsets = [0, 0], sizes = [2, 32], strides = [1, 1]} : vector<2x96xf32> to vector<2x32xf32>
    %81 = vector.extract_strided_slice %77 {offsets = [0, 32], sizes = [2, 32], strides = [1, 1]} : vector<2x96xf32> to vector<2x32xf32>
    %82 = vector.extract_strided_slice %77 {offsets = [0, 64], sizes = [2, 32], strides = [1, 1]} : vector<2x96xf32> to vector<2x32xf32>
    %83 = arith.mulf %81, %65 : vector<2x32xf32>
    %84 = arith.mulf %80, %79 : vector<2x32xf32>
    %85 = arith.addf %83, %84 : vector<2x32xf32>
    %86 = math.tanh %85 : vector<2x32xf32>
    %87 = arith.mulf %82, %86 : vector<2x32xf32>
    %c6 = arith.constant 6 : index
    %c0_21 = arith.constant 0 : index
    %88 = vector.load %arg20[%c6, %c0_21] : memref<16x32xf32, #tpu.memory_space<vmem>>, vector<2x32xf32>
    tpu.vector_store %arg20[%c6, %c0_21], %87 {strides = array<i32>} : memref<16x32xf32, #tpu.memory_space<vmem>>, vector<2x32xf32>,
    %89 = vector.extract_strided_slice %6 {offsets = [8, 0], sizes = [2, 128], strides = [1, 1]} : vector<16x128xf32> to vector<2x128xf32>
    %cst_22 = arith.constant dense<0.000000e+00> : vector<2x128xf32>
    %90 = tpu.matmul %87, %2, %cst_22 {dimension_numbers = #tpu.dot_dimension_numbers<[1], [0], [0], [1], [0, 0, 1, 1], [], []>} : vector<2x32xf32>, vector<32x128xf32>, vector<2x128xf32> -> vector<2x128xf32>
    %91 = arith.addf %89, %90 : vector<2x128xf32>
    %92 = vector.extract_strided_slice %91 {offsets = [0, 0], sizes = [2, 96], strides = [1, 1]} : vector<2x128xf32> to vector<2x96xf32>
    %93 = arith.negf %92 : vector<2x96xf32>
    %94 = math.exp %93 : vector<2x96xf32>
    %cst_23 = arith.constant 1.000000e+00 : f32
    %95 = vector.broadcast %cst_23 : f32 to vector<2x96xf32>
    %96 = arith.addf %95, %94 : vector<2x96xf32>
    %97 = arith.divf %95, %96 : vector<2x96xf32>
    %98 = vector.extract_strided_slice %91 {offsets = [0, 96], sizes = [2, 32], strides = [1, 1]} : vector<2x128xf32> to vector<2x32xf32>
    %99 = math.tanh %98 : vector<2x32xf32>
    %100 = vector.extract_strided_slice %97 {offsets = [0, 0], sizes = [2, 32], strides = [1, 1]} : vector<2x96xf32> to vector<2x32xf32>
    %101 = vector.extract_strided_slice %97 {offsets = [0, 32], sizes = [2, 32], strides = [1, 1]} : vector<2x96xf32> to vector<2x32xf32>
    %102 = vector.extract_strided_slice %97 {offsets = [0, 64], sizes = [2, 32], strides = [1, 1]} : vector<2x96xf32> to vector<2x32xf32>
    %103 = arith.mulf %101, %85 : vector<2x32xf32>
    %104 = arith.mulf %100, %99 : vector<2x32xf32>
    %105 = arith.addf %103, %104 : vector<2x32xf32>
    %106 = math.tanh %105 : vector<2x32xf32>
    %107 = arith.mulf %102, %106 : vector<2x32xf32>
    %c8 = arith.constant 8 : index
    %c0_24 = arith.constant 0 : index
    %108 = vector.load %arg20[%c8, %c0_24] : memref<16x32xf32, #tpu.memory_space<vmem>>, vector<2x32xf32>
    tpu.vector_store %arg20[%c8, %c0_24], %107 {strides = array<i32>} : memref<16x32xf32, #tpu.memory_space<vmem>>, vector<2x32xf32>,
    %109 = vector.extract_strided_slice %6 {offsets = [10, 0], sizes = [2, 128], strides = [1, 1]} : vector<16x128xf32> to vector<2x128xf32>
    %cst_25 = arith.constant dense<0.000000e+00> : vector<2x128xf32>
    %110 = tpu.matmul %107, %2, %cst_25 {dimension_numbers = #tpu.dot_dimension_numbers<[1], [0], [0], [1], [0, 0, 1, 1], [], []>} : vector<2x32xf32>, vector<32x128xf32>, vector<2x128xf32> -> vector<2x128xf32>
    %111 = arith.addf %109, %110 : vector<2x128xf32>
    %112 = vector.extract_strided_slice %111 {offsets = [0, 0], sizes = [2, 96], strides = [1, 1]} : vector<2x128xf32> to vector<2x96xf32>
    %113 = arith.negf %112 : vector<2x96xf32>
    %114 = math.exp %113 : vector<2x96xf32>
    %cst_26 = arith.constant 1.000000e+00 : f32
    %115 = vector.broadcast %cst_26 : f32 to vector<2x96xf32>
    %116 = arith.addf %115, %114 : vector<2x96xf32>
    %117 = arith.divf %115, %116 : vector<2x96xf32>
    %118 = vector.extract_strided_slice %111 {offsets = [0, 96], sizes = [2, 32], strides = [1, 1]} : vector<2x128xf32> to vector<2x32xf32>
    %119 = math.tanh %118 : vector<2x32xf32>
    %120 = vector.extract_strided_slice %117 {offsets = [0, 0], sizes = [2, 32], strides = [1, 1]} : vector<2x96xf32> to vector<2x32xf32>
    %121 = vector.extract_strided_slice %117 {offsets = [0, 32], sizes = [2, 32], strides = [1, 1]} : vector<2x96xf32> to vector<2x32xf32>
    %122 = vector.extract_strided_slice %117 {offsets = [0, 64], sizes = [2, 32], strides = [1, 1]} : vector<2x96xf32> to vector<2x32xf32>
    %123 = arith.mulf %121, %105 : vector<2x32xf32>
    %124 = arith.mulf %120, %119 : vector<2x32xf32>
    %125 = arith.addf %123, %124 : vector<2x32xf32>
    %126 = math.tanh %125 : vector<2x32xf32>
    %127 = arith.mulf %122, %126 : vector<2x32xf32>
    %c10 = arith.constant 10 : index
    %c0_27 = arith.constant 0 : index
    %128 = vector.load %arg20[%c10, %c0_27] : memref<16x32xf32, #tpu.memory_space<vmem>>, vector<2x32xf32>
    tpu.vector_store %arg20[%c10, %c0_27], %127 {strides = array<i32>} : memref<16x32xf32, #tpu.memory_space<vmem>>, vector<2x32xf32>,
    %129 = vector.extract_strided_slice %6 {offsets = [12, 0], sizes = [2, 128], strides = [1, 1]} : vector<16x128xf32> to vector<2x128xf32>
    %cst_28 = arith.constant dense<0.000000e+00> : vector<2x128xf32>
    %130 = tpu.matmul %127, %2, %cst_28 {dimension_numbers = #tpu.dot_dimension_numbers<[1], [0], [0], [1], [0, 0, 1, 1], [], []>} : vector<2x32xf32>, vector<32x128xf32>, vector<2x128xf32> -> vector<2x128xf32>
    %131 = arith.addf %129, %130 : vector<2x128xf32>
    %132 = vector.extract_strided_slice %131 {offsets = [0, 0], sizes = [2, 96], strides = [1, 1]} : vector<2x128xf32> to vector<2x96xf32>
    %133 = arith.negf %132 : vector<2x96xf32>
    %134 = math.exp %133 : vector<2x96xf32>
    %cst_29 = arith.constant 1.000000e+00 : f32
    %135 = vector.broadcast %cst_29 : f32 to vector<2x96xf32>
    %136 = arith.addf %135, %134 : vector<2x96xf32>
    %137 = arith.divf %135, %136 : vector<2x96xf32>
    %138 = vector.extract_strided_slice %131 {offsets = [0, 96], sizes = [2, 32], strides = [1, 1]} : vector<2x128xf32> to vector<2x32xf32>
    %139 = math.tanh %138 : vector<2x32xf32>
    %140 = vector.extract_strided_slice %137 {offsets = [0, 0], sizes = [2, 32], strides = [1, 1]} : vector<2x96xf32> to vector<2x32xf32>
    %141 = vector.extract_strided_slice %137 {offsets = [0, 32], sizes = [2, 32], strides = [1, 1]} : vector<2x96xf32> to vector<2x32xf32>
    %142 = vector.extract_strided_slice %137 {offsets = [0, 64], sizes = [2, 32], strides = [1, 1]} : vector<2x96xf32> to vector<2x32xf32>
    %143 = arith.mulf %141, %125 : vector<2x32xf32>
    %144 = arith.mulf %140, %139 : vector<2x32xf32>
    %145 = arith.addf %143, %144 : vector<2x32xf32>
    %146 = math.tanh %145 : vector<2x32xf32>
    %147 = arith.mulf %142, %146 : vector<2x32xf32>
    %c12 = arith.constant 12 : index
    %c0_30 = arith.constant 0 : index
    %148 = vector.load %arg20[%c12, %c0_30] : memref<16x32xf32, #tpu.memory_space<vmem>>, vector<2x32xf32>
    tpu.vector_store %arg20[%c12, %c0_30], %147 {strides = array<i32>} : memref<16x32xf32, #tpu.memory_space<vmem>>, vector<2x32xf32>,
    %149 = vector.extract_strided_slice %6 {offsets = [14, 0], sizes = [2, 128], strides = [1, 1]} : vector<16x128xf32> to vector<2x128xf32>
    %cst_31 = arith.constant dense<0.000000e+00> : vector<2x128xf32>
    %150 = tpu.matmul %147, %2, %cst_31 {dimension_numbers = #tpu.dot_dimension_numbers<[1], [0], [0], [1], [0, 0, 1, 1], [], []>} : vector<2x32xf32>, vector<32x128xf32>, vector<2x128xf32> -> vector<2x128xf32>
    %151 = arith.addf %149, %150 : vector<2x128xf32>
    %152 = vector.extract_strided_slice %151 {offsets = [0, 0], sizes = [2, 96], strides = [1, 1]} : vector<2x128xf32> to vector<2x96xf32>
    %153 = arith.negf %152 : vector<2x96xf32>
    %154 = math.exp %153 : vector<2x96xf32>
    %cst_32 = arith.constant 1.000000e+00 : f32
    %155 = vector.broadcast %cst_32 : f32 to vector<2x96xf32>
    %156 = arith.addf %155, %154 : vector<2x96xf32>
    %157 = arith.divf %155, %156 : vector<2x96xf32>
    %158 = vector.extract_strided_slice %151 {offsets = [0, 96], sizes = [2, 32], strides = [1, 1]} : vector<2x128xf32> to vector<2x32xf32>
    %159 = math.tanh %158 : vector<2x32xf32>
    %160 = vector.extract_strided_slice %157 {offsets = [0, 0], sizes = [2, 32], strides = [1, 1]} : vector<2x96xf32> to vector<2x32xf32>
    %161 = vector.extract_strided_slice %157 {offsets = [0, 32], sizes = [2, 32], strides = [1, 1]} : vector<2x96xf32> to vector<2x32xf32>
    %162 = vector.extract_strided_slice %157 {offsets = [0, 64], sizes = [2, 32], strides = [1, 1]} : vector<2x96xf32> to vector<2x32xf32>
    %163 = arith.mulf %161, %145 : vector<2x32xf32>
    %164 = arith.mulf %160, %159 : vector<2x32xf32>
    %165 = arith.addf %163, %164 : vector<2x32xf32>
    %166 = math.tanh %165 : vector<2x32xf32>
    %167 = arith.mulf %162, %166 : vector<2x32xf32>
    %c14 = arith.constant 14 : index
    %c0_33 = arith.constant 0 : index
    %168 = vector.load %arg20[%c14, %c0_33] : memref<16x32xf32, #tpu.memory_space<vmem>>, vector<2x32xf32>
    tpu.vector_store %arg20[%c14, %c0_33], %167 {strides = array<i32>} : memref<16x32xf32, #tpu.memory_space<vmem>>, vector<2x32xf32>,
    %c0_34 = arith.constant 0 : index
    %c0_35 = arith.constant 0 : index
    %169 = vector.load %arg20[%c0_34, %c0_35] : memref<16x32xf32, #tpu.memory_space<vmem>>, vector<16x32xf32>
    %c0_36 = arith.constant 0 : index
    %c0_37 = arith.constant 0 : index
    %170 = vector.load %arg5[%c0_36, %c0_37] : memref<32x128xf32, #tpu.memory_space<vmem>>, vector<32x128xf32>
    %c0_38 = arith.constant 0 : index
    %c0_39 = arith.constant 0 : index
    %171 = vector.load %arg6[%c0_38, %c0_39] : memref<32x128xf32, #tpu.memory_space<vmem>>, vector<32x128xf32>
    %c0_40 = arith.constant 0 : index
    %c0_41 = arith.constant 0 : index
    %172 = vector.load %arg7[%c0_40, %c0_41] : memref<1x128xf32, #tpu.memory_space<vmem>>, vector<1x128xf32>
    %cst_42 = arith.constant dense<0.000000e+00> : vector<16x128xf32>
    %173 = tpu.matmul %169, %170, %cst_42 {dimension_numbers = #tpu.dot_dimension_numbers<[1], [0], [0], [1], [0, 0, 1, 1], [], []>} : vector<16x32xf32>, vector<32x128xf32>, vector<16x128xf32> -> vector<16x128xf32>
    %174 = vector.broadcast %172 : vector<1x128xf32> to vector<16x128xf32>
    %175 = arith.addf %173, %174 : vector<16x128xf32>
    %cst_43 = arith.constant 0.000000e+00 : f32
    %176 = vector.broadcast %cst_43 : f32 to vector<2x32xf32>
    %cst_44 = arith.constant 0.000000e+00 : f32
    %177 = vector.broadcast %cst_44 : f32 to vector<2x32xf32>
    %178 = vector.extract_strided_slice %175 {offsets = [0, 0], sizes = [2, 128], strides = [1, 1]} : vector<16x128xf32> to vector<2x128xf32>
    %cst_45 = arith.constant dense<0.000000e+00> : vector<2x128xf32>
    %179 = tpu.matmul %176, %171, %cst_45 {dimension_numbers = #tpu.dot_dimension_numbers<[1], [0], [0], [1], [0, 0, 1, 1], [], []>} : vector<2x32xf32>, vector<32x128xf32>, vector<2x128xf32> -> vector<2x128xf32>
    %180 = arith.addf %178, %179 : vector<2x128xf32>
    %181 = vector.extract_strided_slice %180 {offsets = [0, 0], sizes = [2, 96], strides = [1, 1]} : vector<2x128xf32> to vector<2x96xf32>
    %182 = arith.negf %181 : vector<2x96xf32>
    %183 = math.exp %182 : vector<2x96xf32>
    %cst_46 = arith.constant 1.000000e+00 : f32
    %184 = vector.broadcast %cst_46 : f32 to vector<2x96xf32>
    %185 = arith.addf %184, %183 : vector<2x96xf32>
    %186 = arith.divf %184, %185 : vector<2x96xf32>
    %187 = vector.extract_strided_slice %180 {offsets = [0, 96], sizes = [2, 32], strides = [1, 1]} : vector<2x128xf32> to vector<2x32xf32>
    %188 = math.tanh %187 : vector<2x32xf32>
    %189 = vector.extract_strided_slice %186 {offsets = [0, 0], sizes = [2, 32], strides = [1, 1]} : vector<2x96xf32> to vector<2x32xf32>
    %190 = vector.extract_strided_slice %186 {offsets = [0, 32], sizes = [2, 32], strides = [1, 1]} : vector<2x96xf32> to vector<2x32xf32>
    %191 = vector.extract_strided_slice %186 {offsets = [0, 64], sizes = [2, 32], strides = [1, 1]} : vector<2x96xf32> to vector<2x32xf32>
    %192 = arith.mulf %190, %177 : vector<2x32xf32>
    %193 = arith.mulf %189, %188 : vector<2x32xf32>
    %194 = arith.addf %192, %193 : vector<2x32xf32>
    %195 = math.tanh %194 : vector<2x32xf32>
    %196 = arith.mulf %191, %195 : vector<2x32xf32>
    %c0_47 = arith.constant 0 : index
    %c0_48 = arith.constant 0 : index
    %197 = vector.load %arg21[%c0_47, %c0_48] : memref<16x32xf32, #tpu.memory_space<vmem>>, vector<2x32xf32>
    tpu.vector_store %arg21[%c0_47, %c0_48], %196 {strides = array<i32>} : memref<16x32xf32, #tpu.memory_space<vmem>>, vector<2x32xf32>,
    %198 = vector.extract_strided_slice %175 {offsets = [2, 0], sizes = [2, 128], strides = [1, 1]} : vector<16x128xf32> to vector<2x128xf32>
    %cst_49 = arith.constant dense<0.000000e+00> : vector<2x128xf32>
    %199 = tpu.matmul %196, %171, %cst_49 {dimension_numbers = #tpu.dot_dimension_numbers<[1], [0], [0], [1], [0, 0, 1, 1], [], []>} : vector<2x32xf32>, vector<32x128xf32>, vector<2x128xf32> -> vector<2x128xf32>
    %200 = arith.addf %198, %199 : vector<2x128xf32>
    %201 = vector.extract_strided_slice %200 {offsets = [0, 0], sizes = [2, 96], strides = [1, 1]} : vector<2x128xf32> to vector<2x96xf32>
    %202 = arith.negf %201 : vector<2x96xf32>
    %203 = math.exp %202 : vector<2x96xf32>
    %cst_50 = arith.constant 1.000000e+00 : f32
    %204 = vector.broadcast %cst_50 : f32 to vector<2x96xf32>
    %205 = arith.addf %204, %203 : vector<2x96xf32>
    %206 = arith.divf %204, %205 : vector<2x96xf32>
    %207 = vector.extract_strided_slice %200 {offsets = [0, 96], sizes = [2, 32], strides = [1, 1]} : vector<2x128xf32> to vector<2x32xf32>
    %208 = math.tanh %207 : vector<2x32xf32>
    %209 = vector.extract_strided_slice %206 {offsets = [0, 0], sizes = [2, 32], strides = [1, 1]} : vector<2x96xf32> to vector<2x32xf32>
    %210 = vector.extract_strided_slice %206 {offsets = [0, 32], sizes = [2, 32], strides = [1, 1]} : vector<2x96xf32> to vector<2x32xf32>
    %211 = vector.extract_strided_slice %206 {offsets = [0, 64], sizes = [2, 32], strides = [1, 1]} : vector<2x96xf32> to vector<2x32xf32>
    %212 = arith.mulf %210, %194 : vector<2x32xf32>
    %213 = arith.mulf %209, %208 : vector<2x32xf32>
    %214 = arith.addf %212, %213 : vector<2x32xf32>
    %215 = math.tanh %214 : vector<2x32xf32>
    %216 = arith.mulf %211, %215 : vector<2x32xf32>
    %c2_51 = arith.constant 2 : index
    %c0_52 = arith.constant 0 : index
    %217 = vector.load %arg21[%c2_51, %c0_52] : memref<16x32xf32, #tpu.memory_space<vmem>>, vector<2x32xf32>
    tpu.vector_store %arg21[%c2_51, %c0_52], %216 {strides = array<i32>} : memref<16x32xf32, #tpu.memory_space<vmem>>, vector<2x32xf32>,
    %218 = vector.extract_strided_slice %175 {offsets = [4, 0], sizes = [2, 128], strides = [1, 1]} : vector<16x128xf32> to vector<2x128xf32>
    %cst_53 = arith.constant dense<0.000000e+00> : vector<2x128xf32>
    %219 = tpu.matmul %216, %171, %cst_53 {dimension_numbers = #tpu.dot_dimension_numbers<[1], [0], [0], [1], [0, 0, 1, 1], [], []>} : vector<2x32xf32>, vector<32x128xf32>, vector<2x128xf32> -> vector<2x128xf32>
    %220 = arith.addf %218, %219 : vector<2x128xf32>
    %221 = vector.extract_strided_slice %220 {offsets = [0, 0], sizes = [2, 96], strides = [1, 1]} : vector<2x128xf32> to vector<2x96xf32>
    %222 = arith.negf %221 : vector<2x96xf32>
    %223 = math.exp %222 : vector<2x96xf32>
    %cst_54 = arith.constant 1.000000e+00 : f32
    %224 = vector.broadcast %cst_54 : f32 to vector<2x96xf32>
    %225 = arith.addf %224, %223 : vector<2x96xf32>
    %226 = arith.divf %224, %225 : vector<2x96xf32>
    %227 = vector.extract_strided_slice %220 {offsets = [0, 96], sizes = [2, 32], strides = [1, 1]} : vector<2x128xf32> to vector<2x32xf32>
    %228 = math.tanh %227 : vector<2x32xf32>
    %229 = vector.extract_strided_slice %226 {offsets = [0, 0], sizes = [2, 32], strides = [1, 1]} : vector<2x96xf32> to vector<2x32xf32>
    %230 = vector.extract_strided_slice %226 {offsets = [0, 32], sizes = [2, 32], strides = [1, 1]} : vector<2x96xf32> to vector<2x32xf32>
    %231 = vector.extract_strided_slice %226 {offsets = [0, 64], sizes = [2, 32], strides = [1, 1]} : vector<2x96xf32> to vector<2x32xf32>
    %232 = arith.mulf %230, %214 : vector<2x32xf32>
    %233 = arith.mulf %229, %228 : vector<2x32xf32>
    %234 = arith.addf %232, %233 : vector<2x32xf32>
    %235 = math.tanh %234 : vector<2x32xf32>
    %236 = arith.mulf %231, %235 : vector<2x32xf32>
    %c4_55 = arith.constant 4 : index
    %c0_56 = arith.constant 0 : index
    %237 = vector.load %arg21[%c4_55, %c0_56] : memref<16x32xf32, #tpu.memory_space<vmem>>, vector<2x32xf32>
    tpu.vector_store %arg21[%c4_55, %c0_56], %236 {strides = array<i32>} : memref<16x32xf32, #tpu.memory_space<vmem>>, vector<2x32xf32>,
    %238 = vector.extract_strided_slice %175 {offsets = [6, 0], sizes = [2, 128], strides = [1, 1]} : vector<16x128xf32> to vector<2x128xf32>
    %cst_57 = arith.constant dense<0.000000e+00> : vector<2x128xf32>
    %239 = tpu.matmul %236, %171, %cst_57 {dimension_numbers = #tpu.dot_dimension_numbers<[1], [0], [0], [1], [0, 0, 1, 1], [], []>} : vector<2x32xf32>, vector<32x128xf32>, vector<2x128xf32> -> vector<2x128xf32>
    %240 = arith.addf %238, %239 : vector<2x128xf32>
    %241 = vector.extract_strided_slice %240 {offsets = [0, 0], sizes = [2, 96], strides = [1, 1]} : vector<2x128xf32> to vector<2x96xf32>
    %242 = arith.negf %241 : vector<2x96xf32>
    %243 = math.exp %242 : vector<2x96xf32>
    %cst_58 = arith.constant 1.000000e+00 : f32
    %244 = vector.broadcast %cst_58 : f32 to vector<2x96xf32>
    %245 = arith.addf %244, %243 : vector<2x96xf32>
    %246 = arith.divf %244, %245 : vector<2x96xf32>
    %247 = vector.extract_strided_slice %240 {offsets = [0, 96], sizes = [2, 32], strides = [1, 1]} : vector<2x128xf32> to vector<2x32xf32>
    %248 = math.tanh %247 : vector<2x32xf32>
    %249 = vector.extract_strided_slice %246 {offsets = [0, 0], sizes = [2, 32], strides = [1, 1]} : vector<2x96xf32> to vector<2x32xf32>
    %250 = vector.extract_strided_slice %246 {offsets = [0, 32], sizes = [2, 32], strides = [1, 1]} : vector<2x96xf32> to vector<2x32xf32>
    %251 = vector.extract_strided_slice %246 {offsets = [0, 64], sizes = [2, 32], strides = [1, 1]} : vector<2x96xf32> to vector<2x32xf32>
    %252 = arith.mulf %250, %234 : vector<2x32xf32>
    %253 = arith.mulf %249, %248 : vector<2x32xf32>
    %254 = arith.addf %252, %253 : vector<2x32xf32>
    %255 = math.tanh %254 : vector<2x32xf32>
    %256 = arith.mulf %251, %255 : vector<2x32xf32>
    %c6_59 = arith.constant 6 : index
    %c0_60 = arith.constant 0 : index
    %257 = vector.load %arg21[%c6_59, %c0_60] : memref<16x32xf32, #tpu.memory_space<vmem>>, vector<2x32xf32>
    tpu.vector_store %arg21[%c6_59, %c0_60], %256 {strides = array<i32>} : memref<16x32xf32, #tpu.memory_space<vmem>>, vector<2x32xf32>,
    %258 = vector.extract_strided_slice %175 {offsets = [8, 0], sizes = [2, 128], strides = [1, 1]} : vector<16x128xf32> to vector<2x128xf32>
    %cst_61 = arith.constant dense<0.000000e+00> : vector<2x128xf32>
    %259 = tpu.matmul %256, %171, %cst_61 {dimension_numbers = #tpu.dot_dimension_numbers<[1], [0], [0], [1], [0, 0, 1, 1], [], []>} : vector<2x32xf32>, vector<32x128xf32>, vector<2x128xf32> -> vector<2x128xf32>
    %260 = arith.addf %258, %259 : vector<2x128xf32>
    %261 = vector.extract_strided_slice %260 {offsets = [0, 0], sizes = [2, 96], strides = [1, 1]} : vector<2x128xf32> to vector<2x96xf32>
    %262 = arith.negf %261 : vector<2x96xf32>
    %263 = math.exp %262 : vector<2x96xf32>
    %cst_62 = arith.constant 1.000000e+00 : f32
    %264 = vector.broadcast %cst_62 : f32 to vector<2x96xf32>
    %265 = arith.addf %264, %263 : vector<2x96xf32>
    %266 = arith.divf %264, %265 : vector<2x96xf32>
    %267 = vector.extract_strided_slice %260 {offsets = [0, 96], sizes = [2, 32], strides = [1, 1]} : vector<2x128xf32> to vector<2x32xf32>
    %268 = math.tanh %267 : vector<2x32xf32>
    %269 = vector.extract_strided_slice %266 {offsets = [0, 0], sizes = [2, 32], strides = [1, 1]} : vector<2x96xf32> to vector<2x32xf32>
    %270 = vector.extract_strided_slice %266 {offsets = [0, 32], sizes = [2, 32], strides = [1, 1]} : vector<2x96xf32> to vector<2x32xf32>
    %271 = vector.extract_strided_slice %266 {offsets = [0, 64], sizes = [2, 32], strides = [1, 1]} : vector<2x96xf32> to vector<2x32xf32>
    %272 = arith.mulf %270, %254 : vector<2x32xf32>
    %273 = arith.mulf %269, %268 : vector<2x32xf32>
    %274 = arith.addf %272, %273 : vector<2x32xf32>
    %275 = math.tanh %274 : vector<2x32xf32>
    %276 = arith.mulf %271, %275 : vector<2x32xf32>
    %c8_63 = arith.constant 8 : index
    %c0_64 = arith.constant 0 : index
    %277 = vector.load %arg21[%c8_63, %c0_64] : memref<16x32xf32, #tpu.memory_space<vmem>>, vector<2x32xf32>
    tpu.vector_store %arg21[%c8_63, %c0_64], %276 {strides = array<i32>} : memref<16x32xf32, #tpu.memory_space<vmem>>, vector<2x32xf32>,
    %278 = vector.extract_strided_slice %175 {offsets = [10, 0], sizes = [2, 128], strides = [1, 1]} : vector<16x128xf32> to vector<2x128xf32>
    %cst_65 = arith.constant dense<0.000000e+00> : vector<2x128xf32>
    %279 = tpu.matmul %276, %171, %cst_65 {dimension_numbers = #tpu.dot_dimension_numbers<[1], [0], [0], [1], [0, 0, 1, 1], [], []>} : vector<2x32xf32>, vector<32x128xf32>, vector<2x128xf32> -> vector<2x128xf32>
    %280 = arith.addf %278, %279 : vector<2x128xf32>
    %281 = vector.extract_strided_slice %280 {offsets = [0, 0], sizes = [2, 96], strides = [1, 1]} : vector<2x128xf32> to vector<2x96xf32>
    %282 = arith.negf %281 : vector<2x96xf32>
    %283 = math.exp %282 : vector<2x96xf32>
    %cst_66 = arith.constant 1.000000e+00 : f32
    %284 = vector.broadcast %cst_66 : f32 to vector<2x96xf32>
    %285 = arith.addf %284, %283 : vector<2x96xf32>
    %286 = arith.divf %284, %285 : vector<2x96xf32>
    %287 = vector.extract_strided_slice %280 {offsets = [0, 96], sizes = [2, 32], strides = [1, 1]} : vector<2x128xf32> to vector<2x32xf32>
    %288 = math.tanh %287 : vector<2x32xf32>
    %289 = vector.extract_strided_slice %286 {offsets = [0, 0], sizes = [2, 32], strides = [1, 1]} : vector<2x96xf32> to vector<2x32xf32>
    %290 = vector.extract_strided_slice %286 {offsets = [0, 32], sizes = [2, 32], strides = [1, 1]} : vector<2x96xf32> to vector<2x32xf32>
    %291 = vector.extract_strided_slice %286 {offsets = [0, 64], sizes = [2, 32], strides = [1, 1]} : vector<2x96xf32> to vector<2x32xf32>
    %292 = arith.mulf %290, %274 : vector<2x32xf32>
    %293 = arith.mulf %289, %288 : vector<2x32xf32>
    %294 = arith.addf %292, %293 : vector<2x32xf32>
    %295 = math.tanh %294 : vector<2x32xf32>
    %296 = arith.mulf %291, %295 : vector<2x32xf32>
    %c10_67 = arith.constant 10 : index
    %c0_68 = arith.constant 0 : index
    %297 = vector.load %arg21[%c10_67, %c0_68] : memref<16x32xf32, #tpu.memory_space<vmem>>, vector<2x32xf32>
    tpu.vector_store %arg21[%c10_67, %c0_68], %296 {strides = array<i32>} : memref<16x32xf32, #tpu.memory_space<vmem>>, vector<2x32xf32>,
    %298 = vector.extract_strided_slice %175 {offsets = [12, 0], sizes = [2, 128], strides = [1, 1]} : vector<16x128xf32> to vector<2x128xf32>
    %cst_69 = arith.constant dense<0.000000e+00> : vector<2x128xf32>
    %299 = tpu.matmul %296, %171, %cst_69 {dimension_numbers = #tpu.dot_dimension_numbers<[1], [0], [0], [1], [0, 0, 1, 1], [], []>} : vector<2x32xf32>, vector<32x128xf32>, vector<2x128xf32> -> vector<2x128xf32>
    %300 = arith.addf %298, %299 : vector<2x128xf32>
    %301 = vector.extract_strided_slice %300 {offsets = [0, 0], sizes = [2, 96], strides = [1, 1]} : vector<2x128xf32> to vector<2x96xf32>
    %302 = arith.negf %301 : vector<2x96xf32>
    %303 = math.exp %302 : vector<2x96xf32>
    %cst_70 = arith.constant 1.000000e+00 : f32
    %304 = vector.broadcast %cst_70 : f32 to vector<2x96xf32>
    %305 = arith.addf %304, %303 : vector<2x96xf32>
    %306 = arith.divf %304, %305 : vector<2x96xf32>
    %307 = vector.extract_strided_slice %300 {offsets = [0, 96], sizes = [2, 32], strides = [1, 1]} : vector<2x128xf32> to vector<2x32xf32>
    %308 = math.tanh %307 : vector<2x32xf32>
    %309 = vector.extract_strided_slice %306 {offsets = [0, 0], sizes = [2, 32], strides = [1, 1]} : vector<2x96xf32> to vector<2x32xf32>
    %310 = vector.extract_strided_slice %306 {offsets = [0, 32], sizes = [2, 32], strides = [1, 1]} : vector<2x96xf32> to vector<2x32xf32>
    %311 = vector.extract_strided_slice %306 {offsets = [0, 64], sizes = [2, 32], strides = [1, 1]} : vector<2x96xf32> to vector<2x32xf32>
    %312 = arith.mulf %310, %294 : vector<2x32xf32>
    %313 = arith.mulf %309, %308 : vector<2x32xf32>
    %314 = arith.addf %312, %313 : vector<2x32xf32>
    %315 = math.tanh %314 : vector<2x32xf32>
    %316 = arith.mulf %311, %315 : vector<2x32xf32>
    %c12_71 = arith.constant 12 : index
    %c0_72 = arith.constant 0 : index
    %317 = vector.load %arg21[%c12_71, %c0_72] : memref<16x32xf32, #tpu.memory_space<vmem>>, vector<2x32xf32>
    tpu.vector_store %arg21[%c12_71, %c0_72], %316 {strides = array<i32>} : memref<16x32xf32, #tpu.memory_space<vmem>>, vector<2x32xf32>,
    %318 = vector.extract_strided_slice %175 {offsets = [14, 0], sizes = [2, 128], strides = [1, 1]} : vector<16x128xf32> to vector<2x128xf32>
    %cst_73 = arith.constant dense<0.000000e+00> : vector<2x128xf32>
    %319 = tpu.matmul %316, %171, %cst_73 {dimension_numbers = #tpu.dot_dimension_numbers<[1], [0], [0], [1], [0, 0, 1, 1], [], []>} : vector<2x32xf32>, vector<32x128xf32>, vector<2x128xf32> -> vector<2x128xf32>
    %320 = arith.addf %318, %319 : vector<2x128xf32>
    %321 = vector.extract_strided_slice %320 {offsets = [0, 0], sizes = [2, 96], strides = [1, 1]} : vector<2x128xf32> to vector<2x96xf32>
    %322 = arith.negf %321 : vector<2x96xf32>
    %323 = math.exp %322 : vector<2x96xf32>
    %cst_74 = arith.constant 1.000000e+00 : f32
    %324 = vector.broadcast %cst_74 : f32 to vector<2x96xf32>
    %325 = arith.addf %324, %323 : vector<2x96xf32>
    %326 = arith.divf %324, %325 : vector<2x96xf32>
    %327 = vector.extract_strided_slice %320 {offsets = [0, 96], sizes = [2, 32], strides = [1, 1]} : vector<2x128xf32> to vector<2x32xf32>
    %328 = math.tanh %327 : vector<2x32xf32>
    %329 = vector.extract_strided_slice %326 {offsets = [0, 0], sizes = [2, 32], strides = [1, 1]} : vector<2x96xf32> to vector<2x32xf32>
    %330 = vector.extract_strided_slice %326 {offsets = [0, 32], sizes = [2, 32], strides = [1, 1]} : vector<2x96xf32> to vector<2x32xf32>
    %331 = vector.extract_strided_slice %326 {offsets = [0, 64], sizes = [2, 32], strides = [1, 1]} : vector<2x96xf32> to vector<2x32xf32>
    %332 = arith.mulf %330, %314 : vector<2x32xf32>
    %333 = arith.mulf %329, %328 : vector<2x32xf32>
    %334 = arith.addf %332, %333 : vector<2x32xf32>
    %335 = math.tanh %334 : vector<2x32xf32>
    %336 = arith.mulf %331, %335 : vector<2x32xf32>
    %c14_75 = arith.constant 14 : index
    %c0_76 = arith.constant 0 : index
    %337 = vector.load %arg21[%c14_75, %c0_76] : memref<16x32xf32, #tpu.memory_space<vmem>>, vector<2x32xf32>
    tpu.vector_store %arg21[%c14_75, %c0_76], %336 {strides = array<i32>} : memref<16x32xf32, #tpu.memory_space<vmem>>, vector<2x32xf32>,
    %c0_77 = arith.constant 0 : index
    %c0_78 = arith.constant 0 : index
    %338 = vector.load %arg21[%c0_77, %c0_78] : memref<16x32xf32, #tpu.memory_space<vmem>>, vector<16x32xf32>
    %c0_79 = arith.constant 0 : index
    %c0_80 = arith.constant 0 : index
    %339 = vector.load %arg8[%c0_79, %c0_80] : memref<32x16xf32, #tpu.memory_space<vmem>>, vector<32x16xf32>
    %cst_81 = arith.constant dense<0.000000e+00> : vector<16x16xf32>
    %340 = tpu.matmul %338, %339, %cst_81 {dimension_numbers = #tpu.dot_dimension_numbers<[1], [0], [0], [1], [0, 0, 1, 1], [], []>} : vector<16x32xf32>, vector<32x16xf32>, vector<16x16xf32> -> vector<16x16xf32>
    %c0_82 = arith.constant 0 : index
    %c0_83 = arith.constant 0 : index
    %341 = vector.load %arg9[%c0_82, %c0_83] : memref<1x16xf32, #tpu.memory_space<vmem>>, vector<1x16xf32>
    %342 = vector.broadcast %341 : vector<1x16xf32> to vector<16x16xf32>
    %343 = arith.addf %340, %342 : vector<16x16xf32>
    %344 = vector.extract_strided_slice %343 {offsets = [0, 0], sizes = [16, 8], strides = [1, 1]} : vector<16x16xf32> to vector<16x8xf32>
    %345 = vector.extract_strided_slice %343 {offsets = [0, 8], sizes = [16, 8], strides = [1, 1]} : vector<16x16xf32> to vector<16x8xf32>
    %c0_84 = arith.constant 0 : index
    %c0_85 = arith.constant 0 : index
    %346 = vector.load %arg1[%c0_84, %c0_85] : memref<16x8xf32, #tpu.memory_space<vmem>>, vector<16x8xf32>
    %cst_86 = arith.constant 5.000000e-01 : f32
    %347 = vector.broadcast %cst_86 : f32 to vector<16x8xf32>
    %348 = arith.mulf %347, %345 : vector<16x8xf32>
    %349 = math.exp %348 : vector<16x8xf32>
    %350 = arith.mulf %346, %349 : vector<16x8xf32>
    %351 = arith.addf %344, %350 : vector<16x8xf32>
    %c0_87 = arith.constant 0 : index
    %c0_88 = arith.constant 0 : index
    %352 = vector.load %arg10[%c0_87, %c0_88] : memref<8x128xf32, #tpu.memory_space<vmem>>, vector<8x128xf32>
    %c0_89 = arith.constant 0 : index
    %c0_90 = arith.constant 0 : index
    %353 = vector.load %arg11[%c0_89, %c0_90] : memref<32x128xf32, #tpu.memory_space<vmem>>, vector<32x128xf32>
    %c0_91 = arith.constant 0 : index
    %c0_92 = arith.constant 0 : index
    %354 = vector.load %arg12[%c0_91, %c0_92] : memref<1x128xf32, #tpu.memory_space<vmem>>, vector<1x128xf32>
    %cst_93 = arith.constant dense<0.000000e+00> : vector<16x128xf32>
    %355 = tpu.matmul %351, %352, %cst_93 {dimension_numbers = #tpu.dot_dimension_numbers<[1], [0], [0], [1], [0, 0, 1, 1], [], []>} : vector<16x8xf32>, vector<8x128xf32>, vector<16x128xf32> -> vector<16x128xf32>
    %356 = vector.broadcast %354 : vector<1x128xf32> to vector<16x128xf32>
    %357 = arith.addf %355, %356 : vector<16x128xf32>
    %cst_94 = arith.constant 0.000000e+00 : f32
    %358 = vector.broadcast %cst_94 : f32 to vector<2x32xf32>
    %cst_95 = arith.constant 0.000000e+00 : f32
    %359 = vector.broadcast %cst_95 : f32 to vector<2x32xf32>
    %360 = vector.extract_strided_slice %357 {offsets = [0, 0], sizes = [2, 128], strides = [1, 1]} : vector<16x128xf32> to vector<2x128xf32>
    %cst_96 = arith.constant dense<0.000000e+00> : vector<2x128xf32>
    %361 = tpu.matmul %358, %353, %cst_96 {dimension_numbers = #tpu.dot_dimension_numbers<[1], [0], [0], [1], [0, 0, 1, 1], [], []>} : vector<2x32xf32>, vector<32x128xf32>, vector<2x128xf32> -> vector<2x128xf32>
    %362 = arith.addf %360, %361 : vector<2x128xf32>
    %363 = vector.extract_strided_slice %362 {offsets = [0, 0], sizes = [2, 96], strides = [1, 1]} : vector<2x128xf32> to vector<2x96xf32>
    %364 = arith.negf %363 : vector<2x96xf32>
    %365 = math.exp %364 : vector<2x96xf32>
    %cst_97 = arith.constant 1.000000e+00 : f32
    %366 = vector.broadcast %cst_97 : f32 to vector<2x96xf32>
    %367 = arith.addf %366, %365 : vector<2x96xf32>
    %368 = arith.divf %366, %367 : vector<2x96xf32>
    %369 = vector.extract_strided_slice %362 {offsets = [0, 96], sizes = [2, 32], strides = [1, 1]} : vector<2x128xf32> to vector<2x32xf32>
    %370 = math.tanh %369 : vector<2x32xf32>
    %371 = vector.extract_strided_slice %368 {offsets = [0, 0], sizes = [2, 32], strides = [1, 1]} : vector<2x96xf32> to vector<2x32xf32>
    %372 = vector.extract_strided_slice %368 {offsets = [0, 32], sizes = [2, 32], strides = [1, 1]} : vector<2x96xf32> to vector<2x32xf32>
    %373 = vector.extract_strided_slice %368 {offsets = [0, 64], sizes = [2, 32], strides = [1, 1]} : vector<2x96xf32> to vector<2x32xf32>
    %374 = arith.mulf %372, %359 : vector<2x32xf32>
    %375 = arith.mulf %371, %370 : vector<2x32xf32>
    %376 = arith.addf %374, %375 : vector<2x32xf32>
    %377 = math.tanh %376 : vector<2x32xf32>
    %378 = arith.mulf %373, %377 : vector<2x32xf32>
    %c0_98 = arith.constant 0 : index
    %c0_99 = arith.constant 0 : index
    %379 = vector.load %arg20[%c0_98, %c0_99] : memref<16x32xf32, #tpu.memory_space<vmem>>, vector<2x32xf32>
    tpu.vector_store %arg20[%c0_98, %c0_99], %378 {strides = array<i32>} : memref<16x32xf32, #tpu.memory_space<vmem>>, vector<2x32xf32>,
    %380 = vector.extract_strided_slice %357 {offsets = [2, 0], sizes = [2, 128], strides = [1, 1]} : vector<16x128xf32> to vector<2x128xf32>
    %cst_100 = arith.constant dense<0.000000e+00> : vector<2x128xf32>
    %381 = tpu.matmul %378, %353, %cst_100 {dimension_numbers = #tpu.dot_dimension_numbers<[1], [0], [0], [1], [0, 0, 1, 1], [], []>} : vector<2x32xf32>, vector<32x128xf32>, vector<2x128xf32> -> vector<2x128xf32>
    %382 = arith.addf %380, %381 : vector<2x128xf32>
    %383 = vector.extract_strided_slice %382 {offsets = [0, 0], sizes = [2, 96], strides = [1, 1]} : vector<2x128xf32> to vector<2x96xf32>
    %384 = arith.negf %383 : vector<2x96xf32>
    %385 = math.exp %384 : vector<2x96xf32>
    %cst_101 = arith.constant 1.000000e+00 : f32
    %386 = vector.broadcast %cst_101 : f32 to vector<2x96xf32>
    %387 = arith.addf %386, %385 : vector<2x96xf32>
    %388 = arith.divf %386, %387 : vector<2x96xf32>
    %389 = vector.extract_strided_slice %382 {offsets = [0, 96], sizes = [2, 32], strides = [1, 1]} : vector<2x128xf32> to vector<2x32xf32>
    %390 = math.tanh %389 : vector<2x32xf32>
    %391 = vector.extract_strided_slice %388 {offsets = [0, 0], sizes = [2, 32], strides = [1, 1]} : vector<2x96xf32> to vector<2x32xf32>
    %392 = vector.extract_strided_slice %388 {offsets = [0, 32], sizes = [2, 32], strides = [1, 1]} : vector<2x96xf32> to vector<2x32xf32>
    %393 = vector.extract_strided_slice %388 {offsets = [0, 64], sizes = [2, 32], strides = [1, 1]} : vector<2x96xf32> to vector<2x32xf32>
    %394 = arith.mulf %392, %376 : vector<2x32xf32>
    %395 = arith.mulf %391, %390 : vector<2x32xf32>
    %396 = arith.addf %394, %395 : vector<2x32xf32>
    %397 = math.tanh %396 : vector<2x32xf32>
    %398 = arith.mulf %393, %397 : vector<2x32xf32>
    %c2_102 = arith.constant 2 : index
    %c0_103 = arith.constant 0 : index
    %399 = vector.load %arg20[%c2_102, %c0_103] : memref<16x32xf32, #tpu.memory_space<vmem>>, vector<2x32xf32>
    tpu.vector_store %arg20[%c2_102, %c0_103], %398 {strides = array<i32>} : memref<16x32xf32, #tpu.memory_space<vmem>>, vector<2x32xf32>,
    %400 = vector.extract_strided_slice %357 {offsets = [4, 0], sizes = [2, 128], strides = [1, 1]} : vector<16x128xf32> to vector<2x128xf32>
    %cst_104 = arith.constant dense<0.000000e+00> : vector<2x128xf32>
    %401 = tpu.matmul %398, %353, %cst_104 {dimension_numbers = #tpu.dot_dimension_numbers<[1], [0], [0], [1], [0, 0, 1, 1], [], []>} : vector<2x32xf32>, vector<32x128xf32>, vector<2x128xf32> -> vector<2x128xf32>
    %402 = arith.addf %400, %401 : vector<2x128xf32>
    %403 = vector.extract_strided_slice %402 {offsets = [0, 0], sizes = [2, 96], strides = [1, 1]} : vector<2x128xf32> to vector<2x96xf32>
    %404 = arith.negf %403 : vector<2x96xf32>
    %405 = math.exp %404 : vector<2x96xf32>
    %cst_105 = arith.constant 1.000000e+00 : f32
    %406 = vector.broadcast %cst_105 : f32 to vector<2x96xf32>
    %407 = arith.addf %406, %405 : vector<2x96xf32>
    %408 = arith.divf %406, %407 : vector<2x96xf32>
    %409 = vector.extract_strided_slice %402 {offsets = [0, 96], sizes = [2, 32], strides = [1, 1]} : vector<2x128xf32> to vector<2x32xf32>
    %410 = math.tanh %409 : vector<2x32xf32>
    %411 = vector.extract_strided_slice %408 {offsets = [0, 0], sizes = [2, 32], strides = [1, 1]} : vector<2x96xf32> to vector<2x32xf32>
    %412 = vector.extract_strided_slice %408 {offsets = [0, 32], sizes = [2, 32], strides = [1, 1]} : vector<2x96xf32> to vector<2x32xf32>
    %413 = vector.extract_strided_slice %408 {offsets = [0, 64], sizes = [2, 32], strides = [1, 1]} : vector<2x96xf32> to vector<2x32xf32>
    %414 = arith.mulf %412, %396 : vector<2x32xf32>
    %415 = arith.mulf %411, %410 : vector<2x32xf32>
    %416 = arith.addf %414, %415 : vector<2x32xf32>
    %417 = math.tanh %416 : vector<2x32xf32>
    %418 = arith.mulf %413, %417 : vector<2x32xf32>
    %c4_106 = arith.constant 4 : index
    %c0_107 = arith.constant 0 : index
    %419 = vector.load %arg20[%c4_106, %c0_107] : memref<16x32xf32, #tpu.memory_space<vmem>>, vector<2x32xf32>
    tpu.vector_store %arg20[%c4_106, %c0_107], %418 {strides = array<i32>} : memref<16x32xf32, #tpu.memory_space<vmem>>, vector<2x32xf32>,
    %420 = vector.extract_strided_slice %357 {offsets = [6, 0], sizes = [2, 128], strides = [1, 1]} : vector<16x128xf32> to vector<2x128xf32>
    %cst_108 = arith.constant dense<0.000000e+00> : vector<2x128xf32>
    %421 = tpu.matmul %418, %353, %cst_108 {dimension_numbers = #tpu.dot_dimension_numbers<[1], [0], [0], [1], [0, 0, 1, 1], [], []>} : vector<2x32xf32>, vector<32x128xf32>, vector<2x128xf32> -> vector<2x128xf32>
    %422 = arith.addf %420, %421 : vector<2x128xf32>
    %423 = vector.extract_strided_slice %422 {offsets = [0, 0], sizes = [2, 96], strides = [1, 1]} : vector<2x128xf32> to vector<2x96xf32>
    %424 = arith.negf %423 : vector<2x96xf32>
    %425 = math.exp %424 : vector<2x96xf32>
    %cst_109 = arith.constant 1.000000e+00 : f32
    %426 = vector.broadcast %cst_109 : f32 to vector<2x96xf32>
    %427 = arith.addf %426, %425 : vector<2x96xf32>
    %428 = arith.divf %426, %427 : vector<2x96xf32>
    %429 = vector.extract_strided_slice %422 {offsets = [0, 96], sizes = [2, 32], strides = [1, 1]} : vector<2x128xf32> to vector<2x32xf32>
    %430 = math.tanh %429 : vector<2x32xf32>
    %431 = vector.extract_strided_slice %428 {offsets = [0, 0], sizes = [2, 32], strides = [1, 1]} : vector<2x96xf32> to vector<2x32xf32>
    %432 = vector.extract_strided_slice %428 {offsets = [0, 32], sizes = [2, 32], strides = [1, 1]} : vector<2x96xf32> to vector<2x32xf32>
    %433 = vector.extract_strided_slice %428 {offsets = [0, 64], sizes = [2, 32], strides = [1, 1]} : vector<2x96xf32> to vector<2x32xf32>
    %434 = arith.mulf %432, %416 : vector<2x32xf32>
    %435 = arith.mulf %431, %430 : vector<2x32xf32>
    %436 = arith.addf %434, %435 : vector<2x32xf32>
    %437 = math.tanh %436 : vector<2x32xf32>
    %438 = arith.mulf %433, %437 : vector<2x32xf32>
    %c6_110 = arith.constant 6 : index
    %c0_111 = arith.constant 0 : index
    %439 = vector.load %arg20[%c6_110, %c0_111] : memref<16x32xf32, #tpu.memory_space<vmem>>, vector<2x32xf32>
    tpu.vector_store %arg20[%c6_110, %c0_111], %438 {strides = array<i32>} : memref<16x32xf32, #tpu.memory_space<vmem>>, vector<2x32xf32>,
    %440 = vector.extract_strided_slice %357 {offsets = [8, 0], sizes = [2, 128], strides = [1, 1]} : vector<16x128xf32> to vector<2x128xf32>
    %cst_112 = arith.constant dense<0.000000e+00> : vector<2x128xf32>
    %441 = tpu.matmul %438, %353, %cst_112 {dimension_numbers = #tpu.dot_dimension_numbers<[1], [0], [0], [1], [0, 0, 1, 1], [], []>} : vector<2x32xf32>, vector<32x128xf32>, vector<2x128xf32> -> vector<2x128xf32>
    %442 = arith.addf %440, %441 : vector<2x128xf32>
    %443 = vector.extract_strided_slice %442 {offsets = [0, 0], sizes = [2, 96], strides = [1, 1]} : vector<2x128xf32> to vector<2x96xf32>
    %444 = arith.negf %443 : vector<2x96xf32>
    %445 = math.exp %444 : vector<2x96xf32>
    %cst_113 = arith.constant 1.000000e+00 : f32
    %446 = vector.broadcast %cst_113 : f32 to vector<2x96xf32>
    %447 = arith.addf %446, %445 : vector<2x96xf32>
    %448 = arith.divf %446, %447 : vector<2x96xf32>
    %449 = vector.extract_strided_slice %442 {offsets = [0, 96], sizes = [2, 32], strides = [1, 1]} : vector<2x128xf32> to vector<2x32xf32>
    %450 = math.tanh %449 : vector<2x32xf32>
    %451 = vector.extract_strided_slice %448 {offsets = [0, 0], sizes = [2, 32], strides = [1, 1]} : vector<2x96xf32> to vector<2x32xf32>
    %452 = vector.extract_strided_slice %448 {offsets = [0, 32], sizes = [2, 32], strides = [1, 1]} : vector<2x96xf32> to vector<2x32xf32>
    %453 = vector.extract_strided_slice %448 {offsets = [0, 64], sizes = [2, 32], strides = [1, 1]} : vector<2x96xf32> to vector<2x32xf32>
    %454 = arith.mulf %452, %436 : vector<2x32xf32>
    %455 = arith.mulf %451, %450 : vector<2x32xf32>
    %456 = arith.addf %454, %455 : vector<2x32xf32>
    %457 = math.tanh %456 : vector<2x32xf32>
    %458 = arith.mulf %453, %457 : vector<2x32xf32>
    %c8_114 = arith.constant 8 : index
    %c0_115 = arith.constant 0 : index
    %459 = vector.load %arg20[%c8_114, %c0_115] : memref<16x32xf32, #tpu.memory_space<vmem>>, vector<2x32xf32>
    tpu.vector_store %arg20[%c8_114, %c0_115], %458 {strides = array<i32>} : memref<16x32xf32, #tpu.memory_space<vmem>>, vector<2x32xf32>,
    %460 = vector.extract_strided_slice %357 {offsets = [10, 0], sizes = [2, 128], strides = [1, 1]} : vector<16x128xf32> to vector<2x128xf32>
    %cst_116 = arith.constant dense<0.000000e+00> : vector<2x128xf32>
    %461 = tpu.matmul %458, %353, %cst_116 {dimension_numbers = #tpu.dot_dimension_numbers<[1], [0], [0], [1], [0, 0, 1, 1], [], []>} : vector<2x32xf32>, vector<32x128xf32>, vector<2x128xf32> -> vector<2x128xf32>
    %462 = arith.addf %460, %461 : vector<2x128xf32>
    %463 = vector.extract_strided_slice %462 {offsets = [0, 0], sizes = [2, 96], strides = [1, 1]} : vector<2x128xf32> to vector<2x96xf32>
    %464 = arith.negf %463 : vector<2x96xf32>
    %465 = math.exp %464 : vector<2x96xf32>
    %cst_117 = arith.constant 1.000000e+00 : f32
    %466 = vector.broadcast %cst_117 : f32 to vector<2x96xf32>
    %467 = arith.addf %466, %465 : vector<2x96xf32>
    %468 = arith.divf %466, %467 : vector<2x96xf32>
    %469 = vector.extract_strided_slice %462 {offsets = [0, 96], sizes = [2, 32], strides = [1, 1]} : vector<2x128xf32> to vector<2x32xf32>
    %470 = math.tanh %469 : vector<2x32xf32>
    %471 = vector.extract_strided_slice %468 {offsets = [0, 0], sizes = [2, 32], strides = [1, 1]} : vector<2x96xf32> to vector<2x32xf32>
    %472 = vector.extract_strided_slice %468 {offsets = [0, 32], sizes = [2, 32], strides = [1, 1]} : vector<2x96xf32> to vector<2x32xf32>
    %473 = vector.extract_strided_slice %468 {offsets = [0, 64], sizes = [2, 32], strides = [1, 1]} : vector<2x96xf32> to vector<2x32xf32>
    %474 = arith.mulf %472, %456 : vector<2x32xf32>
    %475 = arith.mulf %471, %470 : vector<2x32xf32>
    %476 = arith.addf %474, %475 : vector<2x32xf32>
    %477 = math.tanh %476 : vector<2x32xf32>
    %478 = arith.mulf %473, %477 : vector<2x32xf32>
    %c10_118 = arith.constant 10 : index
    %c0_119 = arith.constant 0 : index
    %479 = vector.load %arg20[%c10_118, %c0_119] : memref<16x32xf32, #tpu.memory_space<vmem>>, vector<2x32xf32>
    tpu.vector_store %arg20[%c10_118, %c0_119], %478 {strides = array<i32>} : memref<16x32xf32, #tpu.memory_space<vmem>>, vector<2x32xf32>,
    %480 = vector.extract_strided_slice %357 {offsets = [12, 0], sizes = [2, 128], strides = [1, 1]} : vector<16x128xf32> to vector<2x128xf32>
    %cst_120 = arith.constant dense<0.000000e+00> : vector<2x128xf32>
    %481 = tpu.matmul %478, %353, %cst_120 {dimension_numbers = #tpu.dot_dimension_numbers<[1], [0], [0], [1], [0, 0, 1, 1], [], []>} : vector<2x32xf32>, vector<32x128xf32>, vector<2x128xf32> -> vector<2x128xf32>
    %482 = arith.addf %480, %481 : vector<2x128xf32>
    %483 = vector.extract_strided_slice %482 {offsets = [0, 0], sizes = [2, 96], strides = [1, 1]} : vector<2x128xf32> to vector<2x96xf32>
    %484 = arith.negf %483 : vector<2x96xf32>
    %485 = math.exp %484 : vector<2x96xf32>
    %cst_121 = arith.constant 1.000000e+00 : f32
    %486 = vector.broadcast %cst_121 : f32 to vector<2x96xf32>
    %487 = arith.addf %486, %485 : vector<2x96xf32>
    %488 = arith.divf %486, %487 : vector<2x96xf32>
    %489 = vector.extract_strided_slice %482 {offsets = [0, 96], sizes = [2, 32], strides = [1, 1]} : vector<2x128xf32> to vector<2x32xf32>
    %490 = math.tanh %489 : vector<2x32xf32>
    %491 = vector.extract_strided_slice %488 {offsets = [0, 0], sizes = [2, 32], strides = [1, 1]} : vector<2x96xf32> to vector<2x32xf32>
    %492 = vector.extract_strided_slice %488 {offsets = [0, 32], sizes = [2, 32], strides = [1, 1]} : vector<2x96xf32> to vector<2x32xf32>
    %493 = vector.extract_strided_slice %488 {offsets = [0, 64], sizes = [2, 32], strides = [1, 1]} : vector<2x96xf32> to vector<2x32xf32>
    %494 = arith.mulf %492, %476 : vector<2x32xf32>
    %495 = arith.mulf %491, %490 : vector<2x32xf32>
    %496 = arith.addf %494, %495 : vector<2x32xf32>
    %497 = math.tanh %496 : vector<2x32xf32>
    %498 = arith.mulf %493, %497 : vector<2x32xf32>
    %c12_122 = arith.constant 12 : index
    %c0_123 = arith.constant 0 : index
    %499 = vector.load %arg20[%c12_122, %c0_123] : memref<16x32xf32, #tpu.memory_space<vmem>>, vector<2x32xf32>
    tpu.vector_store %arg20[%c12_122, %c0_123], %498 {strides = array<i32>} : memref<16x32xf32, #tpu.memory_space<vmem>>, vector<2x32xf32>,
    %500 = vector.extract_strided_slice %357 {offsets = [14, 0], sizes = [2, 128], strides = [1, 1]} : vector<16x128xf32> to vector<2x128xf32>
    %cst_124 = arith.constant dense<0.000000e+00> : vector<2x128xf32>
    %501 = tpu.matmul %498, %353, %cst_124 {dimension_numbers = #tpu.dot_dimension_numbers<[1], [0], [0], [1], [0, 0, 1, 1], [], []>} : vector<2x32xf32>, vector<32x128xf32>, vector<2x128xf32> -> vector<2x128xf32>
    %502 = arith.addf %500, %501 : vector<2x128xf32>
    %503 = vector.extract_strided_slice %502 {offsets = [0, 0], sizes = [2, 96], strides = [1, 1]} : vector<2x128xf32> to vector<2x96xf32>
    %504 = arith.negf %503 : vector<2x96xf32>
    %505 = math.exp %504 : vector<2x96xf32>
    %cst_125 = arith.constant 1.000000e+00 : f32
    %506 = vector.broadcast %cst_125 : f32 to vector<2x96xf32>
    %507 = arith.addf %506, %505 : vector<2x96xf32>
    %508 = arith.divf %506, %507 : vector<2x96xf32>
    %509 = vector.extract_strided_slice %502 {offsets = [0, 96], sizes = [2, 32], strides = [1, 1]} : vector<2x128xf32> to vector<2x32xf32>
    %510 = math.tanh %509 : vector<2x32xf32>
    %511 = vector.extract_strided_slice %508 {offsets = [0, 0], sizes = [2, 32], strides = [1, 1]} : vector<2x96xf32> to vector<2x32xf32>
    %512 = vector.extract_strided_slice %508 {offsets = [0, 32], sizes = [2, 32], strides = [1, 1]} : vector<2x96xf32> to vector<2x32xf32>
    %513 = vector.extract_strided_slice %508 {offsets = [0, 64], sizes = [2, 32], strides = [1, 1]} : vector<2x96xf32> to vector<2x32xf32>
    %514 = arith.mulf %512, %496 : vector<2x32xf32>
    %515 = arith.mulf %511, %510 : vector<2x32xf32>
    %516 = arith.addf %514, %515 : vector<2x32xf32>
    %517 = math.tanh %516 : vector<2x32xf32>
    %518 = arith.mulf %513, %517 : vector<2x32xf32>
    %c14_126 = arith.constant 14 : index
    %c0_127 = arith.constant 0 : index
    %519 = vector.load %arg20[%c14_126, %c0_127] : memref<16x32xf32, #tpu.memory_space<vmem>>, vector<2x32xf32>
    tpu.vector_store %arg20[%c14_126, %c0_127], %518 {strides = array<i32>} : memref<16x32xf32, #tpu.memory_space<vmem>>, vector<2x32xf32>,
    %c0_128 = arith.constant 0 : index
    %c0_129 = arith.constant 0 : index
    %520 = vector.load %arg20[%c0_128, %c0_129] : memref<16x32xf32, #tpu.memory_space<vmem>>, vector<16x32xf32>
    %c0_130 = arith.constant 0 : index
    %c0_131 = arith.constant 0 : index
    %521 = vector.load %arg13[%c0_130, %c0_131] : memref<32x128xf32, #tpu.memory_space<vmem>>, vector<32x128xf32>
    %c0_132 = arith.constant 0 : index
    %c0_133 = arith.constant 0 : index
    %522 = vector.load %arg14[%c0_132, %c0_133] : memref<32x128xf32, #tpu.memory_space<vmem>>, vector<32x128xf32>
    %c0_134 = arith.constant 0 : index
    %c0_135 = arith.constant 0 : index
    %523 = vector.load %arg15[%c0_134, %c0_135] : memref<1x128xf32, #tpu.memory_space<vmem>>, vector<1x128xf32>
    %cst_136 = arith.constant dense<0.000000e+00> : vector<16x128xf32>
    %524 = tpu.matmul %520, %521, %cst_136 {dimension_numbers = #tpu.dot_dimension_numbers<[1], [0], [0], [1], [0, 0, 1, 1], [], []>} : vector<16x32xf32>, vector<32x128xf32>, vector<16x128xf32> -> vector<16x128xf32>
    %525 = vector.broadcast %523 : vector<1x128xf32> to vector<16x128xf32>
    %526 = arith.addf %524, %525 : vector<16x128xf32>
    %cst_137 = arith.constant 0.000000e+00 : f32
    %527 = vector.broadcast %cst_137 : f32 to vector<2x32xf32>
    %cst_138 = arith.constant 0.000000e+00 : f32
    %528 = vector.broadcast %cst_138 : f32 to vector<2x32xf32>
    %529 = vector.extract_strided_slice %526 {offsets = [0, 0], sizes = [2, 128], strides = [1, 1]} : vector<16x128xf32> to vector<2x128xf32>
    %cst_139 = arith.constant dense<0.000000e+00> : vector<2x128xf32>
    %530 = tpu.matmul %527, %522, %cst_139 {dimension_numbers = #tpu.dot_dimension_numbers<[1], [0], [0], [1], [0, 0, 1, 1], [], []>} : vector<2x32xf32>, vector<32x128xf32>, vector<2x128xf32> -> vector<2x128xf32>
    %531 = arith.addf %529, %530 : vector<2x128xf32>
    %532 = vector.extract_strided_slice %531 {offsets = [0, 0], sizes = [2, 96], strides = [1, 1]} : vector<2x128xf32> to vector<2x96xf32>
    %533 = arith.negf %532 : vector<2x96xf32>
    %534 = math.exp %533 : vector<2x96xf32>
    %cst_140 = arith.constant 1.000000e+00 : f32
    %535 = vector.broadcast %cst_140 : f32 to vector<2x96xf32>
    %536 = arith.addf %535, %534 : vector<2x96xf32>
    %537 = arith.divf %535, %536 : vector<2x96xf32>
    %538 = vector.extract_strided_slice %531 {offsets = [0, 96], sizes = [2, 32], strides = [1, 1]} : vector<2x128xf32> to vector<2x32xf32>
    %539 = math.tanh %538 : vector<2x32xf32>
    %540 = vector.extract_strided_slice %537 {offsets = [0, 0], sizes = [2, 32], strides = [1, 1]} : vector<2x96xf32> to vector<2x32xf32>
    %541 = vector.extract_strided_slice %537 {offsets = [0, 32], sizes = [2, 32], strides = [1, 1]} : vector<2x96xf32> to vector<2x32xf32>
    %542 = vector.extract_strided_slice %537 {offsets = [0, 64], sizes = [2, 32], strides = [1, 1]} : vector<2x96xf32> to vector<2x32xf32>
    %543 = arith.mulf %541, %528 : vector<2x32xf32>
    %544 = arith.mulf %540, %539 : vector<2x32xf32>
    %545 = arith.addf %543, %544 : vector<2x32xf32>
    %546 = math.tanh %545 : vector<2x32xf32>
    %547 = arith.mulf %542, %546 : vector<2x32xf32>
    %c0_141 = arith.constant 0 : index
    %c0_142 = arith.constant 0 : index
    %548 = vector.load %arg21[%c0_141, %c0_142] : memref<16x32xf32, #tpu.memory_space<vmem>>, vector<2x32xf32>
    tpu.vector_store %arg21[%c0_141, %c0_142], %547 {strides = array<i32>} : memref<16x32xf32, #tpu.memory_space<vmem>>, vector<2x32xf32>,
    %549 = vector.extract_strided_slice %526 {offsets = [2, 0], sizes = [2, 128], strides = [1, 1]} : vector<16x128xf32> to vector<2x128xf32>
    %cst_143 = arith.constant dense<0.000000e+00> : vector<2x128xf32>
    %550 = tpu.matmul %547, %522, %cst_143 {dimension_numbers = #tpu.dot_dimension_numbers<[1], [0], [0], [1], [0, 0, 1, 1], [], []>} : vector<2x32xf32>, vector<32x128xf32>, vector<2x128xf32> -> vector<2x128xf32>
    %551 = arith.addf %549, %550 : vector<2x128xf32>
    %552 = vector.extract_strided_slice %551 {offsets = [0, 0], sizes = [2, 96], strides = [1, 1]} : vector<2x128xf32> to vector<2x96xf32>
    %553 = arith.negf %552 : vector<2x96xf32>
    %554 = math.exp %553 : vector<2x96xf32>
    %cst_144 = arith.constant 1.000000e+00 : f32
    %555 = vector.broadcast %cst_144 : f32 to vector<2x96xf32>
    %556 = arith.addf %555, %554 : vector<2x96xf32>
    %557 = arith.divf %555, %556 : vector<2x96xf32>
    %558 = vector.extract_strided_slice %551 {offsets = [0, 96], sizes = [2, 32], strides = [1, 1]} : vector<2x128xf32> to vector<2x32xf32>
    %559 = math.tanh %558 : vector<2x32xf32>
    %560 = vector.extract_strided_slice %557 {offsets = [0, 0], sizes = [2, 32], strides = [1, 1]} : vector<2x96xf32> to vector<2x32xf32>
    %561 = vector.extract_strided_slice %557 {offsets = [0, 32], sizes = [2, 32], strides = [1, 1]} : vector<2x96xf32> to vector<2x32xf32>
    %562 = vector.extract_strided_slice %557 {offsets = [0, 64], sizes = [2, 32], strides = [1, 1]} : vector<2x96xf32> to vector<2x32xf32>
    %563 = arith.mulf %561, %545 : vector<2x32xf32>
    %564 = arith.mulf %560, %559 : vector<2x32xf32>
    %565 = arith.addf %563, %564 : vector<2x32xf32>
    %566 = math.tanh %565 : vector<2x32xf32>
    %567 = arith.mulf %562, %566 : vector<2x32xf32>
    %c2_145 = arith.constant 2 : index
    %c0_146 = arith.constant 0 : index
    %568 = vector.load %arg21[%c2_145, %c0_146] : memref<16x32xf32, #tpu.memory_space<vmem>>, vector<2x32xf32>
    tpu.vector_store %arg21[%c2_145, %c0_146], %567 {strides = array<i32>} : memref<16x32xf32, #tpu.memory_space<vmem>>, vector<2x32xf32>,
    %569 = vector.extract_strided_slice %526 {offsets = [4, 0], sizes = [2, 128], strides = [1, 1]} : vector<16x128xf32> to vector<2x128xf32>
    %cst_147 = arith.constant dense<0.000000e+00> : vector<2x128xf32>
    %570 = tpu.matmul %567, %522, %cst_147 {dimension_numbers = #tpu.dot_dimension_numbers<[1], [0], [0], [1], [0, 0, 1, 1], [], []>} : vector<2x32xf32>, vector<32x128xf32>, vector<2x128xf32> -> vector<2x128xf32>
    %571 = arith.addf %569, %570 : vector<2x128xf32>
    %572 = vector.extract_strided_slice %571 {offsets = [0, 0], sizes = [2, 96], strides = [1, 1]} : vector<2x128xf32> to vector<2x96xf32>
    %573 = arith.negf %572 : vector<2x96xf32>
    %574 = math.exp %573 : vector<2x96xf32>
    %cst_148 = arith.constant 1.000000e+00 : f32
    %575 = vector.broadcast %cst_148 : f32 to vector<2x96xf32>
    %576 = arith.addf %575, %574 : vector<2x96xf32>
    %577 = arith.divf %575, %576 : vector<2x96xf32>
    %578 = vector.extract_strided_slice %571 {offsets = [0, 96], sizes = [2, 32], strides = [1, 1]} : vector<2x128xf32> to vector<2x32xf32>
    %579 = math.tanh %578 : vector<2x32xf32>
    %580 = vector.extract_strided_slice %577 {offsets = [0, 0], sizes = [2, 32], strides = [1, 1]} : vector<2x96xf32> to vector<2x32xf32>
    %581 = vector.extract_strided_slice %577 {offsets = [0, 32], sizes = [2, 32], strides = [1, 1]} : vector<2x96xf32> to vector<2x32xf32>
    %582 = vector.extract_strided_slice %577 {offsets = [0, 64], sizes = [2, 32], strides = [1, 1]} : vector<2x96xf32> to vector<2x32xf32>
    %583 = arith.mulf %581, %565 : vector<2x32xf32>
    %584 = arith.mulf %580, %579 : vector<2x32xf32>
    %585 = arith.addf %583, %584 : vector<2x32xf32>
    %586 = math.tanh %585 : vector<2x32xf32>
    %587 = arith.mulf %582, %586 : vector<2x32xf32>
    %c4_149 = arith.constant 4 : index
    %c0_150 = arith.constant 0 : index
    %588 = vector.load %arg21[%c4_149, %c0_150] : memref<16x32xf32, #tpu.memory_space<vmem>>, vector<2x32xf32>
    tpu.vector_store %arg21[%c4_149, %c0_150], %587 {strides = array<i32>} : memref<16x32xf32, #tpu.memory_space<vmem>>, vector<2x32xf32>,
    %589 = vector.extract_strided_slice %526 {offsets = [6, 0], sizes = [2, 128], strides = [1, 1]} : vector<16x128xf32> to vector<2x128xf32>
    %cst_151 = arith.constant dense<0.000000e+00> : vector<2x128xf32>
    %590 = tpu.matmul %587, %522, %cst_151 {dimension_numbers = #tpu.dot_dimension_numbers<[1], [0], [0], [1], [0, 0, 1, 1], [], []>} : vector<2x32xf32>, vector<32x128xf32>, vector<2x128xf32> -> vector<2x128xf32>
    %591 = arith.addf %589, %590 : vector<2x128xf32>
    %592 = vector.extract_strided_slice %591 {offsets = [0, 0], sizes = [2, 96], strides = [1, 1]} : vector<2x128xf32> to vector<2x96xf32>
    %593 = arith.negf %592 : vector<2x96xf32>
    %594 = math.exp %593 : vector<2x96xf32>
    %cst_152 = arith.constant 1.000000e+00 : f32
    %595 = vector.broadcast %cst_152 : f32 to vector<2x96xf32>
    %596 = arith.addf %595, %594 : vector<2x96xf32>
    %597 = arith.divf %595, %596 : vector<2x96xf32>
    %598 = vector.extract_strided_slice %591 {offsets = [0, 96], sizes = [2, 32], strides = [1, 1]} : vector<2x128xf32> to vector<2x32xf32>
    %599 = math.tanh %598 : vector<2x32xf32>
    %600 = vector.extract_strided_slice %597 {offsets = [0, 0], sizes = [2, 32], strides = [1, 1]} : vector<2x96xf32> to vector<2x32xf32>
    %601 = vector.extract_strided_slice %597 {offsets = [0, 32], sizes = [2, 32], strides = [1, 1]} : vector<2x96xf32> to vector<2x32xf32>
    %602 = vector.extract_strided_slice %597 {offsets = [0, 64], sizes = [2, 32], strides = [1, 1]} : vector<2x96xf32> to vector<2x32xf32>
    %603 = arith.mulf %601, %585 : vector<2x32xf32>
    %604 = arith.mulf %600, %599 : vector<2x32xf32>
    %605 = arith.addf %603, %604 : vector<2x32xf32>
    %606 = math.tanh %605 : vector<2x32xf32>
    %607 = arith.mulf %602, %606 : vector<2x32xf32>
    %c6_153 = arith.constant 6 : index
    %c0_154 = arith.constant 0 : index
    %608 = vector.load %arg21[%c6_153, %c0_154] : memref<16x32xf32, #tpu.memory_space<vmem>>, vector<2x32xf32>
    tpu.vector_store %arg21[%c6_153, %c0_154], %607 {strides = array<i32>} : memref<16x32xf32, #tpu.memory_space<vmem>>, vector<2x32xf32>,
    %609 = vector.extract_strided_slice %526 {offsets = [8, 0], sizes = [2, 128], strides = [1, 1]} : vector<16x128xf32> to vector<2x128xf32>
    %cst_155 = arith.constant dense<0.000000e+00> : vector<2x128xf32>
    %610 = tpu.matmul %607, %522, %cst_155 {dimension_numbers = #tpu.dot_dimension_numbers<[1], [0], [0], [1], [0, 0, 1, 1], [], []>} : vector<2x32xf32>, vector<32x128xf32>, vector<2x128xf32> -> vector<2x128xf32>
    %611 = arith.addf %609, %610 : vector<2x128xf32>
    %612 = vector.extract_strided_slice %611 {offsets = [0, 0], sizes = [2, 96], strides = [1, 1]} : vector<2x128xf32> to vector<2x96xf32>
    %613 = arith.negf %612 : vector<2x96xf32>
    %614 = math.exp %613 : vector<2x96xf32>
    %cst_156 = arith.constant 1.000000e+00 : f32
    %615 = vector.broadcast %cst_156 : f32 to vector<2x96xf32>
    %616 = arith.addf %615, %614 : vector<2x96xf32>
    %617 = arith.divf %615, %616 : vector<2x96xf32>
    %618 = vector.extract_strided_slice %611 {offsets = [0, 96], sizes = [2, 32], strides = [1, 1]} : vector<2x128xf32> to vector<2x32xf32>
    %619 = math.tanh %618 : vector<2x32xf32>
    %620 = vector.extract_strided_slice %617 {offsets = [0, 0], sizes = [2, 32], strides = [1, 1]} : vector<2x96xf32> to vector<2x32xf32>
    %621 = vector.extract_strided_slice %617 {offsets = [0, 32], sizes = [2, 32], strides = [1, 1]} : vector<2x96xf32> to vector<2x32xf32>
    %622 = vector.extract_strided_slice %617 {offsets = [0, 64], sizes = [2, 32], strides = [1, 1]} : vector<2x96xf32> to vector<2x32xf32>
    %623 = arith.mulf %621, %605 : vector<2x32xf32>
    %624 = arith.mulf %620, %619 : vector<2x32xf32>
    %625 = arith.addf %623, %624 : vector<2x32xf32>
    %626 = math.tanh %625 : vector<2x32xf32>
    %627 = arith.mulf %622, %626 : vector<2x32xf32>
    %c8_157 = arith.constant 8 : index
    %c0_158 = arith.constant 0 : index
    %628 = vector.load %arg21[%c8_157, %c0_158] : memref<16x32xf32, #tpu.memory_space<vmem>>, vector<2x32xf32>
    tpu.vector_store %arg21[%c8_157, %c0_158], %627 {strides = array<i32>} : memref<16x32xf32, #tpu.memory_space<vmem>>, vector<2x32xf32>,
    %629 = vector.extract_strided_slice %526 {offsets = [10, 0], sizes = [2, 128], strides = [1, 1]} : vector<16x128xf32> to vector<2x128xf32>
    %cst_159 = arith.constant dense<0.000000e+00> : vector<2x128xf32>
    %630 = tpu.matmul %627, %522, %cst_159 {dimension_numbers = #tpu.dot_dimension_numbers<[1], [0], [0], [1], [0, 0, 1, 1], [], []>} : vector<2x32xf32>, vector<32x128xf32>, vector<2x128xf32> -> vector<2x128xf32>
    %631 = arith.addf %629, %630 : vector<2x128xf32>
    %632 = vector.extract_strided_slice %631 {offsets = [0, 0], sizes = [2, 96], strides = [1, 1]} : vector<2x128xf32> to vector<2x96xf32>
    %633 = arith.negf %632 : vector<2x96xf32>
    %634 = math.exp %633 : vector<2x96xf32>
    %cst_160 = arith.constant 1.000000e+00 : f32
    %635 = vector.broadcast %cst_160 : f32 to vector<2x96xf32>
    %636 = arith.addf %635, %634 : vector<2x96xf32>
    %637 = arith.divf %635, %636 : vector<2x96xf32>
    %638 = vector.extract_strided_slice %631 {offsets = [0, 96], sizes = [2, 32], strides = [1, 1]} : vector<2x128xf32> to vector<2x32xf32>
    %639 = math.tanh %638 : vector<2x32xf32>
    %640 = vector.extract_strided_slice %637 {offsets = [0, 0], sizes = [2, 32], strides = [1, 1]} : vector<2x96xf32> to vector<2x32xf32>
    %641 = vector.extract_strided_slice %637 {offsets = [0, 32], sizes = [2, 32], strides = [1, 1]} : vector<2x96xf32> to vector<2x32xf32>
    %642 = vector.extract_strided_slice %637 {offsets = [0, 64], sizes = [2, 32], strides = [1, 1]} : vector<2x96xf32> to vector<2x32xf32>
    %643 = arith.mulf %641, %625 : vector<2x32xf32>
    %644 = arith.mulf %640, %639 : vector<2x32xf32>
    %645 = arith.addf %643, %644 : vector<2x32xf32>
    %646 = math.tanh %645 : vector<2x32xf32>
    %647 = arith.mulf %642, %646 : vector<2x32xf32>
    %c10_161 = arith.constant 10 : index
    %c0_162 = arith.constant 0 : index
    %648 = vector.load %arg21[%c10_161, %c0_162] : memref<16x32xf32, #tpu.memory_space<vmem>>, vector<2x32xf32>
    tpu.vector_store %arg21[%c10_161, %c0_162], %647 {strides = array<i32>} : memref<16x32xf32, #tpu.memory_space<vmem>>, vector<2x32xf32>,
    %649 = vector.extract_strided_slice %526 {offsets = [12, 0], sizes = [2, 128], strides = [1, 1]} : vector<16x128xf32> to vector<2x128xf32>
    %cst_163 = arith.constant dense<0.000000e+00> : vector<2x128xf32>
    %650 = tpu.matmul %647, %522, %cst_163 {dimension_numbers = #tpu.dot_dimension_numbers<[1], [0], [0], [1], [0, 0, 1, 1], [], []>} : vector<2x32xf32>, vector<32x128xf32>, vector<2x128xf32> -> vector<2x128xf32>
    %651 = arith.addf %649, %650 : vector<2x128xf32>
    %652 = vector.extract_strided_slice %651 {offsets = [0, 0], sizes = [2, 96], strides = [1, 1]} : vector<2x128xf32> to vector<2x96xf32>
    %653 = arith.negf %652 : vector<2x96xf32>
    %654 = math.exp %653 : vector<2x96xf32>
    %cst_164 = arith.constant 1.000000e+00 : f32
    %655 = vector.broadcast %cst_164 : f32 to vector<2x96xf32>
    %656 = arith.addf %655, %654 : vector<2x96xf32>
    %657 = arith.divf %655, %656 : vector<2x96xf32>
    %658 = vector.extract_strided_slice %651 {offsets = [0, 96], sizes = [2, 32], strides = [1, 1]} : vector<2x128xf32> to vector<2x32xf32>
    %659 = math.tanh %658 : vector<2x32xf32>
    %660 = vector.extract_strided_slice %657 {offsets = [0, 0], sizes = [2, 32], strides = [1, 1]} : vector<2x96xf32> to vector<2x32xf32>
    %661 = vector.extract_strided_slice %657 {offsets = [0, 32], sizes = [2, 32], strides = [1, 1]} : vector<2x96xf32> to vector<2x32xf32>
    %662 = vector.extract_strided_slice %657 {offsets = [0, 64], sizes = [2, 32], strides = [1, 1]} : vector<2x96xf32> to vector<2x32xf32>
    %663 = arith.mulf %661, %645 : vector<2x32xf32>
    %664 = arith.mulf %660, %659 : vector<2x32xf32>
    %665 = arith.addf %663, %664 : vector<2x32xf32>
    %666 = math.tanh %665 : vector<2x32xf32>
    %667 = arith.mulf %662, %666 : vector<2x32xf32>
    %c12_165 = arith.constant 12 : index
    %c0_166 = arith.constant 0 : index
    %668 = vector.load %arg21[%c12_165, %c0_166] : memref<16x32xf32, #tpu.memory_space<vmem>>, vector<2x32xf32>
    tpu.vector_store %arg21[%c12_165, %c0_166], %667 {strides = array<i32>} : memref<16x32xf32, #tpu.memory_space<vmem>>, vector<2x32xf32>,
    %669 = vector.extract_strided_slice %526 {offsets = [14, 0], sizes = [2, 128], strides = [1, 1]} : vector<16x128xf32> to vector<2x128xf32>
    %cst_167 = arith.constant dense<0.000000e+00> : vector<2x128xf32>
    %670 = tpu.matmul %667, %522, %cst_167 {dimension_numbers = #tpu.dot_dimension_numbers<[1], [0], [0], [1], [0, 0, 1, 1], [], []>} : vector<2x32xf32>, vector<32x128xf32>, vector<2x128xf32> -> vector<2x128xf32>
    %671 = arith.addf %669, %670 : vector<2x128xf32>
    %672 = vector.extract_strided_slice %671 {offsets = [0, 0], sizes = [2, 96], strides = [1, 1]} : vector<2x128xf32> to vector<2x96xf32>
    %673 = arith.negf %672 : vector<2x96xf32>
    %674 = math.exp %673 : vector<2x96xf32>
    %cst_168 = arith.constant 1.000000e+00 : f32
    %675 = vector.broadcast %cst_168 : f32 to vector<2x96xf32>
    %676 = arith.addf %675, %674 : vector<2x96xf32>
    %677 = arith.divf %675, %676 : vector<2x96xf32>
    %678 = vector.extract_strided_slice %671 {offsets = [0, 96], sizes = [2, 32], strides = [1, 1]} : vector<2x128xf32> to vector<2x32xf32>
    %679 = math.tanh %678 : vector<2x32xf32>
    %680 = vector.extract_strided_slice %677 {offsets = [0, 0], sizes = [2, 32], strides = [1, 1]} : vector<2x96xf32> to vector<2x32xf32>
    %681 = vector.extract_strided_slice %677 {offsets = [0, 32], sizes = [2, 32], strides = [1, 1]} : vector<2x96xf32> to vector<2x32xf32>
    %682 = vector.extract_strided_slice %677 {offsets = [0, 64], sizes = [2, 32], strides = [1, 1]} : vector<2x96xf32> to vector<2x32xf32>
    %683 = arith.mulf %681, %665 : vector<2x32xf32>
    %684 = arith.mulf %680, %679 : vector<2x32xf32>
    %685 = arith.addf %683, %684 : vector<2x32xf32>
    %686 = math.tanh %685 : vector<2x32xf32>
    %687 = arith.mulf %682, %686 : vector<2x32xf32>
    %c14_169 = arith.constant 14 : index
    %c0_170 = arith.constant 0 : index
    %688 = vector.load %arg21[%c14_169, %c0_170] : memref<16x32xf32, #tpu.memory_space<vmem>>, vector<2x32xf32>
    tpu.vector_store %arg21[%c14_169, %c0_170], %687 {strides = array<i32>} : memref<16x32xf32, #tpu.memory_space<vmem>>, vector<2x32xf32>,
    %c0_171 = arith.constant 0 : index
    %c0_172 = arith.constant 0 : index
    %689 = vector.load %arg21[%c0_171, %c0_172] : memref<16x32xf32, #tpu.memory_space<vmem>>, vector<16x32xf32>
    %c0_173 = arith.constant 0 : index
    %c0_174 = arith.constant 0 : index
    %690 = vector.load %arg16[%c0_173, %c0_174] : memref<32x16xf32, #tpu.memory_space<vmem>>, vector<32x16xf32>
    %cst_175 = arith.constant dense<0.000000e+00> : vector<16x16xf32>
    %691 = tpu.matmul %689, %690, %cst_175 {dimension_numbers = #tpu.dot_dimension_numbers<[1], [0], [0], [1], [0, 0, 1, 1], [], []>} : vector<16x32xf32>, vector<32x16xf32>, vector<16x16xf32> -> vector<16x16xf32>
    %c0_176 = arith.constant 0 : index
    %c0_177 = arith.constant 0 : index
    %692 = vector.load %arg17[%c0_176, %c0_177] : memref<1x16xf32, #tpu.memory_space<vmem>>, vector<1x16xf32>
    %693 = vector.broadcast %692 : vector<1x16xf32> to vector<16x16xf32>
    %694 = arith.addf %691, %693 : vector<16x16xf32>
    %c0_178 = arith.constant 0 : index
    %c0_179 = arith.constant 0 : index
    %695 = vector.load %arg18[%c0_178, %c0_179] : memref<16x16xf32, #tpu.memory_space<vmem>>, vector<16x16xf32>
    tpu.vector_store %arg18[%c0_178, %c0_179], %694 {strides = array<i32>} : memref<16x16xf32, #tpu.memory_space<vmem>>, vector<16x16xf32>,
    %c0_180 = arith.constant 0 : index
    %c0_181 = arith.constant 0 : index
    %696 = vector.load %arg19[%c0_180, %c0_181] : memref<16x16xf32, #tpu.memory_space<vmem>>, vector<16x16xf32>
    tpu.vector_store %arg19[%c0_180, %c0_181], %343 {strides = array<i32>} : memref<16x16xf32, #tpu.memory_space<vmem>>, vector<16x16xf32>,
    return
  }
}

</mosaic_0001>

<bundles_post_ra>
// kernel: lstmvae_forward.1
= control target key start
LH: loop header
LB: loop body
LE: loop exit
PB: predicated region body
PF: predicated region fallthrough
CT: control target
= control target key end

     0   :  { %s6536_s0 = inlined_call_operand.vmem [shape: f32[16,16], index: 0, kind: input, shape index: {}]   ;;  %s6537_s1 = inlined_call_operand.vmem [shape: f32[16,8], index: 1, kind: input, shape index: {}]   ;;  %s6538_s2 = inlined_call_operand.hbm [shape: f32[16,128], index: 2, kind: input, shape index: {}]   ;;  %s6539_s3 = inlined_call_operand.vmem [shape: f32[32,128], index: 3, kind: input, shape index: {}]   ;;  %s6540_s4 = inlined_call_operand.hbm [shape: f32[1,128], index: 4, kind: input, shape index: {}]   ;;  %s6541_s5 = inlined_call_operand.vmem [shape: f32[32,128], index: 5, kind: input, shape index: {}]   ;;  %s6542_s6 = inlined_call_operand.vmem [shape: f32[32,128], index: 6, kind: input, shape index: {}]   ;;  %s6543_s7 = inlined_call_operand.hbm [shape: f32[1,128], index: 7, kind: input, shape index: {}]   ;;  %s6544_s8 = inlined_call_operand.vmem [shape: f32[32,16], index: 8, kind: input, shape index: {}]   ;;  %s6545_s9 = inlined_call_operand.hbm [shape: f32[1,16], index: 9, kind: input, shape index: {}]   ;;  %s6546_s10 = inlined_call_operand.hbm [shape: f32[8,128], index: 10, kind: input, shape index: {}]   ;;  %s6547_s11 = inlined_call_operand.vmem [shape: f32[32,128], index: 11, kind: input, shape index: {}]   ;;  %s6548_s12 = inlined_call_operand.hbm [shape: f32[1,128], index: 12, kind: input, shape index: {}]   ;;  %s6549_s13 = inlined_call_operand.vmem [shape: f32[32,128], index: 13, kind: input, shape index: {}]   ;;  %s6550_s14 = inlined_call_operand.hbm [shape: f32[32,128], index: 14, kind: input, shape index: {}]   ;;  %s6551_s15 = inlined_call_operand.hbm [shape: f32[1,128], index: 15, kind: input, shape index: {}]   ;;  %s6552_s16 = inlined_call_operand.vmem [shape: f32[32,16], index: 16, kind: input, shape index: {}]   ;;  %s6553_s17 = inlined_call_operand.hbm [shape: f32[1,16], index: 17, kind: input, shape index: {}]   ;;  %s6554_s18 = inlined_call_operand.vmem [shape: f32[16,16], index: 18, kind: output, shape index: {0}]   ;;  %s6555_s19 = inlined_call_operand.vmem [shape: f32[16,16], index: 19, kind: output, shape index: {1}]  }
   0x1   :  { %6560 = sst [smem:[#allocation23_spill]] %s6536_s0 }
   0x2   :  { %6561 = sst [smem:[#allocation24_spill]] %s6537_s1 }
   0x3   :  { %6562 = sst [smem:[#allocation25_spill]] %s6538_s2 }
   0x4   :  { %6563 = sst [smem:[#allocation26_spill]] %s6539_s3 }
   0x5   :  { %25 = vsyncpa [#allocation5], 0 }
   0x6   :  { %26 = vsyncpa [#allocation7], 0 }
   0x7   :  { %27 = vsyncpa [#allocation10], 0 }
   0x8   :  { %28 = vsyncpa [#allocation13], 0 }
   0x9   :  { %29 = vsyncpa [#allocation16], 0  ;;  %s5651_s0 = smov [#allocation6]   ;;  %s5652_s20 = smov [#allocation9]  }
   0xa   :  { %s54_s30 = sshll.u32 %s5651_s0, 4  ;;  %s80_s21 = sshll.u32 %s5652_s20, 4  ;;  %s55_s30 = int_to_ptr.vmem [resolvable:$true] %s54_s30  ;;  %s81_s21 = int_to_ptr.vmem [resolvable:$true] %s80_s21 }
   0xb   :  { %s5443_s2 = scalar_lea.hbm %s6540_s4, 16 }
   0xc   :  { %p5444_p0 = scmp.ne.s32.totalorder %s6540_s4, %s5443_s2  ;;  %p5447_p1 = scmp.lt.u32.totalorder %s5443_s2, %s6540_s4 }
   0xe   :  { %p5449_p2 = pnand %p5447_p1, %p5444_p0 }
  0x10   :  { %5452 = shalt.err (!%p5449_p2)
}
  0x11   :  { %s5453_s26 = scalar_lea.vmem %s55_s30, 16  ;;  %s5457_s27 = scalar_lea.vmem %s55_s30, 32 }
  0x12   :  { %p5454_p3 = scmp.ne.s32.totalorder %s55_s30, %s5453_s26  ;;  %p5458_p4 = scmp.lt.s32.totalorder %s55_s30, %s55_s30 }
  0x13   :  { %p5459_p5 = scmp.lt.s32.totalorder %s5457_s27, %s5453_s26 }
  0x15   :  { %p5460_p6 = por %p5459_p5, %p5458_p4 }
  0x17   :  { %p5461_p7 = pnand %p5460_p6, %p5454_p3 }
  0x19   :  { %5464 = shalt.err (!%p5461_p7)
}
  0x1a   :  { %57 = dma.hbm_to_vmem [thread:$0]  %s6540_s4, 16, %s55_s30, [#allocation7]  }
  0x1b   :  { %s5465_s1 = scalar_lea.hbm %s6545_s9, 16 }
  0x1c   :  { %p5466_p8 = scmp.ne.s32.totalorder %s6545_s9, %s5465_s1  ;;  %p5469_p9 = scmp.lt.u32.totalorder %s5465_s1, %s6545_s9 }
  0x1e   :  { %p5471_p10 = pnand %p5469_p9, %p5466_p8 }
  0x20   :  { %5474 = shalt.err (!%p5471_p10)
}
  0x21   :  { %s5475_s25 = scalar_lea.vmem %s81_s21, 16  ;;  %s5479_s3 = scalar_lea.vmem %s81_s21, 32 }
  0x22   :  { %p5476_p11 = scmp.ne.s32.totalorder %s81_s21, %s5475_s25  ;;  %p5480_p12 = scmp.lt.s32.totalorder %s81_s21, %s81_s21 }
  0x23   :  { %p5481_p13 = scmp.lt.s32.totalorder %s5479_s3, %s5475_s25 }
  0x25   :  { %p5482_p0 = por %p5481_p13, %p5480_p12 }
  0x27   :  { %p5483_p1 = pnand %p5482_p0, %p5476_p11 }
  0x29   :  { %5486 = shalt.err (!%p5483_p1)
}
  0x2a   :  { %83 = dma.hbm_to_vmem [thread:$0]  %s6545_s9, 16, %s81_s21, [#allocation10]  }
  0x2b   :  { %s5653_s26 = smov [#allocation12]   ;;  %s5654_s28 = smov [#allocation15]  }
  0x2c   :  { %s102_s27 = sshll.u32 %s5653_s26, 4  ;;  %s126_s29 = sshll.u32 %s5654_s28, 4  ;;  %s103_s27 = int_to_ptr.vmem [resolvable:$true] %s102_s27  ;;  %s127_s29 = int_to_ptr.vmem [resolvable:$true] %s126_s29 }
  0x2d   :  { %s5487_s1 = scalar_lea.hbm %s6548_s12, 16 }
  0x2e   :  { %p5488_p2 = scmp.ne.s32.totalorder %s6548_s12, %s5487_s1  ;;  %p5491_p3 = scmp.lt.u32.totalorder %s5487_s1, %s6548_s12 }
  0x30   :  { %p5493_p4 = pnand %p5491_p3, %p5488_p2 }
  0x32   :  { %5496 = shalt.err (!%p5493_p4)
}
  0x33   :  { %s5497_s9 = scalar_lea.vmem %s103_s27, 16  ;;  %s5501_s21 = scalar_lea.vmem %s103_s27, 32 }
  0x34   :  { %p5498_p5 = scmp.ne.s32.totalorder %s103_s27, %s5497_s9  ;;  %p5502_p6 = scmp.lt.s32.totalorder %s103_s27, %s103_s27 }
  0x35   :  { %p5503_p7 = scmp.lt.s32.totalorder %s5501_s21, %s5497_s9 }
  0x37   :  { %p5504_p8 = por %p5503_p7, %p5502_p6 }
  0x39   :  { %p5505_p9 = pnand %p5504_p8, %p5498_p5 }
  0x3b   :  { %5508 = shalt.err (!%p5505_p9)
}
  0x3c   :  { %105 = dma.hbm_to_vmem [thread:$0]  %s6548_s12, 16, %s103_s27, [#allocation13]  }
  0x3d   :  { %s5509_s26 = scalar_lea.hbm %s6551_s15, 16 }
  0x3e   :  { %p5510_p10 = scmp.ne.s32.totalorder %s6551_s15, %s5509_s26  ;;  %p5513_p11 = scmp.lt.u32.totalorder %s5509_s26, %s6551_s15 }
  0x40   :  { %p5515_p12 = pnand %p5513_p11, %p5510_p10 }
  0x42   :  { %5518 = shalt.err (!%p5515_p12)
}
  0x43   :  { %s5519_s22 = scalar_lea.vmem %s127_s29, 16  ;;  %s5523_s2 = scalar_lea.vmem %s127_s29, 32 }
  0x44   :  { %p5520_p13 = scmp.ne.s32.totalorder %s127_s29, %s5519_s22  ;;  %p5524_p0 = scmp.lt.s32.totalorder %s127_s29, %s127_s29 }
  0x45   :  { %p5525_p1 = scmp.lt.s32.totalorder %s5523_s2, %s5519_s22 }
  0x47   :  { %p5526_p2 = por %p5525_p1, %p5524_p0 }
  0x49   :  { %p5527_p3 = pnand %p5526_p2, %p5520_p13 }
  0x4b   :  { %5530 = shalt.err (!%p5527_p3)
}
  0x4c   :  { %129 = dma.hbm_to_vmem [thread:$0]  %s6551_s15, 16, %s127_s29, [#allocation16]  }
  0x4d   :  { %s5655_s23 = smov [#allocation4]   ;;  %s6564_s25 = sld [smem:[#allocation25_spill]] }
  0x4e   :  { %s39_s24 = sshll.u32 %s5655_s23, 4  ;;  %s40_s24 = int_to_ptr.vmem [resolvable:$true] %s39_s24 }
  0x53   :  { %s5531_s3 = scalar_lea.hbm %s6564_s25, 256 }
  0x54   :  { %p5532_p4 = scmp.ne.s32.totalorder %s6564_s25, %s5531_s3  ;;  %p5535_p5 = scmp.lt.u32.totalorder %s5531_s3, %s6564_s25 }
  0x56   :  { %p5537_p6 = pnand %p5535_p5, %p5532_p4 }
  0x58   :  { %5540 = shalt.err (!%p5537_p6)
}
  0x59   :  { %s5541_s0 = scalar_lea.vmem %s40_s24, 256  ;;  %p5546_p8 = scmp.lt.s32.totalorder %s40_s24, %s40_s24 }
  0x5a   :  { %p5542_p7 = scmp.ne.s32.totalorder %s40_s24, %s5541_s0  ;;  %p5547_p9 = scmp.lt.s32.totalorder %s5541_s0, %s5541_s0 }
  0x5c   :  { %p5548_p10 = por %p5547_p9, %p5546_p8 }
  0x5e   :  { %p5549_p11 = pnand %p5548_p10, %p5542_p7 }
  0x60   :  { %5552 = shalt.err (!%p5549_p11)
}
  0x61   :  { %s5656_s15 = smov 128   ;;  %s5657_s29 = smov 8  }
  0x62   :  { %45 = dma.hbm_to_vmem [thread:$0]  %s6564_s25, 256, %s40_s24, [#allocation5], %s5656_s15, %s5656_s15, %s5657_s29  }
  0x63   :  { %s5658_s22 = smov [#allocation8]   ;;  %s5659_s12 = smov [#allocation11]  }
  0x64   :  { %s68_s2 = sshll.u32 %s5658_s22, 4  ;;  %s90_s27 = sshll.u32 %s5659_s12, 4  ;;  %s69_s2 = int_to_ptr.vmem [resolvable:$true] %s68_s2  ;;  %s91_s27 = int_to_ptr.vmem [resolvable:$true] %s90_s27 }
  0x65   :  { %s5553_s21 = scalar_lea.hbm %s6543_s7, 16 }
  0x66   :  { %p5554_p12 = scmp.ne.s32.totalorder %s6543_s7, %s5553_s21  ;;  %p5557_p13 = scmp.lt.u32.totalorder %s5553_s21, %s6543_s7 }
  0x68   :  { %p5559_p0 = pnand %p5557_p13, %p5554_p12 }
  0x6a   :  { %5562 = shalt.err (!%p5559_p0)
}
  0x6b   :  { %s5563_s24 = scalar_lea.vmem %s69_s2, 16  ;;  %s5567_s25 = scalar_lea.vmem %s69_s2, 32 }
  0x6c   :  { %p5564_p1 = scmp.ne.s32.totalorder %s69_s2, %s5563_s24  ;;  %p5568_p2 = scmp.lt.s32.totalorder %s69_s2, %s69_s2 }
  0x6d   :  { %p5569_p3 = scmp.lt.s32.totalorder %s5567_s25, %s5563_s24 }
  0x6f   :  { %p5570_p4 = por %p5569_p3, %p5568_p2 }
  0x71   :  { %p5571_p5 = pnand %p5570_p4, %p5564_p1 }
  0x73   :  { %5574 = shalt.err (!%p5571_p5)
}
  0x74   :  { %71 = dma.hbm_to_vmem [thread:$0]  %s6543_s7, 16, %s69_s2, [#allocation7]  }
  0x75   :  { %s5575_s22 = scalar_lea.hbm %s6546_s10, 128 }
  0x76   :  { %p5576_p6 = scmp.ne.s32.totalorder %s6546_s10, %s5575_s22  ;;  %p5579_p7 = scmp.lt.u32.totalorder %s5575_s22, %s6546_s10 }
  0x78   :  { %p5581_p8 = pnand %p5579_p7, %p5576_p6 }
  0x7a   :  { %5584 = shalt.err (!%p5581_p8)
}
  0x7b   :  { %s5585_s3 = scalar_lea.vmem %s91_s27, 128  ;;  %p5590_p10 = scmp.lt.s32.totalorder %s91_s27, %s91_s27 }
  0x7c   :  { %p5586_p9 = scmp.ne.s32.totalorder %s91_s27, %s5585_s3  ;;  %p5591_p11 = scmp.lt.s32.totalorder %s5585_s3, %s5585_s3 }
  0x7e   :  { %p5592_p12 = por %p5591_p11, %p5590_p10 }
  0x80   :  { %p5593_p13 = pnand %p5592_p12, %p5586_p9 }
  0x82   :  { %5596 = shalt.err (!%p5593_p13)
}
  0x83   :  { %93 = dma.hbm_to_vmem [thread:$0]  %s6546_s10, 128, %s91_s27, [#allocation10]  }
  0x84   :  { %s5660_s4 = smov [#allocation14]   ;;  %s5661_s26 = smov [#allocation17]  }
  0x85   :  { %s113_s30 = sshll.u32 %s5660_s4, 4  ;;  %s138_s24 = sshll.u32 %s5661_s26, 4  ;;  %s114_s30 = int_to_ptr.vmem [resolvable:$true] %s113_s30  ;;  %s139_s24 = int_to_ptr.vmem [resolvable:$true] %s138_s24 }
  0x86   :  { %s5597_s0 = scalar_lea.hbm %s6550_s14, 512 }
  0x87   :  { %p5598_p0 = scmp.ne.s32.totalorder %s6550_s14, %s5597_s0  ;;  %p5601_p1 = scmp.lt.u32.totalorder %s5597_s0, %s6550_s14 }
  0x89   :  { %p5603_p2 = pnand %p5601_p1, %p5598_p0 }
  0x8b   :  { %5606 = shalt.err (!%p5603_p2)
}
  0x8c   :  { %s5607_s10 = scalar_lea.vmem %s114_s30, 512  ;;  %p5612_p4 = scmp.lt.s32.totalorder %s114_s30, %s114_s30 }
  0x8d   :  { %p5608_p3 = scmp.ne.s32.totalorder %s114_s30, %s5607_s10  ;;  %p5613_p5 = scmp.lt.s32.totalorder %s5607_s10, %s5607_s10 }
  0x8f   :  { %p5614_p6 = por %p5613_p5, %p5612_p4 }
  0x91   :  { %p5615_p7 = pnand %p5614_p6, %p5608_p3 }
  0x93   :  { %5618 = shalt.err (!%p5615_p7)
}
  0x94   :  { %119 = dma.hbm_to_vmem [thread:$0]  %s6550_s14, 512, %s114_s30, [#allocation13], %s5656_s15, %s5656_s15, %s5657_s29  }
  0x95   :  { %s5619_s3 = scalar_lea.hbm %s6553_s17, 16 }
  0x96   :  { %p5620_p8 = scmp.ne.s32.totalorder %s6553_s17, %s5619_s3  ;;  %p5623_p9 = scmp.lt.u32.totalorder %s5619_s3, %s6553_s17 }
  0x98   :  { %p5625_p10 = pnand %p5623_p9, %p5620_p8 }
  0x9a   :  { %5628 = shalt.err (!%p5625_p10)
}
  0x9b   :  { %s5629_s25 = scalar_lea.vmem %s139_s24, 16  ;;  %s5633_s28 = scalar_lea.vmem %s139_s24, 32 }
  0x9c   :  { %p5630_p11 = scmp.ne.s32.totalorder %s139_s24, %s5629_s25  ;;  %p5634_p12 = scmp.lt.s32.totalorder %s139_s24, %s139_s24 }
  0x9d   :  { %p5635_p13 = scmp.lt.s32.totalorder %s5633_s28, %s5629_s25 }
  0x9f   :  { %p5636_p0 = por %p5635_p13, %p5634_p12 }
  0xa1   :  { %p5637_p1 = pnand %p5636_p0, %p5630_p11 }
  0xa3   :  { %5640 = shalt.err (!%p5637_p1)
}
  0xa4   :  { %141 = dma.hbm_to_vmem [thread:$0]  %s6553_s17, 16, %s139_s24, [#allocation16]  }
  0xa5   :  { %5641 = dma.done.wait [#allocation5], 256  }
  0xa6   :  { %5642 = vsyncadd [#allocation5], 4294967040 }
  0xa7   :  { %5643 = dma.done.wait [#allocation7], 32  }
  0xa8   :  { %5644 = vsyncadd [#allocation7], 4294967264 }
  0xa9   :  { %5645 = dma.done.wait [#allocation10], 144  }
  0xaa   :  { %5646 = vsyncadd [#allocation10], 4294967152 }
  0xab   :  { %5647 = dma.done.wait [#allocation13], 528  }
  0xac   :  { %5648 = vsyncadd [#allocation13], 4294966768 }
  0xad   :  { %5649 = dma.done.wait [#allocation16], 32  }
  0xae   :  { %5650 = vsyncadd [#allocation16], 4294967264  ;;  %v5662_v0 = vmov 0.0|0.0   ;;  %vm5663_vm0 = vmmov 0   ;;  %v5664_v1 = vmov 0.0   ;;  %vm184_vm1 = vcmask 130048  }
  0xaf   :  { %4942 = vmatprep.subr.bf16.mxu1 %v5662_v0  ;;  %4545 = vmatprep.mubr.msk.f32.mxu1 %vm5663_vm0, %v5664_v1  ;;  %v171_v2 = vld [vmem:[#allocation4] sm:$0xff]  ;;  %v172_v3 = vld [vmem:[#allocation4 + $0x8] sm:$0xff]  ;;  %s6565_s30 = sld [smem:[#allocation26_spill]]  ;;  %s6566_s22 = sld [smem:[#allocation23_spill]]  ;;  %v4261_v13 = vld [vmem:[#allocation6] ss:$0 sm:$0xff] }
  0xb0   :  { %v4938_v5 = vpack.c.bf16 %v172_v3, %v171_v2  ;;  %s5665_s3 = smov 32   ;;  %s5666_s7 = smov 64   ;;  %vm369_vm2 = vcmask 254976   ;;  %vm266_vm3 = vcmask 261120   ;;  %vm478_vm4 = vcmask 257026  }
  0xb1   :  { %vm702_vm5 = vcmask 261126   ;;  %vm590_vm6 = vcmask 259076   ;;  %s6567_s1 = sld [smem:[#allocation24_spill]]  ;;  %vm2234_vm7 = vcmask 64512  }
  0xb2   :  { %4939 = vmatprep.subr.bf16.mxu0 %v4938_v5 }
  0xb3   :  { %4941 = vmatpush3.bf16.msra.mxu0 %v4938_v5 }
  0xb4   :  { %4948 = vmatprep.subr.bf16.mxu0 %v5662_v0 }
  0xb5   :  { %v173_v4 = vld [vmem:[%s6565_s30] sm:$0xff]  ;;  %v174_v6 = vld [vmem:[%s6565_s30 + $0x8] sm:$0xff]  ;;  %v175_v9 = vld [vmem:[%s6565_s30 + $0x10] sm:$0xff] }
  0xb6   :  { %v169_v7 = vld [vmem:[%s6566_s22] sm:$0xff]  ;;  %v5894_v8 = vpack.c.bf16 %v174_v6, %v173_v4  ;;  %v176_v10 = vld [vmem:[%s6565_s30 + $0x18] sm:$0xff]  ;;  %v170_v11 = vld [vmem:[%s6566_s22 + $0x8] sm:$0xff] }
  0xb7   :  { %4534 = vmatprep.mubr.msk.f32.mxu0 %vm184_vm1, %v169_v7  ;;  %v5907_v12 = vpack.c.bf16 %v176_v10, %v175_v9 }
  0xb8   :  { %4944 = vmatpush3.bf16.msra.mxu1 %v5894_v8  ;;  %4535 = vmatmul.mubr.msk.f32.vlgmr.msra.gmra.mrb[0].mxu0 %vm184_vm1, %v170_v11 }
  0xb9   :  { %4945 = vmatprep.subr.bf16.mxu1 %v5662_v0  ;;  %4950 = vmatpush3.bf16.msra.mxu0 %v5894_v8 }
  0xba   :  { %4951 = vmatprep.subr.bf16.mxu0 %v5662_v0  ;;  %4556 = vmatprep.mubr.msk.f32.mxu0 %vm5663_vm0, %v5664_v1 }
  0xbc   :  { %4947 = vmatpush3.bf16.msra.mxu1 %v5907_v12 }
  0xbd   :  { %4954 = vmatprep.subr.bf16.mxu1 %v5662_v0  ;;  %4953 = vmatpush3.bf16.msra.mxu0 %v5907_v12 }
  0xbe   :  { %4960 = vmatprep.subr.bf16.mxu0 %v5662_v0 }
  0xbf   :  { %4546 = vmatmul.mubr.f32.vlgmr.msra.gmra.mrb[0].mxu1 %v5664_v1 }
  0xc0   :  { %4956 = vmatpush3.bf16.msra.mxu1 %v5894_v8  ;;  %4567 = vmatprep.mubr.msk.f32.mxu1 %vm5663_vm0, %v5664_v1 }
  0xc1   :  { %4957 = vmatprep.subr.bf16.mxu1 %v5662_v0 }
  0xc4   :  { %4959 = vmatpush3.bf16.msra.mxu1 %v5907_v12 }
  0xc5   :  { %4966 = vmatprep.subr.bf16.mxu1 %v5662_v0 }
 0x18b   :  { %v4536_v14 = vpop.f32.mrb[0].mxu0 }
 0x18c   :  { %v5927_v15 = vadd.f32 %v4536_v14, %v4261_v13  ;;  %v257_v16 = vpop.f32.mrb[1].mxu0 }
 0x18d   :  { %v5929_v17 = vadd.f32 %v4261_v13, %v257_v16 }
 0x192   :  { %v336_v18 = vpop.f32.mrb[0].mxu1 }
 0x193   :  { %v340_v19 = vadd.f32 %v336_v18, %v5929_v17  ;;  %v4547_v20 = vpop.f32.mrb[1].mxu1 }
 0x195   :  { %5183 = vtanh.f32 %v340_v19  ;;  %v4264_v22 = vmul.f32 -1.442695, %v340_v19 }
 0x197   :  { %5185 = vpow2.f32 %v4264_v22 }
 0x19f   :  { %v5184_v21 = vpop.eup %5183 }
 0x1a0   :  { %350 = vrot.lane.b32.xlu0 %v5184_v21, %s5665_s3 }
 0x1a1   :  { %v5186_v23 = vpop.eup %5185 }
 0x1a2   :  { %v344_v24 = vadd.f32 1.0, %v5186_v23 }
 0x1a4   :  { %5187 = vrcp.f32 %v344_v24 }
 0x1ae   :  { %v5188_v25 = vpop.eup %5187 }
 0x1af   :  { %v348_v28 = vmul.f32 0.0, %v5188_v25 }
 0x212   :  { %v351_v26 = vpop.permute.xlu0 %350 }
 0x213   :  { %v353_v27 = vmul.f32 %v5188_v25, %v351_v26 }
 0x215   :  { %355 = vrot.lane.b32.xlu0 %v353_v27, %s5665_s3 }
 0x287   :  { %v356_v29 = vpop.permute.xlu0 %355 }
 0x288   :  { %v358_v30 = vadd.f32 %v356_v29, %v348_v28 }
 0x28a   :  { %5189 = vtanh.f32 %v358_v30  ;;  %v455_v46 = vrot.slane %v358_v30, 6 }
 0x294   :  { %v5190_v31 = vpop.eup %5189 }
 0x295   :  { %361 = vrot.lane.b32.xlu1 %v5190_v31, %s5665_s3 }
 0x307   :  { %v362_v32 = vpop.permute.xlu1 %361 }
 0x308   :  { %v364_v33 = vmul.f32 %v5188_v25, %v362_v32 }
 0x30a   :  { %366 = vrot.lane.b32.xlu1 %v364_v33, %s5666_s7 }
 0x37c   :  { %v367_v34 = vpop.permute.xlu1 %366 }
 0x37d   :  { %370 = vst.msk [vmem:[#allocation2] sm:$0x3] %vm369_vm2, %v367_v34  ;;  %4557 = vmatmul.mubr.msk.f32.vlgmr.msra.gmra.mrb[2].mxu0 %vm266_vm3, %v367_v34 }
 0x37e   :  { %4962 = vmatpush3.bf16.msra.mxu0 %v5894_v8  ;;  %4578 = vmatprep.mubr.msk.f32.mxu0 %vm5663_vm0, %v5664_v1 }
 0x37f   :  { %4963 = vmatprep.subr.bf16.mxu0 %v5662_v0 }
 0x382   :  { %4965 = vmatpush3.bf16.msra.mxu0 %v5907_v12 }
 0x383   :  { %4972 = vmatprep.subr.bf16.mxu0 %v5662_v0 }
 0x450   :  { %v439_v35 = vpop.f32.mrb[2].mxu0 }
 0x451   :  { %v444_v36 = vrot.slane %v439_v35, 6  ;;  %v4558_v37 = vpop.f32.mrb[3].mxu0 }
 0x453   :  { %v446_v38 = vadd.f32 %v444_v36, %v5929_v17 }
 0x455   :  { %5191 = vtanh.f32 %v446_v38  ;;  %v4266_v40 = vmul.f32 -1.442695, %v446_v38 }
 0x457   :  { %5193 = vpow2.f32 %v4266_v40 }
 0x45f   :  { %v5192_v39 = vpop.eup %5191 }
 0x460   :  { %459 = vrot.lane.b32.xlu0 %v5192_v39, %s5665_s3 }
 0x461   :  { %v5194_v41 = vpop.eup %5193 }
 0x462   :  { %v450_v42 = vadd.f32 1.0, %v5194_v41 }
 0x464   :  { %5195 = vrcp.f32 %v450_v42 }
 0x46e   :  { %v5196_v43 = vpop.eup %5195 }
 0x46f   :  { %v457_v47 = vmul.f32 %v5196_v43, %v455_v46 }
 0x4d2   :  { %v460_v44 = vpop.permute.xlu0 %459 }
 0x4d3   :  { %v462_v45 = vmul.f32 %v5196_v43, %v460_v44 }
 0x4d5   :  { %464 = vrot.lane.b32.xlu1 %v462_v45, %s5665_s3 }
 0x547   :  { %v465_v48 = vpop.permute.xlu1 %464 }
 0x548   :  { %v467_v49 = vadd.f32 %v465_v48, %v457_v47 }
 0x54a   :  { %5197 = vtanh.f32 %v467_v49  ;;  %v567_v4 = vrot.slane %v467_v49, 6 }
 0x554   :  { %v5198_v50 = vpop.eup %5197 }
 0x555   :  { %470 = vrot.lane.b32.xlu0 %v5198_v50, %s5665_s3 }
 0x5c7   :  { %v471_v51 = vpop.permute.xlu0 %470 }
 0x5c8   :  { %v5948_v52 = vmul.f32 %v5196_v43, %v471_v51 }
 0x5ca   :  { %v480_v53 = vrot.slane %v5948_v52, 2 }
 0x5cc   :  { %481 = vrot.lane.b32.xlu1 %v480_v53, %s5666_s7 }
 0x63e   :  { %v482_v54 = vpop.permute.xlu1 %481 }
 0x63f   :  { %4568 = vmatmul.mubr.msk.f32.vlgmr.msra.gmra.mrb[2].mxu1 %vm266_vm3, %v482_v54 }
 0x640   :  { %4968 = vmatpush3.bf16.msra.mxu1 %v5894_v8  ;;  %4589 = vmatprep.mubr.msk.f32.mxu1 %vm5663_vm0, %v5664_v1 }
 0x641   :  { %4969 = vmatprep.subr.bf16.mxu1 %v5662_v0 }
 0x644   :  { %4971 = vmatpush3.bf16.msra.mxu1 %v5907_v12 }
 0x645   :  { %4978 = vmatprep.subr.bf16.mxu1 %v5662_v0 }
 0x712   :  { %v551_v55 = vpop.f32.mrb[2].mxu1 }
 0x713   :  { %v556_v56 = vrot.slane %v551_v55, 4  ;;  %v4569_v57 = vpop.f32.mrb[3].mxu1 }
 0x715   :  { %v558_v58 = vadd.f32 %v556_v56, %v5929_v17 }
 0x717   :  { %5199 = vtanh.f32 %v558_v58  ;;  %v4268_v60 = vmul.f32 -1.442695, %v558_v58 }
 0x719   :  { %5201 = vpow2.f32 %v4268_v60 }
 0x721   :  { %v5200_v59 = vpop.eup %5199 }
 0x722   :  { %571 = vrot.lane.b32.xlu0 %v5200_v59, %s5665_s3 }
 0x723   :  { %v5202_v61 = vpop.eup %5201 }
 0x724   :  { %v562_v62 = vadd.f32 1.0, %v5202_v61 }
 0x726   :  { %5203 = vrcp.f32 %v562_v62 }
 0x730   :  { %v5204_v63 = vpop.eup %5203 }
 0x731   :  { %v569_v5 = vmul.f32 %v5204_v63, %v567_v4 }
 0x794   :  { %v572_v2 = vpop.permute.xlu0 %571 }
 0x795   :  { %v574_v3 = vmul.f32 %v5204_v63, %v572_v2 }
 0x797   :  { %576 = vrot.lane.b32.xlu1 %v574_v3, %s5665_s3 }
 0x809   :  { %v577_v6 = vpop.permute.xlu1 %576 }
 0x80a   :  { %v579_v7 = vadd.f32 %v577_v6, %v569_v5 }
 0x80c   :  { %5205 = vtanh.f32 %v579_v7  ;;  %v679_v28 = vrot.slane %v579_v7, 6 }
 0x816   :  { %v5206_v9 = vpop.eup %5205 }
 0x817   :  { %582 = vrot.lane.b32.xlu0 %v5206_v9, %s5665_s3 }
 0x889   :  { %v583_v10 = vpop.permute.xlu0 %582 }
 0x88a   :  { %v5963_v11 = vmul.f32 %v5204_v63, %v583_v10 }
 0x88c   :  { %v592_v13 = vrot.slane %v5963_v11, 4 }
 0x88e   :  { %593 = vrot.lane.b32.xlu1 %v592_v13, %s5666_s7 }
 0x900   :  { %v594_v14 = vpop.permute.xlu1 %593 }
 0x901   :  { %4579 = vmatmul.mubr.msk.f32.vlgmr.msra.gmra.mrb[4].mxu0 %vm266_vm3, %v594_v14 }
 0x902   :  { %4974 = vmatpush3.bf16.msra.mxu0 %v5894_v8  ;;  %4600 = vmatprep.mubr.msk.f32.mxu0 %vm5663_vm0, %v5664_v1 }
 0x903   :  { %4975 = vmatprep.subr.bf16.mxu0 %v5662_v0 }
 0x906   :  { %4977 = vmatpush3.bf16.msra.mxu0 %v5907_v12 }
 0x907   :  { %4984 = vmatprep.subr.bf16.mxu0 %v5662_v0 }
 0x9d4   :  { %v663_v16 = vpop.f32.mrb[4].mxu0 }
 0x9d5   :  { %v668_v18 = vrot.slane %v663_v16, 2  ;;  %v4580_v19 = vpop.f32.mrb[5].mxu0 }
 0x9d7   :  { %v670_v20 = vadd.f32 %v668_v18, %v5929_v17 }
 0x9d9   :  { %5207 = vtanh.f32 %v670_v20  ;;  %v4270_v22 = vmul.f32 -1.442695, %v670_v20 }
 0x9db   :  { %5209 = vpow2.f32 %v4270_v22 }
 0x9e3   :  { %v5208_v21 = vpop.eup %5207 }
 0x9e4   :  { %683 = vrot.lane.b32.xlu0 %v5208_v21, %s5665_s3 }
 0x9e5   :  { %v5210_v23 = vpop.eup %5209 }
 0x9e6   :  { %v674_v24 = vadd.f32 1.0, %v5210_v23 }
 0x9e8   :  { %5211 = vrcp.f32 %v674_v24 }
 0x9f2   :  { %v5212_v25 = vpop.eup %5211 }
 0x9f3   :  { %v681_v29 = vmul.f32 %v5212_v25, %v679_v28 }
 0xa56   :  { %v684_v26 = vpop.permute.xlu0 %683 }
 0xa57   :  { %v686_v27 = vmul.f32 %v5212_v25, %v684_v26 }
 0xa59   :  { %688 = vrot.lane.b32.xlu1 %v686_v27, %s5665_s3 }
 0xacb   :  { %v689_v30 = vpop.permute.xlu1 %688 }
 0xacc   :  { %v691_v31 = vadd.f32 %v689_v30, %v681_v29 }
 0xace   :  { %5213 = vtanh.f32 %v691_v31  ;;  %v788_v46 = vrot.slane %v691_v31, 6 }
 0xad8   :  { %v5214_v17 = vpop.eup %5213 }
 0xad9   :  { %694 = vrot.lane.b32.xlu0 %v5214_v17, %s5665_s3 }
 0xb4b   :  { %v695_v32 = vpop.permute.xlu0 %694 }
 0xb4c   :  { %v5978_v33 = vmul.f32 %v5212_v25, %v695_v32 }
 0xb4e   :  { %v704_v34 = vrot.slane %v5978_v33, 6 }
 0xb50   :  { %705 = vrot.lane.b32.xlu1 %v704_v34, %s5666_s7 }
 0xbc2   :  { %v706_v35 = vpop.permute.xlu1 %705 }
 0xbc3   :  { %4590 = vmatmul.mubr.msk.f32.vlgmr.msra.gmra.mrb[4].mxu1 %vm266_vm3, %v706_v35 }
 0xbc4   :  { %4980 = vmatpush3.bf16.msra.mxu1 %v5894_v8  ;;  %4611 = vmatprep.mubr.msk.f32.mxu1 %vm5663_vm0, %v5664_v1 }
 0xbc5   :  { %4981 = vmatprep.subr.bf16.mxu1 %v5662_v0 }
 0xbc8   :  { %4983 = vmatpush3.bf16.msra.mxu1 %v5907_v12 }
 0xc96   :  { %v775_v36 = vpop.f32.mrb[4].mxu1 }
 0xc97   :  { %v779_v37 = vadd.f32 %v775_v36, %v5927_v15  ;;  %v4591_v38 = vpop.f32.mrb[5].mxu1 }
 0xc99   :  { %5215 = vtanh.f32 %v779_v37  ;;  %v4272_v40 = vmul.f32 -1.442695, %v779_v37 }
 0xc9b   :  { %5217 = vpow2.f32 %v4272_v40 }
 0xca3   :  { %v5216_v39 = vpop.eup %5215 }
 0xca4   :  { %792 = vrot.lane.b32.xlu0 %v5216_v39, %s5665_s3 }
 0xca5   :  { %v5218_v41 = vpop.eup %5217 }
 0xca6   :  { %v783_v42 = vadd.f32 1.0, %v5218_v41 }
 0xca8   :  { %5219 = vrcp.f32 %v783_v42 }
 0xcb2   :  { %v5220_v43 = vpop.eup %5219 }
 0xcb3   :  { %v790_v47 = vmul.f32 %v5220_v43, %v788_v46 }
 0xd16   :  { %v793_v44 = vpop.permute.xlu0 %792 }
 0xd17   :  { %v795_v45 = vmul.f32 %v5220_v43, %v793_v44 }
 0xd19   :  { %797 = vrot.lane.b32.xlu1 %v795_v45, %s5665_s3 }
 0xd8b   :  { %v798_v48 = vpop.permute.xlu1 %797 }
 0xd8c   :  { %v800_v49 = vadd.f32 %v798_v48, %v790_v47 }
 0xd8e   :  { %5221 = vtanh.f32 %v800_v49 }
 0xd98   :  { %v5222_v50 = vpop.eup %5221 }
 0xd99   :  { %803 = vrot.lane.b32.xlu0 %v5222_v50, %s5665_s3 }
 0xe0b   :  { %v804_v51 = vpop.permute.xlu0 %803 }
 0xe0c   :  { %v806_v53 = vmul.f32 %v5220_v43, %v804_v51 }
 0xe0e   :  { %808 = vrot.lane.b32.xlu1 %v806_v53, %s5666_s7 }
 0xe80   :  { %v809_v54 = vpop.permute.xlu1 %808 }
 0xe81   :  { %811 = vst.msk [vmem:[#allocation2 + $0x8] sm:$0x3] %vm369_vm2, %v809_v54  ;;  %4601 = vmatmul.mubr.msk.f32.vlgmr.msra.gmra.mrb[6].mxu0 %vm266_vm3, %v809_v54  ;;  %v1145_v54 = vld [vmem:[%s6541_s5 + $0x8] sm:$0xff] }
 0xe82   :  { %4986 = vmatpush3.bf16.msra.mxu0 %v5894_v8  ;;  %4622 = vmatprep.mubr.msk.f32.mxu0 %vm5663_vm0, %v5664_v1 }
 0xe83   :  { %4987 = vmatprep.subr.bf16.mxu0 %v5662_v0 }
 0xe86   :  { %4989 = vmatpush3.bf16.msra.mxu0 %v5907_v12  ;;  %v896_v12 = vrot.slane %v800_v49, 6 }
 0xe87   :  { %4998 = vmatprep.subr.bf16.mxu0 %v5662_v0 }
 0xf54   :  { %v880_v55 = vpop.f32.mrb[6].mxu0 }
 0xf55   :  { %v885_v56 = vrot.slane %v880_v55, 6  ;;  %v4602_v57 = vpop.f32.mrb[7].mxu0 }
 0xf56   :  { %v1146_v57 = vld [vmem:[%s6541_s5 + $0x10] sm:$0xff] }
 0xf57   :  { %v887_v58 = vadd.f32 %v885_v56, %v5927_v15  ;;  %v1148_v56 = vld [vmem:[%s6542_s6] sm:$0xff] }
 0xf59   :  { %5223 = vtanh.f32 %v887_v58  ;;  %v4274_v60 = vmul.f32 -1.442695, %v887_v58 }
 0xf5b   :  { %5225 = vpow2.f32 %v4274_v60  ;;  %v1150_v60 = vld [vmem:[%s6542_s6 + $0x10] sm:$0xff] }
 0xf63   :  { %v5224_v59 = vpop.eup %5223 }
 0xf64   :  { %900 = vrot.lane.b32.xlu0 %v5224_v59, %s5665_s3  ;;  %v1147_v59 = vld [vmem:[%s6541_s5 + $0x18] sm:$0xff] }
 0xf65   :  { %v5226_v8 = vpop.eup %5225 }
 0xf66   :  { %v891_v61 = vadd.f32 1.0, %v5226_v8  ;;  %v1151_v8 = vld [vmem:[%s6542_s6 + $0x18] sm:$0xff] }
 0xf68   :  { %5227 = vrcp.f32 %v891_v61  ;;  %v4994_v61 = vpack.c.bf16 %v1147_v59, %v1146_v57 }
 0xf72   :  { %v5228_v62 = vpop.eup %5227 }
 0xf73   :  { %v898_v3 = vmul.f32 %v5228_v62, %v896_v12 }
 0xfd6   :  { %v901_v63 = vpop.permute.xlu0 %900 }
 0xfd7   :  { %v903_v2 = vmul.f32 %v5228_v62, %v901_v63 }
 0xfd9   :  { %905 = vrot.lane.b32.xlu1 %v903_v2, %s5665_s3 }
0x104b   :  { %v906_v4 = vpop.permute.xlu1 %905 }
0x104c   :  { %v908_v5 = vadd.f32 %v906_v4, %v898_v3 }
0x104e   :  { %5229 = vtanh.f32 %v908_v5  ;;  %v1007_v27 = vrot.slane %v908_v5, 6 }
0x1058   :  { %v5230_v6 = vpop.eup %5229 }
0x1059   :  { %911 = vrot.lane.b32.xlu0 %v5230_v6, %s5665_s3 }
0x10cb   :  { %v912_v7 = vpop.permute.xlu0 %911 }
0x10cc   :  { %v6005_v9 = vmul.f32 %v5228_v62, %v912_v7  ;;  %v6061_v62 = vpack.c.bf16 %v1151_v8, %v1150_v60 }
0x10ce   :  { %v920_v10 = vrot.slane %v6005_v9, 2 }
0x10d0   :  { %921 = vrot.lane.b32.xlu1 %v920_v10, %s5666_s7  ;;  %v4279_v10 = vld [vmem:[#allocation8] ss:$0 sm:$0xff] }
0x1142   :  { %v922_v13 = vpop.permute.xlu1 %921 }
0x1143   :  { %4612 = vmatmul.mubr.msk.f32.vlgmr.msra.gmra.mrb[6].mxu1 %vm266_vm3, %v922_v13 }
0x1216   :  { %v991_v14 = vpop.f32.mrb[6].mxu1 }
0x1217   :  { %v996_v16 = vrot.slane %v991_v14, 4  ;;  %v4613_v18 = vpop.f32.mrb[7].mxu1 }
0x1219   :  { %v998_v19 = vadd.f32 %v996_v16, %v5927_v15 }
0x121b   :  { %5231 = vtanh.f32 %v998_v19  ;;  %v4276_v21 = vmul.f32 -1.442695, %v998_v19 }
0x121d   :  { %5233 = vpow2.f32 %v4276_v21 }
0x1225   :  { %v5232_v20 = vpop.eup %5231 }
0x1226   :  { %1011 = vrot.lane.b32.xlu0 %v5232_v20, %s5665_s3 }
0x1227   :  { %v5234_v22 = vpop.eup %5233 }
0x1228   :  { %v1002_v23 = vadd.f32 1.0, %v5234_v22 }
0x122a   :  { %5235 = vrcp.f32 %v1002_v23 }
0x1234   :  { %v5236_v24 = vpop.eup %5235 }
0x1235   :  { %v1009_v28 = vmul.f32 %v5236_v24, %v1007_v27 }
0x1298   :  { %v1012_v25 = vpop.permute.xlu0 %1011 }
0x1299   :  { %v1014_v26 = vmul.f32 %v5236_v24, %v1012_v25 }
0x129b   :  { %1016 = vrot.lane.b32.xlu1 %v1014_v26, %s5665_s3 }
0x130d   :  { %v1017_v29 = vpop.permute.xlu1 %1016 }
0x130e   :  { %v1019_v30 = vadd.f32 %v1017_v29, %v1009_v28 }
0x1310   :  { %5237 = vtanh.f32 %v1019_v30 }
0x131a   :  { %v5238_v31 = vpop.eup %5237 }
0x131b   :  { %1022 = vrot.lane.b32.xlu0 %v5238_v31, %s5665_s3 }
0x138d   :  { %v1023_v17 = vpop.permute.xlu0 %1022 }
0x138e   :  { %v1025_v32 = vmul.f32 %v5236_v24, %v1023_v17 }
0x1390   :  { %v1031_v34 = vrot.slane %v1025_v32, 4 }
0x1392   :  { %1032 = vrot.lane.b32.xlu1 %v1031_v34, %s5666_s7 }
0x1404   :  { %v1033_v35 = vpop.permute.xlu1 %1032 }
0x1405   :  { %4623 = vmatmul.mubr.msk.f32.vlgmr.msra.gmra.mrb[8].mxu0 %vm266_vm3, %v1033_v35 }
0x1406   :  { %4644 = vmatprep.mubr.msk.f32.mxu0 %vm5663_vm0, %v5664_v1 }
0x14d8   :  { %v1102_v36 = vpop.f32.mrb[8].mxu0 }
0x14d9   :  { %v1107_v37 = vrot.slane %v1102_v36, 2  ;;  %v4624_v38 = vpop.f32.mrb[9].mxu0 }
0x14db   :  { %v1109_v39 = vadd.f32 %v1107_v37, %v5927_v15  ;;  %v1118_v15 = vrot.slane %v1019_v30, 6 }
0x14dd   :  { %5239 = vtanh.f32 %v1109_v39  ;;  %v4278_v41 = vmul.f32 -1.442695, %v1109_v39 }
0x14df   :  { %5241 = vpow2.f32 %v4278_v41 }
0x14e7   :  { %v5240_v40 = vpop.eup %5239 }
0x14e8   :  { %1122 = vrot.lane.b32.xlu0 %v5240_v40, %s5665_s3 }
0x14e9   :  { %v5242_v42 = vpop.eup %5241 }
0x14ea   :  { %v1113_v43 = vadd.f32 1.0, %v5242_v42 }
0x14ec   :  { %5243 = vrcp.f32 %v1113_v43 }
0x14f6   :  { %v5244_v44 = vpop.eup %5243 }
0x14f7   :  { %v1120_v47 = vmul.f32 %v5244_v44, %v1118_v15 }
0x155a   :  { %v1123_v45 = vpop.permute.xlu0 %1122 }
0x155b   :  { %v1125_v46 = vmul.f32 %v5244_v44, %v1123_v45 }
0x155d   :  { %1127 = vrot.lane.b32.xlu1 %v1125_v46, %s5665_s3 }
0x1561   :  { %475 = vrot.lane.b32.xlu1 %v5948_v52, %s5666_s7 }
0x1565   :  { %699 = vrot.lane.b32.xlu1 %v5978_v33, %s5666_s7  ;;  %v1144_v33 = vld [vmem:[%s6541_s5] sm:$0xff] }
0x1566   :  { %v4990_v55 = vpack.c.bf16 %v1145_v54, %v1144_v33 }
0x1568   :  { %4991 = vmatprep.subr.bf16.mxu1 %v4990_v55 }
0x1569   :  { %1027 = vrot.lane.b32.xlu1 %v1025_v32, %s5666_s7  ;;  %4993 = vmatpush3.bf16.msra.mxu1 %v4990_v55 }
0x156a   :  { %4995 = vmatprep.subr.bf16.mxu1 %v4994_v61 }
0x156d   :  { %4997 = vmatpush3.bf16.msra.mxu1 %v4994_v61 }
0x156e   :  { %5004 = vmatprep.subr.bf16.mxu1 %v5662_v0 }
0x15cf   :  { %v1128_v48 = vpop.permute.xlu1 %1127 }
0x15d0   :  { %v1130_v49 = vadd.f32 %v1128_v48, %v1120_v47 }
0x15d2   :  { %5245 = vtanh.f32 %v1130_v49 }
0x15d3   :  { %v476_v50 = vpop.permute.xlu1 %475 }
0x15d4   :  { %479 = vst.msk [vmem:[#allocation2] sm:$0xc] %vm478_vm4, %v476_v50 }
0x15d7   :  { %v700_v51 = vpop.permute.xlu1 %699 }
0x15d8   :  { %703 = vst.msk [vmem:[#allocation2] sm:$0xc0] %vm702_vm5, %v700_v51 }
0x15db   :  { %v1028_v52 = vpop.permute.xlu1 %1027 }
0x15dc   :  { %v5246_v53 = vpop.eup %5245  ;;  %1030 = vst.msk [vmem:[#allocation2 + $0x8] sm:$0x30] %vm590_vm6, %v1028_v52 }
0x15dd   :  { %1133 = vrot.lane.b32.xlu0 %v5246_v53, %s5665_s3 }
0x15e1   :  { %587 = vrot.lane.b32.xlu0 %v5963_v11, %s5666_s7  ;;  %v1149_v11 = vld [vmem:[%s6542_s6 + $0x8] sm:$0xff] }
0x15e2   :  { %v6049_v58 = vpack.c.bf16 %v1149_v11, %v1148_v56 }
0x15e4   :  { %5000 = vmatpush3.bf16.msra.mxu0 %v6049_v58 }
0x15e5   :  { %916 = vrot.lane.b32.xlu0 %v6005_v9, %s5666_s7  ;;  %5001 = vmatprep.subr.bf16.mxu0 %v5662_v0 }
0x15e8   :  { %5003 = vmatpush3.bf16.msra.mxu0 %v6061_v62 }
0x15e9   :  { %5010 = vmatprep.subr.bf16.mxu0 %v5662_v0 }
0x15eb   :  { %4645 = vmatmul.mubr.f32.vlgmr.msra.gmra.mrb[10].mxu0 %v5664_v1 }
0x15ec   :  { %5012 = vmatpush3.bf16.msra.mxu0 %v6049_v58  ;;  %4666 = vmatprep.mubr.msk.f32.mxu0 %vm5663_vm0, %v5664_v1 }
0x15ed   :  { %5013 = vmatprep.subr.bf16.mxu0 %v5662_v0 }
0x15f0   :  { %5015 = vmatpush3.bf16.msra.mxu0 %v6061_v62 }
0x15f1   :  { %5022 = vmatprep.subr.bf16.mxu0 %v5662_v0 }
0x164f   :  { %v1134_v63 = vpop.permute.xlu0 %1133 }
0x1650   :  { %v1136_v2 = vmul.f32 %v5244_v44, %v1134_v63 }
0x1652   :  { %1138 = vrot.lane.b32.xlu0 %v1136_v2, %s5666_s7 }
0x1653   :  { %v588_v12 = vpop.permute.xlu0 %587 }
0x1654   :  { %591 = vst.msk [vmem:[#allocation2] sm:$0x30] %vm590_vm6, %v588_v12 }
0x1657   :  { %v917_v3 = vpop.permute.xlu0 %916 }
0x1658   :  { %919 = vst.msk [vmem:[#allocation2 + $0x8] sm:$0xc] %vm478_vm4, %v917_v3 }
0x165b   :  { %v1142_v4 = vld [vmem:[#allocation2] sm:$0xff] }
0x165c   :  { %4633 = vmatprep.mubr.msk.f32.mxu1 %vm266_vm3, %v1142_v4 }
0x16be   :  { %v1306_v7 = vpop.f32.mrb[10].mxu0 }
0x16bf   :  { %v4646_v9 = vpop.f32.mrb[11].mxu0 }
0x16c4   :  { %v1139_v5 = vpop.permute.xlu0 %1138 }
0x16c5   :  { %1141 = vst.msk [vmem:[#allocation2 + $0x8] sm:$0xc0] %vm702_vm5, %v1139_v5 }
0x16cc   :  { %v1143_v6 = vld [vmem:[#allocation2 + $0x8] sm:$0xff] }
0x16cd   :  { %4634 = vmatmul.mubr.msk.f32.vlgmr.msra.gmra.mrb[8].mxu1 %vm266_vm3, %v1143_v6 }
0x16ce   :  { %5006 = vmatpush3.bf16.msra.mxu1 %v6049_v58  ;;  %4655 = vmatprep.mubr.msk.f32.mxu1 %vm5663_vm0, %v5664_v1 }
0x16cf   :  { %5007 = vmatprep.subr.bf16.mxu1 %v5662_v0 }
0x16d2   :  { %5009 = vmatpush3.bf16.msra.mxu1 %v6061_v62 }
0x16d3   :  { %5016 = vmatprep.subr.bf16.mxu1 %v5662_v0 }
0x17a0   :  { %v4635_v13 = vpop.f32.mrb[8].mxu1 }
0x17a1   :  { %v6086_v14 = vadd.f32 %v4635_v13, %v4279_v10  ;;  %v1231_v16 = vpop.f32.mrb[9].mxu1 }
0x17a2   :  { %v6088_v18 = vadd.f32 %v4279_v10, %v1231_v16 }
0x17a4   :  { %v1310_v19 = vadd.f32 %v1306_v7, %v6088_v18 }
0x17a6   :  { %5247 = vtanh.f32 %v1310_v19  ;;  %v4282_v21 = vmul.f32 -1.442695, %v1310_v19 }
0x17a8   :  { %5249 = vpow2.f32 %v4282_v21 }
0x17b0   :  { %v5248_v20 = vpop.eup %5247 }
0x17b1   :  { %1320 = vrot.lane.b32.xlu1 %v5248_v20, %s5665_s3 }
0x17b2   :  { %v5250_v22 = vpop.eup %5249 }
0x17b3   :  { %v1314_v23 = vadd.f32 1.0, %v5250_v22 }
0x17b5   :  { %5251 = vrcp.f32 %v1314_v23 }
0x17bf   :  { %v5252_v24 = vpop.eup %5251 }
0x17c0   :  { %v1318_v27 = vmul.f32 0.0, %v5252_v24 }
0x1823   :  { %v1321_v25 = vpop.permute.xlu1 %1320 }
0x1824   :  { %v1323_v26 = vmul.f32 %v5252_v24, %v1321_v25 }
0x1826   :  { %1325 = vrot.lane.b32.xlu0 %v1323_v26, %s5665_s3 }
0x1898   :  { %v1326_v28 = vpop.permute.xlu0 %1325 }
0x1899   :  { %v1328_v29 = vadd.f32 %v1326_v28, %v1318_v27 }
0x189b   :  { %5253 = vtanh.f32 %v1328_v29  ;;  %v1424_v45 = vrot.slane %v1328_v29, 6 }
0x18a5   :  { %v5254_v30 = vpop.eup %5253 }
0x18a6   :  { %1331 = vrot.lane.b32.xlu1 %v5254_v30, %s5665_s3 }
0x1918   :  { %v1332_v31 = vpop.permute.xlu1 %1331 }
0x1919   :  { %v1334_v17 = vmul.f32 %v5252_v24, %v1332_v31 }
0x191b   :  { %1336 = vrot.lane.b32.xlu0 %v1334_v17, %s5666_s7 }
0x198d   :  { %v1337_v32 = vpop.permute.xlu0 %1336 }
0x198e   :  { %1339 = vst.msk [vmem:[#allocation3] sm:$0x3] %vm369_vm2, %v1337_v32  ;;  %4656 = vmatmul.mubr.msk.f32.vlgmr.msra.gmra.mrb[10].mxu1 %vm266_vm3, %v1337_v32 }
0x198f   :  { %5018 = vmatpush3.bf16.msra.mxu1 %v6049_v58  ;;  %4677 = vmatprep.mubr.msk.f32.mxu1 %vm5663_vm0, %v5664_v1 }
0x1990   :  { %5019 = vmatprep.subr.bf16.mxu1 %v5662_v0 }
0x1993   :  { %5021 = vmatpush3.bf16.msra.mxu1 %v6061_v62 }
0x1994   :  { %5028 = vmatprep.subr.bf16.mxu1 %v5662_v0 }
0x1a61   :  { %v1408_v34 = vpop.f32.mrb[10].mxu1 }
0x1a62   :  { %v1413_v35 = vrot.slane %v1408_v34, 6  ;;  %v4657_v36 = vpop.f32.mrb[11].mxu1 }
0x1a64   :  { %v1415_v37 = vadd.f32 %v1413_v35, %v6088_v18 }
0x1a66   :  { %5255 = vtanh.f32 %v1415_v37  ;;  %v4284_v39 = vmul.f32 -1.442695, %v1415_v37 }
0x1a68   :  { %5257 = vpow2.f32 %v4284_v39 }
0x1a70   :  { %v5256_v38 = vpop.eup %5255 }
0x1a71   :  { %1428 = vrot.lane.b32.xlu1 %v5256_v38, %s5665_s3 }
0x1a72   :  { %v5258_v40 = vpop.eup %5257 }
0x1a73   :  { %v1419_v41 = vadd.f32 1.0, %v5258_v40 }
0x1a75   :  { %5259 = vrcp.f32 %v1419_v41 }
0x1a7f   :  { %v5260_v42 = vpop.eup %5259 }
0x1a80   :  { %v1426_v46 = vmul.f32 %v5260_v42, %v1424_v45 }
0x1ae3   :  { %v1429_v43 = vpop.permute.xlu1 %1428 }
0x1ae4   :  { %v1431_v44 = vmul.f32 %v5260_v42, %v1429_v43 }
0x1ae6   :  { %1433 = vrot.lane.b32.xlu0 %v1431_v44, %s5665_s3 }
0x1b58   :  { %v1434_v15 = vpop.permute.xlu0 %1433 }
0x1b59   :  { %v1436_v47 = vadd.f32 %v1434_v15, %v1426_v46 }
0x1b5b   :  { %5261 = vtanh.f32 %v1436_v47  ;;  %v1535_v63 = vrot.slane %v1436_v47, 6 }
0x1b65   :  { %v5262_v48 = vpop.eup %5261 }
0x1b66   :  { %1439 = vrot.lane.b32.xlu1 %v5262_v48, %s5665_s3 }
0x1bd8   :  { %v1440_v49 = vpop.permute.xlu1 %1439 }
0x1bd9   :  { %v6107_v50 = vmul.f32 %v5260_v42, %v1440_v49 }
0x1bdb   :  { %v1448_v51 = vrot.slane %v6107_v50, 2 }
0x1bdd   :  { %1449 = vrot.lane.b32.xlu0 %v1448_v51, %s5666_s7 }
0x1c4f   :  { %v1450_v52 = vpop.permute.xlu0 %1449 }
0x1c50   :  { %4667 = vmatmul.mubr.msk.f32.vlgmr.msra.gmra.mrb[12].mxu0 %vm266_vm3, %v1450_v52 }
0x1c51   :  { %5024 = vmatpush3.bf16.msra.mxu0 %v6049_v58  ;;  %4688 = vmatprep.mubr.msk.f32.mxu0 %vm5663_vm0, %v5664_v1 }
0x1c52   :  { %5025 = vmatprep.subr.bf16.mxu0 %v5662_v0 }
0x1c55   :  { %5027 = vmatpush3.bf16.msra.mxu0 %v6061_v62 }
0x1c56   :  { %5034 = vmatprep.subr.bf16.mxu0 %v5662_v0 }
0x1d23   :  { %v1519_v53 = vpop.f32.mrb[12].mxu0 }
0x1d24   :  { %v1524_v33 = vrot.slane %v1519_v53, 4  ;;  %v4668_v54 = vpop.f32.mrb[13].mxu0 }
0x1d26   :  { %v1526_v55 = vadd.f32 %v1524_v33, %v6088_v18 }
0x1d28   :  { %5263 = vtanh.f32 %v1526_v55  ;;  %v4286_v11 = vmul.f32 -1.442695, %v1526_v55 }
0x1d2a   :  { %5265 = vpow2.f32 %v4286_v11 }
0x1d32   :  { %v5264_v56 = vpop.eup %5263 }
0x1d33   :  { %1539 = vrot.lane.b32.xlu1 %v5264_v56, %s5665_s3 }
0x1d34   :  { %v5266_v57 = vpop.eup %5265 }
0x1d35   :  { %v1530_v59 = vadd.f32 1.0, %v5266_v57 }
0x1d37   :  { %5267 = vrcp.f32 %v1530_v59 }
0x1d41   :  { %v5268_v60 = vpop.eup %5267 }
0x1d42   :  { %v1537_v2 = vmul.f32 %v5268_v60, %v1535_v63 }
0x1da5   :  { %v1540_v8 = vpop.permute.xlu1 %1539 }
0x1da6   :  { %v1542_v61 = vmul.f32 %v5268_v60, %v1540_v8 }
0x1da8   :  { %1544 = vrot.lane.b32.xlu0 %v1542_v61, %s5665_s3 }
0x1e1a   :  { %v1545_v12 = vpop.permute.xlu0 %1544 }
0x1e1b   :  { %v1547_v3 = vadd.f32 %v1545_v12, %v1537_v2 }
0x1e1d   :  { %5269 = vtanh.f32 %v1547_v3  ;;  %v1646_v27 = vrot.slane %v1547_v3, 6 }
0x1e27   :  { %v5270_v4 = vpop.eup %5269 }
0x1e28   :  { %1550 = vrot.lane.b32.xlu1 %v5270_v4, %s5665_s3 }
0x1e9a   :  { %v1551_v5 = vpop.permute.xlu1 %1550 }
0x1e9b   :  { %v6122_v6 = vmul.f32 %v5268_v60, %v1551_v5 }
0x1e9d   :  { %v1559_v7 = vrot.slane %v6122_v6, 4 }
0x1e9f   :  { %1560 = vrot.lane.b32.xlu0 %v1559_v7, %s5666_s7 }
0x1f11   :  { %v1561_v9 = vpop.permute.xlu0 %1560 }
0x1f12   :  { %4678 = vmatmul.mubr.msk.f32.vlgmr.msra.gmra.mrb[12].mxu1 %vm266_vm3, %v1561_v9 }
0x1f13   :  { %5030 = vmatpush3.bf16.msra.mxu1 %v6049_v58  ;;  %4699 = vmatprep.mubr.msk.f32.mxu1 %vm5663_vm0, %v5664_v1 }
0x1f14   :  { %5031 = vmatprep.subr.bf16.mxu1 %v5662_v0 }
0x1f17   :  { %5033 = vmatpush3.bf16.msra.mxu1 %v6061_v62 }
0x1f18   :  { %5040 = vmatprep.subr.bf16.mxu1 %v5662_v0 }
0x1fe5   :  { %v1630_v10 = vpop.f32.mrb[12].mxu1 }
0x1fe6   :  { %v1635_v13 = vrot.slane %v1630_v10, 2  ;;  %v4679_v16 = vpop.f32.mrb[13].mxu1 }
0x1fe8   :  { %v1637_v19 = vadd.f32 %v1635_v13, %v6088_v18 }
0x1fea   :  { %5271 = vtanh.f32 %v1637_v19  ;;  %v4288_v21 = vmul.f32 -1.442695, %v1637_v19 }
0x1fec   :  { %5273 = vpow2.f32 %v4288_v21 }
0x1ff4   :  { %v5272_v20 = vpop.eup %5271 }
0x1ff5   :  { %1650 = vrot.lane.b32.xlu1 %v5272_v20, %s5665_s3 }
0x1ff6   :  { %v5274_v22 = vpop.eup %5273 }
0x1ff7   :  { %v1641_v23 = vadd.f32 1.0, %v5274_v22 }
0x1ff9   :  { %5275 = vrcp.f32 %v1641_v23 }
0x2003   :  { %v5276_v24 = vpop.eup %5275 }
0x2004   :  { %v1648_v28 = vmul.f32 %v5276_v24, %v1646_v27 }
0x2067   :  { %v1651_v25 = vpop.permute.xlu1 %1650 }
0x2068   :  { %v1653_v26 = vmul.f32 %v5276_v24, %v1651_v25 }
0x206a   :  { %1655 = vrot.lane.b32.xlu0 %v1653_v26, %s5665_s3 }
0x20dc   :  { %v1656_v29 = vpop.permute.xlu0 %1655 }
0x20dd   :  { %v1658_v30 = vadd.f32 %v1656_v29, %v1648_v28 }
0x20df   :  { %5277 = vtanh.f32 %v1658_v30  ;;  %v1754_v45 = vrot.slane %v1658_v30, 6 }
0x20e9   :  { %v5278_v18 = vpop.eup %5277 }
0x20ea   :  { %1661 = vrot.lane.b32.xlu1 %v5278_v18, %s5665_s3 }
0x215c   :  { %v1662_v31 = vpop.permute.xlu1 %1661 }
0x215d   :  { %v6137_v17 = vmul.f32 %v5276_v24, %v1662_v31 }
0x215f   :  { %v1670_v32 = vrot.slane %v6137_v17, 6 }
0x2161   :  { %1671 = vrot.lane.b32.xlu0 %v1670_v32, %s5666_s7 }
0x21d3   :  { %v1672_v34 = vpop.permute.xlu0 %1671 }
0x21d4   :  { %4689 = vmatmul.mubr.msk.f32.vlgmr.msra.gmra.mrb[14].mxu0 %vm266_vm3, %v1672_v34 }
0x21d5   :  { %5036 = vmatpush3.bf16.msra.mxu0 %v6049_v58  ;;  %4710 = vmatprep.mubr.msk.f32.mxu0 %vm5663_vm0, %v5664_v1 }
0x21d6   :  { %5037 = vmatprep.subr.bf16.mxu0 %v5662_v0 }
0x21d9   :  { %5039 = vmatpush3.bf16.msra.mxu0 %v6061_v62 }
0x22a7   :  { %v1741_v35 = vpop.f32.mrb[14].mxu0 }
0x22a8   :  { %v1745_v36 = vadd.f32 %v1741_v35, %v6086_v14  ;;  %v4690_v37 = vpop.f32.mrb[15].mxu0 }
0x22aa   :  { %5279 = vtanh.f32 %v1745_v36  ;;  %v4290_v39 = vmul.f32 -1.442695, %v1745_v36 }
0x22ac   :  { %5281 = vpow2.f32 %v4290_v39 }
0x22b4   :  { %v5280_v38 = vpop.eup %5279 }
0x22b5   :  { %1758 = vrot.lane.b32.xlu1 %v5280_v38, %s5665_s3 }
0x22b6   :  { %v5282_v40 = vpop.eup %5281 }
0x22b7   :  { %v1749_v41 = vadd.f32 1.0, %v5282_v40 }
0x22b9   :  { %5283 = vrcp.f32 %v1749_v41 }
0x22c3   :  { %v5284_v42 = vpop.eup %5283 }
0x22c4   :  { %v1756_v46 = vmul.f32 %v5284_v42, %v1754_v45 }
0x2327   :  { %v1759_v43 = vpop.permute.xlu1 %1758 }
0x2328   :  { %v1761_v44 = vmul.f32 %v5284_v42, %v1759_v43 }
0x232a   :  { %1763 = vrot.lane.b32.xlu0 %v1761_v44, %s5665_s3 }
0x239c   :  { %v1764_v15 = vpop.permute.xlu0 %1763 }
0x239d   :  { %v1766_v47 = vadd.f32 %v1764_v15, %v1756_v46 }
0x239f   :  { %5285 = vtanh.f32 %v1766_v47 }
0x23a9   :  { %v5286_v48 = vpop.eup %5285 }
0x23aa   :  { %1769 = vrot.lane.b32.xlu1 %v5286_v48, %s5665_s3 }
0x241c   :  { %v1770_v49 = vpop.permute.xlu1 %1769 }
0x241d   :  { %v1772_v51 = vmul.f32 %v5284_v42, %v1770_v49 }
0x241f   :  { %1774 = vrot.lane.b32.xlu0 %v1772_v51, %s5666_s7 }
0x2491   :  { %v1775_v52 = vpop.permute.xlu0 %1774 }
0x2492   :  { %1777 = vst.msk [vmem:[#allocation3 + $0x8] sm:$0x3] %vm369_vm2, %v1775_v52  ;;  %4700 = vmatmul.mubr.msk.f32.vlgmr.msra.gmra.mrb[14].mxu1 %vm266_vm3, %v1775_v52 }
0x2493   :  { %5042 = vmatpush3.bf16.msra.mxu1 %v6049_v58  ;;  %4721 = vmatprep.mubr.msk.f32.mxu1 %vm5663_vm0, %v5664_v1 }
0x2494   :  { %5043 = vmatprep.subr.bf16.mxu1 %v5662_v0 }
0x2497   :  { %5045 = vmatpush3.bf16.msra.mxu1 %v6061_v62  ;;  %v1862_v62 = vrot.slane %v1766_v47, 6 }
0x2565   :  { %v1846_v53 = vpop.f32.mrb[14].mxu1 }
0x2566   :  { %v1851_v33 = vrot.slane %v1846_v53, 6  ;;  %v4701_v54 = vpop.f32.mrb[15].mxu1 }
0x2568   :  { %v1853_v55 = vadd.f32 %v1851_v33, %v6086_v14  ;;  %v2112_v33 = vld [vmem:[%s6544_s8 + $0x10] sm:$0xff] }
0x256a   :  { %5287 = vtanh.f32 %v1853_v55  ;;  %v4292_v11 = vmul.f32 -1.442695, %v1853_v55 }
0x256c   :  { %5289 = vpow2.f32 %v4292_v11 }
0x2574   :  { %v5288_v56 = vpop.eup %5287 }
0x2575   :  { %1866 = vrot.lane.b32.xlu1 %v5288_v56, %s5665_s3 }
0x2576   :  { %v5290_v57 = vpop.eup %5289 }
0x2577   :  { %v1857_v58 = vadd.f32 1.0, %v5290_v57 }
0x2579   :  { %5291 = vrcp.f32 %v1857_v58 }
0x2583   :  { %v5292_v59 = vpop.eup %5291 }
0x2584   :  { %v1864_v61 = vmul.f32 %v5292_v59, %v1862_v62 }
0x25e7   :  { %v1867_v60 = vpop.permute.xlu1 %1866 }
0x25e8   :  { %v1869_v8 = vmul.f32 %v5292_v59, %v1867_v60 }
0x25ea   :  { %1871 = vrot.lane.b32.xlu0 %v1869_v8, %s5665_s3  ;;  %v4297_v8 = vld [vmem:[#allocation9] ss:$0 sm:$0xff] }
0x265c   :  { %v1872_v63 = vpop.permute.xlu0 %1871 }
0x265d   :  { %v1874_v2 = vadd.f32 %v1872_v63, %v1864_v61 }
0x265f   :  { %5293 = vtanh.f32 %v1874_v2  ;;  %v1973_v26 = vrot.slane %v1874_v2, 6 }
0x2669   :  { %v5294_v12 = vpop.eup %5293 }
0x266a   :  { %1877 = vrot.lane.b32.xlu1 %v5294_v12, %s5665_s3 }
0x26dc   :  { %v1878_v3 = vpop.permute.xlu1 %1877 }
0x26dd   :  { %v6163_v4 = vmul.f32 %v5292_v59, %v1878_v3  ;;  %v2223_v3 = vld [vmem:[%s6547_s11] sm:$0xff] }
0x26df   :  { %v1886_v5 = vrot.slane %v6163_v4, 2 }
0x26e1   :  { %1887 = vrot.lane.b32.xlu0 %v1886_v5, %s5666_s7 }
0x2753   :  { %v1888_v7 = vpop.permute.xlu0 %1887 }
0x2754   :  { %4711 = vmatmul.mubr.msk.f32.vlgmr.msra.gmra.mrb[16].mxu0 %vm266_vm3, %v1888_v7 }
0x2827   :  { %v1957_v9 = vpop.f32.mrb[16].mxu0 }
0x2828   :  { %v1962_v10 = vrot.slane %v1957_v9, 4  ;;  %v4712_v13 = vpop.f32.mrb[17].mxu0 }
0x2829   :  { %v2225_v13 = vld [vmem:[%s6547_s11 + $0x10] sm:$0xff] }
0x282a   :  { %v1964_v16 = vadd.f32 %v1962_v10, %v6086_v14 }
0x282c   :  { %5295 = vtanh.f32 %v1964_v16  ;;  %v4294_v20 = vmul.f32 -1.442695, %v1964_v16  ;;  %v2226_v16 = vld [vmem:[%s6547_s11 + $0x18] sm:$0xff] }
0x282e   :  { %5297 = vpow2.f32 %v4294_v20  ;;  %v6235_v20 = vpack.c.bf16 %v2226_v16, %v2225_v13 }
0x2836   :  { %v5296_v19 = vpop.eup %5295 }
0x2837   :  { %1977 = vrot.lane.b32.xlu1 %v5296_v19, %s5665_s3  ;;  %v2222_v19 = vld [vmem:[#allocation11] sm:$0xff] }
0x2838   :  { %v5298_v21 = vpop.eup %5297  ;;  %4735 = vmatprep.subr.mxu1 %v2222_v19 }
0x2839   :  { %v1968_v22 = vadd.f32 1.0, %v5298_v21 }
0x283b   :  { %5299 = vrcp.f32 %v1968_v22 }
0x2845   :  { %v5300_v23 = vpop.eup %5299 }
0x2846   :  { %v1975_v27 = vmul.f32 %v5300_v23, %v1973_v26 }
0x28a9   :  { %v1978_v24 = vpop.permute.xlu1 %1977 }
0x28aa   :  { %v1980_v25 = vmul.f32 %v5300_v23, %v1978_v24  ;;  %v2202_v24 = vld [vmem:[%s6567_s1] sm:$0xff] }
0x28ac   :  { %1982 = vrot.lane.b32.xlu0 %v1980_v25, %s5665_s3 }
0x291e   :  { %v1983_v28 = vpop.permute.xlu0 %1982 }
0x291f   :  { %v1985_v29 = vadd.f32 %v1983_v28, %v1975_v27 }
0x2921   :  { %5301 = vtanh.f32 %v1985_v29 }
0x292b   :  { %v5302_v30 = vpop.eup %5301 }
0x292c   :  { %1988 = vrot.lane.b32.xlu1 %v5302_v30, %s5665_s3 }
0x299e   :  { %v1989_v18 = vpop.permute.xlu1 %1988 }
0x299f   :  { %v1991_v31 = vmul.f32 %v5300_v23, %v1989_v18  ;;  %v2203_v23 = vld [vmem:[%s6567_s1 + $0x8] sm:$0xff] }
0x29a1   :  { %v1997_v32 = vrot.slane %v1991_v31, 4 }
0x29a3   :  { %1998 = vrot.lane.b32.xlu0 %v1997_v32, %s5666_s7  ;;  %v4300_v32 = vld [vmem:[#allocation12] ss:$0 sm:$0xff] }
0x2a15   :  { %v1999_v34 = vpop.permute.xlu0 %1998 }
0x2a16   :  { %4722 = vmatmul.mubr.msk.f32.vlgmr.msra.gmra.mrb[16].mxu1 %vm266_vm3, %v1999_v34 }
0x2a17   :  { %4736 = vmatpush3.msra.mxu1 %v2222_v19 }
0x2a18   :  { %5060 = vmatprep.subr.bf16.mxu1 %v5662_v0 }
0x2ae9   :  { %v2068_v35 = vpop.f32.mrb[16].mxu1 }
0x2aea   :  { %v2073_v36 = vrot.slane %v2068_v35, 2  ;;  %v4723_v37 = vpop.f32.mrb[17].mxu1 }
0x2aec   :  { %v2075_v38 = vadd.f32 %v2073_v36, %v6086_v14  ;;  %v2084_v14 = vrot.slane %v1985_v29, 6 }
0x2aee   :  { %5303 = vtanh.f32 %v2075_v38  ;;  %v4296_v40 = vmul.f32 -1.442695, %v2075_v38 }
0x2af0   :  { %5305 = vpow2.f32 %v4296_v40 }
0x2af8   :  { %v5304_v39 = vpop.eup %5303 }
0x2af9   :  { %2088 = vrot.lane.b32.xlu1 %v5304_v39, %s5665_s3 }
0x2afa   :  { %v5306_v41 = vpop.eup %5305 }
0x2afb   :  { %v2079_v42 = vadd.f32 1.0, %v5306_v41 }
0x2afd   :  { %5307 = vrcp.f32 %v2079_v42 }
0x2b07   :  { %v5308_v43 = vpop.eup %5307 }
0x2b08   :  { %v2086_v46 = vmul.f32 %v5308_v43, %v2084_v14 }
0x2b6b   :  { %v2089_v44 = vpop.permute.xlu1 %2088 }
0x2b6c   :  { %v2091_v45 = vmul.f32 %v5308_v43, %v2089_v44 }
0x2b6e   :  { %2093 = vrot.lane.b32.xlu0 %v2091_v45, %s5665_s3 }
0x2b72   :  { %1444 = vrot.lane.b32.xlu0 %v6107_v50, %s5666_s7  ;;  %v2110_v50 = vld [vmem:[%s6544_s8] sm:$0xff] }
0x2b76   :  { %1666 = vrot.lane.b32.xlu0 %v6137_v17, %s5666_s7  ;;  %v2111_v17 = vld [vmem:[%s6544_s8 + $0x8] sm:$0xff] }
0x2b77   :  { %v5046_v53 = vpack.c.bf16 %v2111_v17, %v2110_v50 }
0x2b79   :  { %5047 = vmatprep.subr.bf16.mxu0 %v5046_v53 }
0x2b7a   :  { %1993 = vrot.lane.b32.xlu0 %v1991_v31, %s5666_s7  ;;  %5049 = vmatpush3.bf16.msra.mxu0 %v5046_v53 }
0x2be0   :  { %v2094_v15 = vpop.permute.xlu0 %2093 }
0x2be1   :  { %v2096_v47 = vadd.f32 %v2094_v15, %v2086_v46 }
0x2be3   :  { %5309 = vtanh.f32 %v2096_v47 }
0x2be4   :  { %v1445_v48 = vpop.permute.xlu0 %1444 }
0x2be5   :  { %1447 = vst.msk [vmem:[#allocation3] sm:$0xc] %vm478_vm4, %v1445_v48 }
0x2be8   :  { %v1667_v49 = vpop.permute.xlu0 %1666 }
0x2be9   :  { %1669 = vst.msk [vmem:[#allocation3] sm:$0xc0] %vm702_vm5, %v1667_v49 }
0x2bec   :  { %v1994_v51 = vpop.permute.xlu0 %1993 }
0x2bed   :  { %v5310_v52 = vpop.eup %5309  ;;  %1996 = vst.msk [vmem:[#allocation3 + $0x8] sm:$0x30] %vm590_vm6, %v1994_v51 }
0x2bee   :  { %2099 = vrot.lane.b32.xlu1 %v5310_v52, %s5665_s3 }
0x2bf2   :  { %1555 = vrot.lane.b32.xlu1 %v6122_v6, %s5666_s7  ;;  %v2113_v6 = vld [vmem:[%s6544_s8 + $0x18] sm:$0xff] }
0x2bf3   :  { %v5050_v54 = vpack.c.bf16 %v2113_v6, %v2112_v33 }
0x2bf5   :  { %5051 = vmatprep.subr.bf16.mxu0 %v5050_v54 }
0x2bf6   :  { %1882 = vrot.lane.b32.xlu1 %v6163_v4, %s5666_s7  ;;  %5053 = vmatpush3.bf16.msra.mxu0 %v5050_v54  ;;  %v2224_v4 = vld [vmem:[%s6547_s11 + $0x8] sm:$0xff]  ;;  %s5667_s11 = smov 120  }
0x2bf7   :  { %5054 = vmatprep.subr.bf16.mxu0 %v5662_v0  ;;  %v6225_v7 = vpack.c.bf16 %v2224_v4, %v2223_v3 }
0x2c60   :  { %v2100_v55 = vpop.permute.xlu1 %2099 }
0x2c61   :  { %v2102_v56 = vmul.f32 %v5308_v43, %v2100_v55 }
0x2c63   :  { %2104 = vrot.lane.b32.xlu1 %v2102_v56, %s5666_s7 }
0x2c64   :  { %v1556_v11 = vpop.permute.xlu1 %1555 }
0x2c65   :  { %1558 = vst.msk [vmem:[#allocation3] sm:$0x30] %vm590_vm6, %v1556_v11 }
0x2c68   :  { %v1883_v57 = vpop.permute.xlu1 %1882 }
0x2c69   :  { %1885 = vst.msk [vmem:[#allocation3 + $0x8] sm:$0xc] %vm478_vm4, %v1883_v57 }
0x2c6c   :  { %v2108_v58 = vld [vmem:[#allocation3] sm:$0xff] }
0x2c6d   :  { %4732 = vmatprep.mubr.msk.f32.mxu0 %vm266_vm3, %v2108_v58 }
0x2cd5   :  { %v2105_v59 = vpop.permute.xlu1 %2104 }
0x2cd6   :  { %2107 = vst.msk [vmem:[#allocation3 + $0x8] sm:$0xc0] %vm702_vm5, %v2105_v59 }
0x2cdd   :  { %v2109_v60 = vld [vmem:[#allocation3 + $0x8] sm:$0xff] }
0x2cde   :  { %4733 = vmatmul.mubr.msk.f32.vlgmr.msra.gmra.mrb[18].mxu0 %vm266_vm3, %v2109_v60 }
0x2cdf   :  { %4748 = vmatprep.mubr.msk.f32.mxu0 %vm5663_vm0, %v5664_v1  ;;  %5056 = vmatpush3.bf16.msra.mxu0 %v6225_v7 }
0x2ce0   :  { %5057 = vmatprep.subr.bf16.mxu0 %v5662_v0 }
0x2ce3   :  { %5059 = vmatpush3.bf16.msra.mxu0 %v6235_v20 }
0x2ce4   :  { %5066 = vmatprep.subr.bf16.mxu0 %v5662_v0 }
0x2ce6   :  { %4749 = vmatmul.mubr.f32.vlgmr.msra.gmra.mrb[20].mxu0 %v5664_v1 }
0x2ce7   :  { %5068 = vmatpush3.bf16.msra.mxu0 %v6225_v7  ;;  %4770 = vmatprep.mubr.msk.f32.mxu0 %vm5663_vm0, %v5664_v1 }
0x2ce8   :  { %5069 = vmatprep.subr.bf16.mxu0 %v5662_v0 }
0x2ceb   :  { %5071 = vmatpush3.bf16.msra.mxu0 %v6235_v20 }
0x2cec   :  { %5078 = vmatprep.subr.bf16.mxu0 %v5662_v0 }
0x2db1   :  { %v4734_v62 = vpop.f32.mrb[18].mxu0 }
0x2db2   :  { %v2199_v61 = vadd.f32 %v4734_v62, %v4297_v8  ;;  %v2193_v63 = vpop.f32.mrb[19].mxu0 }
0x2db3   :  { %v2194_v2 = vadd.f32 %v4297_v8, %v2193_v63 }
0x2db4   :  { %v2205_v12 = vmul.f32 0.5, %v2199_v61  ;;  %4247 = vst.msk [vmem:[%s6555_s19 + $0x8] sm:$0xff] %vm184_vm1, %v2199_v61 }
0x2db5   :  { %v2204_v5 = vmul.f32 0.5, %v2194_v2  ;;  %4246 = vst.msk [vmem:[%s6555_s19] sm:$0xff] %vm184_vm1, %v2194_v2 }
0x2db6   :  { %v2208_v9 = vmul.f32 1.442695, %v2205_v12 }
0x2db7   :  { %v2206_v10 = vmul.f32 1.442695, %v2204_v5 }
0x2db8   :  { %5311 = vpow2.f32 %v2208_v9 }
0x2db9   :  { %5313 = vpow2.f32 %v2206_v10  ;;  %v2382_v18 = vpop.f32.mrb[20].mxu0 }
0x2dba   :  { %v4750_v31 = vpop.f32.mrb[21].mxu0 }
0x2dc2   :  { %v5312_v21 = vpop.eup %5311 }
0x2dc3   :  { %v5314_v22 = vpop.eup %5313  ;;  %2214 = vrot.lane.b32.xlu1 %v5312_v21, %s5667_s11 }
0x2dc4   :  { %2212 = vrot.lane.b32.xlu0 %v5314_v22, %s5667_s11 }
0x2e35   :  { %v2215_v25 = vpop.permute.xlu1 %2214 }
0x2e36   :  { %v2219_v26 = vmul.f32 %v2215_v25, %v2203_v23  ;;  %v2213_v27 = vpop.permute.xlu0 %2212 }
0x2e37   :  { %v2218_v28 = vmul.f32 %v2213_v27, %v2202_v24 }
0x2e38   :  { %v2221_v30 = vadd.f32 %v2219_v26, %v2199_v61 }
0x2e39   :  { %v2220_v29 = vadd.f32 %v2218_v28, %v2194_v2 }
0x2e3b   :  { %4737 = vmatprep.mubr.msk.f32.mxu1 %vm2234_vm7, %v2220_v29 }
0x2e3c   :  { %4738 = vmatmul.mubr.msk.f32.vlgmr.msra.gmra.mrb[18].mxu1 %vm2234_vm7, %v2221_v30 }
0x2e3d   :  { %5062 = vmatpush3.bf16.msra.mxu1 %v6225_v7  ;;  %4759 = vmatprep.mubr.msk.f32.mxu1 %vm5663_vm0, %v5664_v1 }
0x2e3e   :  { %5063 = vmatprep.subr.bf16.mxu1 %v5662_v0 }
0x2e41   :  { %5065 = vmatpush3.bf16.msra.mxu1 %v6235_v20 }
0x2e42   :  { %5072 = vmatprep.subr.bf16.mxu1 %v5662_v0 }
0x2f0f   :  { %v4739_v34 = vpop.f32.mrb[18].mxu1 }
0x2f10   :  { %v6259_v35 = vadd.f32 %v4739_v34, %v4300_v32  ;;  %v2307_v36 = vpop.f32.mrb[19].mxu1 }
0x2f11   :  { %v6261_v37 = vadd.f32 %v4300_v32, %v2307_v36 }
0x2f13   :  { %v2386_v38 = vadd.f32 %v2382_v18, %v6261_v37 }
0x2f15   :  { %5315 = vtanh.f32 %v2386_v38  ;;  %v4303_v40 = vmul.f32 -1.442695, %v2386_v38 }
0x2f17   :  { %5317 = vpow2.f32 %v4303_v40 }
0x2f1f   :  { %v5316_v39 = vpop.eup %5315 }
0x2f20   :  { %2396 = vrot.lane.b32.xlu0 %v5316_v39, %s5665_s3 }
0x2f21   :  { %v5318_v41 = vpop.eup %5317 }
0x2f22   :  { %v2390_v42 = vadd.f32 1.0, %v5318_v41 }
0x2f24   :  { %5319 = vrcp.f32 %v2390_v42 }
0x2f2e   :  { %v5320_v43 = vpop.eup %5319 }
0x2f2f   :  { %v2394_v14 = vmul.f32 0.0, %v5320_v43 }
0x2f92   :  { %v2397_v44 = vpop.permute.xlu0 %2396 }
0x2f93   :  { %v2399_v45 = vmul.f32 %v5320_v43, %v2397_v44 }
0x2f95   :  { %2401 = vrot.lane.b32.xlu1 %v2399_v45, %s5665_s3 }
0x3007   :  { %v2402_v46 = vpop.permute.xlu1 %2401 }
0x3008   :  { %v2404_v15 = vadd.f32 %v2402_v46, %v2394_v14 }
0x300a   :  { %5321 = vtanh.f32 %v2404_v15  ;;  %v2500_v58 = vrot.slane %v2404_v15, 6 }
0x3014   :  { %v5322_v47 = vpop.eup %5321 }
0x3015   :  { %2407 = vrot.lane.b32.xlu0 %v5322_v47, %s5665_s3 }
0x3087   :  { %v2408_v48 = vpop.permute.xlu0 %2407 }
0x3088   :  { %v2410_v49 = vmul.f32 %v5320_v43, %v2408_v48 }
0x308a   :  { %2412 = vrot.lane.b32.xlu1 %v2410_v49, %s5666_s7 }
0x30fc   :  { %v2413_v51 = vpop.permute.xlu1 %2412 }
0x30fd   :  { %2415 = vst.msk [vmem:[#allocation2] sm:$0x3] %vm369_vm2, %v2413_v51  ;;  %4760 = vmatmul.mubr.msk.f32.vlgmr.msra.gmra.mrb[20].mxu1 %vm266_vm3, %v2413_v51 }
0x30fe   :  { %5074 = vmatpush3.bf16.msra.mxu1 %v6225_v7  ;;  %4781 = vmatprep.mubr.msk.f32.mxu1 %vm5663_vm0, %v5664_v1 }
0x30ff   :  { %5075 = vmatprep.subr.bf16.mxu1 %v5662_v0 }
0x3102   :  { %5077 = vmatpush3.bf16.msra.mxu1 %v6235_v20 }
0x3103   :  { %5084 = vmatprep.subr.bf16.mxu1 %v5662_v0 }
0x31d0   :  { %v2484_v52 = vpop.f32.mrb[20].mxu1 }
0x31d1   :  { %v2489_v50 = vrot.slane %v2484_v52, 6  ;;  %v4761_v17 = vpop.f32.mrb[21].mxu1 }
0x31d3   :  { %v2491_v53 = vadd.f32 %v2489_v50, %v6261_v37 }
0x31d5   :  { %5323 = vtanh.f32 %v2491_v53  ;;  %v4305_v6 = vmul.f32 -1.442695, %v2491_v53 }
0x31d7   :  { %5325 = vpow2.f32 %v4305_v6 }
0x31df   :  { %v5324_v33 = vpop.eup %5323 }
0x31e0   :  { %2504 = vrot.lane.b32.xlu0 %v5324_v33, %s5665_s3 }
0x31e1   :  { %v5326_v54 = vpop.eup %5325 }
0x31e2   :  { %v2495_v55 = vadd.f32 1.0, %v5326_v54 }
0x31e4   :  { %5327 = vrcp.f32 %v2495_v55 }
0x31ee   :  { %v5328_v56 = vpop.eup %5327 }
0x31ef   :  { %v2502_v59 = vmul.f32 %v5328_v56, %v2500_v58 }
0x3252   :  { %v2505_v11 = vpop.permute.xlu0 %2504 }
0x3253   :  { %v2507_v57 = vmul.f32 %v5328_v56, %v2505_v11 }
0x3255   :  { %2509 = vrot.lane.b32.xlu1 %v2507_v57, %s5665_s3 }
0x32c7   :  { %v2510_v60 = vpop.permute.xlu1 %2509 }
0x32c8   :  { %v2512_v8 = vadd.f32 %v2510_v60, %v2502_v59 }
0x32ca   :  { %5329 = vtanh.f32 %v2512_v8  ;;  %v2611_v24 = vrot.slane %v2512_v8, 6 }
0x32d4   :  { %v5330_v62 = vpop.eup %5329 }
0x32d5   :  { %2515 = vrot.lane.b32.xlu0 %v5330_v62, %s5665_s3 }
0x3347   :  { %v2516_v61 = vpop.permute.xlu0 %2515 }
0x3348   :  { %v6280_v63 = vmul.f32 %v5328_v56, %v2516_v61 }
0x334a   :  { %v2524_v2 = vrot.slane %v6280_v63, 2 }
0x334c   :  { %2525 = vrot.lane.b32.xlu1 %v2524_v2, %s5666_s7 }
0x33be   :  { %v2526_v12 = vpop.permute.xlu1 %2525 }
0x33bf   :  { %4771 = vmatmul.mubr.msk.f32.vlgmr.msra.gmra.mrb[22].mxu0 %vm266_vm3, %v2526_v12 }
0x33c0   :  { %5080 = vmatpush3.bf16.msra.mxu0 %v6225_v7  ;;  %4792 = vmatprep.mubr.msk.f32.mxu0 %vm5663_vm0, %v5664_v1 }
0x33c1   :  { %5081 = vmatprep.subr.bf16.mxu0 %v5662_v0 }
0x33c4   :  { %5083 = vmatpush3.bf16.msra.mxu0 %v6235_v20 }
0x33c5   :  { %5090 = vmatprep.subr.bf16.mxu0 %v5662_v0 }
0x3492   :  { %v2595_v3 = vpop.f32.mrb[22].mxu0 }
0x3493   :  { %v2600_v4 = vrot.slane %v2595_v3, 4  ;;  %v4772_v5 = vpop.f32.mrb[23].mxu0 }
0x3495   :  { %v2602_v9 = vadd.f32 %v2600_v4, %v6261_v37 }
0x3497   :  { %5331 = vtanh.f32 %v2602_v9  ;;  %v4307_v13 = vmul.f32 -1.442695, %v2602_v9 }
0x3499   :  { %5333 = vpow2.f32 %v4307_v13 }
0x34a1   :  { %v5332_v10 = vpop.eup %5331 }
0x34a2   :  { %2615 = vrot.lane.b32.xlu0 %v5332_v10, %s5665_s3 }
0x34a3   :  { %v5334_v16 = vpop.eup %5333 }
0x34a4   :  { %v2606_v19 = vadd.f32 1.0, %v5334_v16 }
0x34a6   :  { %5335 = vrcp.f32 %v2606_v19 }
0x34b0   :  { %v5336_v21 = vpop.eup %5335 }
0x34b1   :  { %v2613_v25 = vmul.f32 %v5336_v21, %v2611_v24 }
0x3514   :  { %v2616_v22 = vpop.permute.xlu0 %2615 }
0x3515   :  { %v2618_v23 = vmul.f32 %v5336_v21, %v2616_v22 }
0x3517   :  { %2620 = vrot.lane.b32.xlu1 %v2618_v23, %s5665_s3 }
0x3589   :  { %v2621_v26 = vpop.permute.xlu1 %2620 }
0x358a   :  { %v2623_v27 = vadd.f32 %v2621_v26, %v2613_v25 }
0x358c   :  { %5337 = vtanh.f32 %v2623_v27  ;;  %v2722_v14 = vrot.slane %v2623_v27, 6 }
0x3596   :  { %v5338_v28 = vpop.eup %5337 }
0x3597   :  { %2626 = vrot.lane.b32.xlu0 %v5338_v28, %s5665_s3 }
0x3609   :  { %v2627_v29 = vpop.permute.xlu0 %2626 }
0x360a   :  { %v6295_v30 = vmul.f32 %v5336_v21, %v2627_v29 }
0x360c   :  { %v2635_v18 = vrot.slane %v6295_v30, 4 }
0x360e   :  { %2636 = vrot.lane.b32.xlu1 %v2635_v18, %s5666_s7 }
0x3680   :  { %v2637_v31 = vpop.permute.xlu1 %2636 }
0x3681   :  { %4782 = vmatmul.mubr.msk.f32.vlgmr.msra.gmra.mrb[22].mxu1 %vm266_vm3, %v2637_v31 }
0x3682   :  { %5086 = vmatpush3.bf16.msra.mxu1 %v6225_v7  ;;  %4803 = vmatprep.mubr.msk.f32.mxu1 %vm5663_vm0, %v5664_v1 }
0x3683   :  { %5087 = vmatprep.subr.bf16.mxu1 %v5662_v0 }
0x3686   :  { %5089 = vmatpush3.bf16.msra.mxu1 %v6235_v20 }
0x3687   :  { %5096 = vmatprep.subr.bf16.mxu1 %v5662_v0 }
0x3754   :  { %v2706_v32 = vpop.f32.mrb[22].mxu1 }
0x3755   :  { %v2711_v34 = vrot.slane %v2706_v32, 2  ;;  %v4783_v36 = vpop.f32.mrb[23].mxu1 }
0x3757   :  { %v2713_v38 = vadd.f32 %v2711_v34, %v6261_v37 }
0x3759   :  { %5339 = vtanh.f32 %v2713_v38  ;;  %v4309_v40 = vmul.f32 -1.442695, %v2713_v38 }
0x375b   :  { %5341 = vpow2.f32 %v4309_v40 }
0x3763   :  { %v5340_v39 = vpop.eup %5339 }
0x3764   :  { %2726 = vrot.lane.b32.xlu0 %v5340_v39, %s5665_s3 }
0x3765   :  { %v5342_v41 = vpop.eup %5341 }
0x3766   :  { %v2717_v42 = vadd.f32 1.0, %v5342_v41 }
0x3768   :  { %5343 = vrcp.f32 %v2717_v42 }
0x3772   :  { %v5344_v43 = vpop.eup %5343 }
0x3773   :  { %v2724_v46 = vmul.f32 %v5344_v43, %v2722_v14 }
0x37d6   :  { %v2727_v44 = vpop.permute.xlu0 %2726 }
0x37d7   :  { %v2729_v45 = vmul.f32 %v5344_v43, %v2727_v44 }
0x37d9   :  { %2731 = vrot.lane.b32.xlu1 %v2729_v45, %s5665_s3 }
0x384b   :  { %v2732_v15 = vpop.permute.xlu1 %2731 }
0x384c   :  { %v2734_v47 = vadd.f32 %v2732_v15, %v2724_v46 }
0x384e   :  { %5345 = vtanh.f32 %v2734_v47  ;;  %v2830_v58 = vrot.slane %v2734_v47, 6 }
0x3858   :  { %v5346_v37 = vpop.eup %5345 }
0x3859   :  { %2737 = vrot.lane.b32.xlu0 %v5346_v37, %s5665_s3 }
0x38cb   :  { %v2738_v48 = vpop.permute.xlu0 %2737 }
0x38cc   :  { %v6310_v49 = vmul.f32 %v5344_v43, %v2738_v48 }
0x38ce   :  { %v2746_v51 = vrot.slane %v6310_v49, 6 }
0x38d0   :  { %2747 = vrot.lane.b32.xlu1 %v2746_v51, %s5666_s7 }
0x3942   :  { %v2748_v52 = vpop.permute.xlu1 %2747 }
0x3943   :  { %4793 = vmatmul.mubr.msk.f32.vlgmr.msra.gmra.mrb[24].mxu0 %vm266_vm3, %v2748_v52 }
0x3944   :  { %5092 = vmatpush3.bf16.msra.mxu0 %v6225_v7  ;;  %4814 = vmatprep.mubr.msk.f32.mxu0 %vm5663_vm0, %v5664_v1 }
0x3945   :  { %5093 = vmatprep.subr.bf16.mxu0 %v5662_v0 }
0x3948   :  { %5095 = vmatpush3.bf16.msra.mxu0 %v6235_v20 }
0x3a16   :  { %v2817_v50 = vpop.f32.mrb[24].mxu0 }
0x3a17   :  { %v2821_v17 = vadd.f32 %v2817_v50, %v6259_v35  ;;  %v4794_v53 = vpop.f32.mrb[25].mxu0 }
0x3a19   :  { %5347 = vtanh.f32 %v2821_v17  ;;  %v4311_v6 = vmul.f32 -1.442695, %v2821_v17 }
0x3a1b   :  { %5349 = vpow2.f32 %v4311_v6 }
0x3a23   :  { %v5348_v33 = vpop.eup %5347 }
0x3a24   :  { %2834 = vrot.lane.b32.xlu0 %v5348_v33, %s5665_s3 }
0x3a25   :  { %v5350_v54 = vpop.eup %5349 }
0x3a26   :  { %v2825_v55 = vadd.f32 1.0, %v5350_v54 }
0x3a28   :  { %5351 = vrcp.f32 %v2825_v55 }
0x3a32   :  { %v5352_v56 = vpop.eup %5351 }
0x3a33   :  { %v2832_v59 = vmul.f32 %v5352_v56, %v2830_v58 }
0x3a96   :  { %v2835_v11 = vpop.permute.xlu0 %2834 }
0x3a97   :  { %v2837_v57 = vmul.f32 %v5352_v56, %v2835_v11 }
0x3a99   :  { %2839 = vrot.lane.b32.xlu1 %v2837_v57, %s5665_s3 }
0x3b0b   :  { %v2840_v60 = vpop.permute.xlu1 %2839 }
0x3b0c   :  { %v2842_v8 = vadd.f32 %v2840_v60, %v2832_v59 }
0x3b0e   :  { %5353 = vtanh.f32 %v2842_v8 }
0x3b18   :  { %v5354_v62 = vpop.eup %5353 }
0x3b19   :  { %2845 = vrot.lane.b32.xlu0 %v5354_v62, %s5665_s3 }
0x3b8b   :  { %v2846_v61 = vpop.permute.xlu0 %2845 }
0x3b8c   :  { %v2848_v2 = vmul.f32 %v5352_v56, %v2846_v61 }
0x3b8e   :  { %2850 = vrot.lane.b32.xlu1 %v2848_v2, %s5666_s7 }
0x3c00   :  { %v2851_v12 = vpop.permute.xlu1 %2850 }
0x3c01   :  { %2853 = vst.msk [vmem:[#allocation2 + $0x8] sm:$0x3] %vm369_vm2, %v2851_v12  ;;  %4804 = vmatmul.mubr.msk.f32.vlgmr.msra.gmra.mrb[24].mxu1 %vm266_vm3, %v2851_v12 }
0x3c02   :  { %5098 = vmatpush3.bf16.msra.mxu1 %v6225_v7  ;;  %4825 = vmatprep.mubr.msk.f32.mxu1 %vm5663_vm0, %v5664_v1 }
0x3c03   :  { %5099 = vmatprep.subr.bf16.mxu1 %v5662_v0 }
0x3c06   :  { %5101 = vmatpush3.bf16.msra.mxu1 %v6235_v20  ;;  %v2938_v20 = vrot.slane %v2842_v8, 6 }
0x3c07   :  { %5110 = vmatprep.subr.bf16.mxu1 %v5662_v0 }
0x3cd4   :  { %v2922_v3 = vpop.f32.mrb[24].mxu1 }
0x3cd5   :  { %v2927_v4 = vrot.slane %v2922_v3, 6  ;;  %v4805_v5 = vpop.f32.mrb[25].mxu1 }
0x3cd6   :  { %v3191_v5 = vld [vmem:[#allocation14 + $0x8] sm:$0xff] }
0x3cd7   :  { %v2929_v9 = vadd.f32 %v2927_v4, %v6259_v35  ;;  %v3190_v4 = vld [vmem:[#allocation14] sm:$0xff] }
0x3cd9   :  { %5355 = vtanh.f32 %v2929_v9  ;;  %v4313_v13 = vmul.f32 -1.442695, %v2929_v9  ;;  %v3188_v9 = vld [vmem:[%s6549_s13 + $0x10] sm:$0xff] }
0x3cdb   :  { %5357 = vpow2.f32 %v4313_v13  ;;  %v3192_v13 = vld [vmem:[#allocation14 + $0x10] sm:$0xff] }
0x3ce3   :  { %v5356_v10 = vpop.eup %5355 }
0x3ce4   :  { %2942 = vrot.lane.b32.xlu0 %v5356_v10, %s5665_s3  ;;  %v3189_v10 = vld [vmem:[%s6549_s13 + $0x18] sm:$0xff] }
0x3ce5   :  { %v5358_v7 = vpop.eup %5357 }
0x3ce6   :  { %v2933_v16 = vadd.f32 1.0, %v5358_v7  ;;  %v3193_v7 = vld [vmem:[#allocation14 + $0x18] sm:$0xff] }
0x3ce8   :  { %5359 = vrcp.f32 %v2933_v16  ;;  %v5106_v16 = vpack.c.bf16 %v3189_v10, %v3188_v9 }
0x3cf2   :  { %v5360_v19 = vpop.eup %5359 }
0x3cf3   :  { %v2940_v23 = vmul.f32 %v5360_v19, %v2938_v20 }
0x3d56   :  { %v2943_v21 = vpop.permute.xlu0 %2942 }
0x3d57   :  { %v2945_v22 = vmul.f32 %v5360_v19, %v2943_v21 }
0x3d59   :  { %2947 = vrot.lane.b32.xlu1 %v2945_v22, %s5665_s3 }
0x3dcb   :  { %v2948_v24 = vpop.permute.xlu1 %2947 }
0x3dcc   :  { %v2950_v25 = vadd.f32 %v2948_v24, %v2940_v23 }
0x3dce   :  { %5361 = vtanh.f32 %v2950_v25  ;;  %v3049_v45 = vrot.slane %v2950_v25, 6 }
0x3dd8   :  { %v5362_v26 = vpop.eup %5361 }
0x3dd9   :  { %2953 = vrot.lane.b32.xlu0 %v5362_v26, %s5665_s3 }
0x3e4b   :  { %v2954_v27 = vpop.permute.xlu0 %2953 }
0x3e4c   :  { %v6337_v28 = vmul.f32 %v5360_v19, %v2954_v27  ;;  %v6381_v19 = vpack.c.bf16 %v3193_v7, %v3192_v13 }
0x3e4e   :  { %v2962_v29 = vrot.slane %v6337_v28, 2 }
0x3e50   :  { %2963 = vrot.lane.b32.xlu1 %v2962_v29, %s5666_s7  ;;  %v4318_v29 = vld [vmem:[#allocation15] ss:$0 sm:$0xff] }
0x3ec2   :  { %v2964_v18 = vpop.permute.xlu1 %2963 }
0x3ec3   :  { %4815 = vmatmul.mubr.msk.f32.vlgmr.msra.gmra.mrb[26].mxu0 %vm266_vm3, %v2964_v18 }
0x3f96   :  { %v3033_v31 = vpop.f32.mrb[26].mxu0 }
0x3f97   :  { %v3038_v32 = vrot.slane %v3033_v31, 4  ;;  %v4816_v34 = vpop.f32.mrb[27].mxu0 }
0x3f99   :  { %v3040_v36 = vadd.f32 %v3038_v32, %v6259_v35 }
0x3f9b   :  { %5363 = vtanh.f32 %v3040_v36  ;;  %v4315_v39 = vmul.f32 -1.442695, %v3040_v36 }
0x3f9d   :  { %5365 = vpow2.f32 %v4315_v39 }
0x3fa5   :  { %v5364_v38 = vpop.eup %5363 }
0x3fa6   :  { %3053 = vrot.lane.b32.xlu0 %v5364_v38, %s5665_s3 }
0x3fa7   :  { %v5366_v40 = vpop.eup %5365 }
0x3fa8   :  { %v3044_v41 = vadd.f32 1.0, %v5366_v40 }
0x3faa   :  { %5367 = vrcp.f32 %v3044_v41 }
0x3fb4   :  { %v5368_v42 = vpop.eup %5367 }
0x3fb5   :  { %v3051_v14 = vmul.f32 %v5368_v42, %v3049_v45 }
0x4018   :  { %v3054_v43 = vpop.permute.xlu0 %3053 }
0x4019   :  { %v3056_v44 = vmul.f32 %v5368_v42, %v3054_v43 }
0x401b   :  { %3058 = vrot.lane.b32.xlu1 %v3056_v44, %s5665_s3 }
0x408d   :  { %v3059_v46 = vpop.permute.xlu1 %3058 }
0x408e   :  { %v3061_v15 = vadd.f32 %v3059_v46, %v3051_v14 }
0x4090   :  { %5369 = vtanh.f32 %v3061_v15 }
0x409a   :  { %v5370_v47 = vpop.eup %5369 }
0x409b   :  { %3064 = vrot.lane.b32.xlu0 %v5370_v47, %s5665_s3 }
0x410d   :  { %v3065_v37 = vpop.permute.xlu0 %3064 }
0x410e   :  { %v3067_v48 = vmul.f32 %v5368_v42, %v3065_v37 }
0x4110   :  { %v3073_v51 = vrot.slane %v3067_v48, 4 }
0x4112   :  { %3074 = vrot.lane.b32.xlu1 %v3073_v51, %s5666_s7 }
0x4184   :  { %v3075_v52 = vpop.permute.xlu1 %3074 }
0x4185   :  { %4826 = vmatmul.mubr.msk.f32.vlgmr.msra.gmra.mrb[26].mxu1 %vm266_vm3, %v3075_v52 }
0x4186   :  { %4847 = vmatprep.mubr.msk.f32.mxu1 %vm5663_vm0, %v5664_v1 }
0x4258   :  { %v3144_v50 = vpop.f32.mrb[26].mxu1 }
0x4259   :  { %v3149_v17 = vrot.slane %v3144_v50, 2  ;;  %v4827_v53 = vpop.f32.mrb[27].mxu1 }
0x425b   :  { %v3151_v33 = vadd.f32 %v3149_v17, %v6259_v35  ;;  %v3160_v35 = vrot.slane %v3061_v15, 6 }
0x425d   :  { %5371 = vtanh.f32 %v3151_v33  ;;  %v4317_v54 = vmul.f32 -1.442695, %v3151_v33 }
0x425f   :  { %5373 = vpow2.f32 %v4317_v54 }
0x4267   :  { %v5372_v6 = vpop.eup %5371 }
0x4268   :  { %3164 = vrot.lane.b32.xlu0 %v5372_v6, %s5665_s3 }
0x4269   :  { %v5374_v55 = vpop.eup %5373 }
0x426a   :  { %v3155_v56 = vadd.f32 1.0, %v5374_v55 }
0x426c   :  { %5375 = vrcp.f32 %v3155_v56 }
0x4276   :  { %v5376_v11 = vpop.eup %5375 }
0x4277   :  { %v3162_v59 = vmul.f32 %v5376_v11, %v3160_v35 }
0x42da   :  { %v3165_v57 = vpop.permute.xlu0 %3164 }
0x42db   :  { %v3167_v58 = vmul.f32 %v5376_v11, %v3165_v57 }
0x42dd   :  { %3169 = vrot.lane.b32.xlu1 %v3167_v58, %s5665_s3 }
0x42e1   :  { %2520 = vrot.lane.b32.xlu1 %v6280_v63, %s5666_s7  ;;  %v3186_v63 = vld [vmem:[%s6549_s13] sm:$0xff] }
0x42e5   :  { %2742 = vrot.lane.b32.xlu1 %v6310_v49, %s5666_s7  ;;  %v3187_v49 = vld [vmem:[%s6549_s13 + $0x8] sm:$0xff] }
0x42e6   :  { %v5102_v3 = vpack.c.bf16 %v3187_v49, %v3186_v63 }
0x42e8   :  { %5103 = vmatprep.subr.bf16.mxu0 %v5102_v3 }
0x42e9   :  { %3069 = vrot.lane.b32.xlu1 %v3067_v48, %s5666_s7  ;;  %5105 = vmatpush3.bf16.msra.mxu0 %v5102_v3 }
0x42ea   :  { %5107 = vmatprep.subr.bf16.mxu0 %v5106_v16 }
0x42ed   :  { %5109 = vmatpush3.bf16.msra.mxu0 %v5106_v16 }
0x42ee   :  { %5116 = vmatprep.subr.bf16.mxu0 %v5662_v0 }
0x434f   :  { %v3170_v60 = vpop.permute.xlu1 %3169 }
0x4350   :  { %v3172_v8 = vadd.f32 %v3170_v60, %v3162_v59 }
0x4352   :  { %5377 = vtanh.f32 %v3172_v8 }
0x4353   :  { %v2521_v62 = vpop.permute.xlu1 %2520 }
0x4354   :  { %2523 = vst.msk [vmem:[#allocation2] sm:$0xc] %vm478_vm4, %v2521_v62 }
0x4357   :  { %v2743_v61 = vpop.permute.xlu1 %2742 }
0x4358   :  { %2745 = vst.msk [vmem:[#allocation2] sm:$0xc0] %vm702_vm5, %v2743_v61 }
0x435b   :  { %v3070_v2 = vpop.permute.xlu1 %3069 }
0x435c   :  { %v5378_v12 = vpop.eup %5377  ;;  %3072 = vst.msk [vmem:[#allocation2 + $0x8] sm:$0x30] %vm590_vm6, %v3070_v2 }
0x435d   :  { %3175 = vrot.lane.b32.xlu0 %v5378_v12, %s5665_s3 }
0x4361   :  { %2631 = vrot.lane.b32.xlu0 %v6295_v30, %s5666_s7  ;;  %v6375_v30 = vpack.c.bf16 %v3191_v5, %v3190_v4 }
0x4363   :  { %5112 = vmatpush3.bf16.msra.mxu1 %v6375_v30 }
0x4364   :  { %5113 = vmatprep.subr.bf16.mxu1 %v5662_v0 }
0x4365   :  { %2958 = vrot.lane.b32.xlu0 %v6337_v28, %s5666_s7 }
0x4367   :  { %5115 = vmatpush3.bf16.msra.mxu1 %v6381_v19 }
0x4368   :  { %5122 = vmatprep.subr.bf16.mxu1 %v5662_v0 }
0x436a   :  { %4848 = vmatmul.mubr.f32.vlgmr.msra.gmra.mrb[28].mxu1 %v5664_v1 }
0x436b   :  { %5124 = vmatpush3.bf16.msra.mxu1 %v6375_v30  ;;  %4869 = vmatprep.mubr.msk.f32.mxu1 %vm5663_vm0, %v5664_v1 }
0x436c   :  { %5125 = vmatprep.subr.bf16.mxu1 %v5662_v0 }
0x436f   :  { %5127 = vmatpush3.bf16.msra.mxu1 %v6381_v19 }
0x4370   :  { %5134 = vmatprep.subr.bf16.mxu1 %v5662_v0 }
0x43cf   :  { %v3176_v21 = vpop.permute.xlu0 %3175 }
0x43d0   :  { %v3178_v22 = vmul.f32 %v5376_v11, %v3176_v21 }
0x43d2   :  { %3180 = vrot.lane.b32.xlu0 %v3178_v22, %s5666_s7 }
0x43d3   :  { %v2632_v20 = vpop.permute.xlu0 %2631 }
0x43d4   :  { %2634 = vst.msk [vmem:[#allocation2] sm:$0x30] %vm590_vm6, %v2632_v20 }
0x43d7   :  { %v2959_v23 = vpop.permute.xlu0 %2958 }
0x43d8   :  { %2961 = vst.msk [vmem:[#allocation2 + $0x8] sm:$0xc] %vm478_vm4, %v2959_v23 }
0x43db   :  { %v3184_v24 = vld [vmem:[#allocation2] sm:$0xff] }
0x43dc   :  { %4836 = vmatprep.mubr.msk.f32.mxu0 %vm266_vm3, %v3184_v24 }
0x443d   :  { %v3348_v27 = vpop.f32.mrb[28].mxu1 }
0x443e   :  { %v4849_v28 = vpop.f32.mrb[29].mxu1 }
0x4444   :  { %v3181_v25 = vpop.permute.xlu0 %3180 }
0x4445   :  { %3183 = vst.msk [vmem:[#allocation2 + $0x8] sm:$0xc0] %vm702_vm5, %v3181_v25 }
0x444c   :  { %v3185_v26 = vld [vmem:[#allocation2 + $0x8] sm:$0xff] }
0x444d   :  { %4837 = vmatmul.mubr.msk.f32.vlgmr.msra.gmra.mrb[28].mxu0 %vm266_vm3, %v3185_v26 }
0x444e   :  { %5118 = vmatpush3.bf16.msra.mxu0 %v6375_v30  ;;  %4858 = vmatprep.mubr.msk.f32.mxu0 %vm5663_vm0, %v5664_v1 }
0x444f   :  { %5119 = vmatprep.subr.bf16.mxu0 %v5662_v0 }
0x4452   :  { %5121 = vmatpush3.bf16.msra.mxu0 %v6381_v19 }
0x4453   :  { %5128 = vmatprep.subr.bf16.mxu0 %v5662_v0 }
0x4520   :  { %v4838_v18 = vpop.f32.mrb[28].mxu0 }
0x4521   :  { %v6406_v31 = vadd.f32 %v4838_v18, %v4318_v29  ;;  %v3273_v32 = vpop.f32.mrb[29].mxu0 }
0x4522   :  { %v6408_v34 = vadd.f32 %v4318_v29, %v3273_v32 }
0x4524   :  { %v3352_v36 = vadd.f32 %v3348_v27, %v6408_v34 }
0x4526   :  { %5379 = vtanh.f32 %v3352_v36  ;;  %v4321_v39 = vmul.f32 -1.442695, %v3352_v36 }
0x4528   :  { %5381 = vpow2.f32 %v4321_v39 }
0x4530   :  { %v5380_v38 = vpop.eup %5379 }
0x4531   :  { %3362 = vrot.lane.b32.xlu1 %v5380_v38, %s5665_s3 }
0x4532   :  { %v5382_v40 = vpop.eup %5381 }
0x4533   :  { %v3356_v41 = vadd.f32 1.0, %v5382_v40 }
0x4535   :  { %5383 = vrcp.f32 %v3356_v41 }
0x453f   :  { %v5384_v42 = vpop.eup %5383 }
0x4540   :  { %v3360_v45 = vmul.f32 0.0, %v5384_v42 }
0x45a3   :  { %v3363_v43 = vpop.permute.xlu1 %3362 }
0x45a4   :  { %v3365_v44 = vmul.f32 %v5384_v42, %v3363_v43 }
0x45a6   :  { %3367 = vrot.lane.b32.xlu0 %v3365_v44, %s5665_s3 }
0x4618   :  { %v3368_v14 = vpop.permute.xlu0 %3367 }
0x4619   :  { %v3370_v46 = vadd.f32 %v3368_v14, %v3360_v45 }
0x461b   :  { %5385 = vtanh.f32 %v3370_v46  ;;  %v3466_v57 = vrot.slane %v3370_v46, 6 }
0x4625   :  { %v5386_v15 = vpop.eup %5385 }
0x4626   :  { %3373 = vrot.lane.b32.xlu1 %v5386_v15, %s5665_s3 }
0x4698   :  { %v3374_v47 = vpop.permute.xlu1 %3373 }
0x4699   :  { %v3376_v37 = vmul.f32 %v5384_v42, %v3374_v47 }
0x469b   :  { %3378 = vrot.lane.b32.xlu0 %v3376_v37, %s5666_s7 }
0x470d   :  { %v3379_v48 = vpop.permute.xlu0 %3378 }
0x470e   :  { %3381 = vst.msk [vmem:[#allocation3] sm:$0x3] %vm369_vm2, %v3379_v48  ;;  %4859 = vmatmul.mubr.msk.f32.vlgmr.msra.gmra.mrb[30].mxu0 %vm266_vm3, %v3379_v48 }
0x470f   :  { %5130 = vmatpush3.bf16.msra.mxu0 %v6375_v30  ;;  %4880 = vmatprep.mubr.msk.f32.mxu0 %vm5663_vm0, %v5664_v1 }
0x4710   :  { %5131 = vmatprep.subr.bf16.mxu0 %v5662_v0 }
0x4713   :  { %5133 = vmatpush3.bf16.msra.mxu0 %v6381_v19 }
0x4714   :  { %5140 = vmatprep.subr.bf16.mxu0 %v5662_v0 }
0x47e1   :  { %v3450_v51 = vpop.f32.mrb[30].mxu0 }
0x47e2   :  { %v3455_v52 = vrot.slane %v3450_v51, 6  ;;  %v4860_v50 = vpop.f32.mrb[31].mxu0 }
0x47e4   :  { %v3457_v17 = vadd.f32 %v3455_v52, %v6408_v34 }
0x47e6   :  { %5387 = vtanh.f32 %v3457_v17  ;;  %v4323_v33 = vmul.f32 -1.442695, %v3457_v17 }
0x47e8   :  { %5389 = vpow2.f32 %v4323_v33 }
0x47f0   :  { %v5388_v53 = vpop.eup %5387 }
0x47f1   :  { %3470 = vrot.lane.b32.xlu1 %v5388_v53, %s5665_s3 }
0x47f2   :  { %v5390_v6 = vpop.eup %5389 }
0x47f3   :  { %v3461_v54 = vadd.f32 1.0, %v5390_v6 }
0x47f5   :  { %5391 = vrcp.f32 %v3461_v54 }
0x47ff   :  { %v5392_v55 = vpop.eup %5391 }
0x4800   :  { %v3468_v58 = vmul.f32 %v5392_v55, %v3466_v57 }
0x4863   :  { %v3471_v56 = vpop.permute.xlu1 %3470 }
0x4864   :  { %v3473_v11 = vmul.f32 %v5392_v55, %v3471_v56 }
0x4866   :  { %3475 = vrot.lane.b32.xlu0 %v3473_v11, %s5665_s3 }
0x48d8   :  { %v3476_v35 = vpop.permute.xlu0 %3475 }
0x48d9   :  { %v3478_v59 = vadd.f32 %v3476_v35, %v3468_v58 }
0x48db   :  { %5393 = vtanh.f32 %v3478_v59  ;;  %v3577_v21 = vrot.slane %v3478_v59, 6 }
0x48e5   :  { %v5394_v60 = vpop.eup %5393 }
0x48e6   :  { %3481 = vrot.lane.b32.xlu1 %v5394_v60, %s5665_s3 }
0x4958   :  { %v3482_v8 = vpop.permute.xlu1 %3481 }
0x4959   :  { %v6427_v62 = vmul.f32 %v5392_v55, %v3482_v8 }
0x495b   :  { %v3490_v61 = vrot.slane %v6427_v62, 2 }
0x495d   :  { %3491 = vrot.lane.b32.xlu0 %v3490_v61, %s5666_s7 }
0x49cf   :  { %v3492_v2 = vpop.permute.xlu0 %3491 }
0x49d0   :  { %4870 = vmatmul.mubr.msk.f32.vlgmr.msra.gmra.mrb[30].mxu1 %vm266_vm3, %v3492_v2 }
0x49d1   :  { %5136 = vmatpush3.bf16.msra.mxu1 %v6375_v30  ;;  %4891 = vmatprep.mubr.msk.f32.mxu1 %vm5663_vm0, %v5664_v1 }
0x49d2   :  { %5137 = vmatprep.subr.bf16.mxu1 %v5662_v0 }
0x49d5   :  { %5139 = vmatpush3.bf16.msra.mxu1 %v6381_v19 }
0x49d6   :  { %5146 = vmatprep.subr.bf16.mxu1 %v5662_v0 }
0x4aa3   :  { %v3561_v12 = vpop.f32.mrb[30].mxu1 }
0x4aa4   :  { %v3566_v63 = vrot.slane %v3561_v12, 4  ;;  %v4871_v49 = vpop.f32.mrb[31].mxu1 }
0x4aa6   :  { %v3568_v3 = vadd.f32 %v3566_v63, %v6408_v34 }
0x4aa8   :  { %5395 = vtanh.f32 %v3568_v3  ;;  %v4325_v5 = vmul.f32 -1.442695, %v3568_v3 }
0x4aaa   :  { %5397 = vpow2.f32 %v4325_v5 }
0x4ab2   :  { %v5396_v4 = vpop.eup %5395 }
0x4ab3   :  { %3581 = vrot.lane.b32.xlu1 %v5396_v4, %s5665_s3 }
0x4ab4   :  { %v5398_v9 = vpop.eup %5397 }
0x4ab5   :  { %v3572_v10 = vadd.f32 1.0, %v5398_v9 }
0x4ab7   :  { %5399 = vrcp.f32 %v3572_v10 }
0x4ac1   :  { %v5400_v13 = vpop.eup %5399 }
0x4ac2   :  { %v3579_v22 = vmul.f32 %v5400_v13, %v3577_v21 }
0x4b25   :  { %v3582_v7 = vpop.permute.xlu1 %3581 }
0x4b26   :  { %v3584_v16 = vmul.f32 %v5400_v13, %v3582_v7 }
0x4b28   :  { %3586 = vrot.lane.b32.xlu0 %v3584_v16, %s5665_s3 }
0x4b9a   :  { %v3587_v20 = vpop.permute.xlu0 %3586 }
0x4b9b   :  { %v3589_v23 = vadd.f32 %v3587_v20, %v3579_v22 }
0x4b9d   :  { %5401 = vtanh.f32 %v3589_v23  ;;  %v3688_v45 = vrot.slane %v3589_v23, 6 }
0x4ba7   :  { %v5402_v24 = vpop.eup %5401 }
0x4ba8   :  { %3592 = vrot.lane.b32.xlu1 %v5402_v24, %s5665_s3 }
0x4c1a   :  { %v3593_v25 = vpop.permute.xlu1 %3592 }
0x4c1b   :  { %v6442_v26 = vmul.f32 %v5400_v13, %v3593_v25 }
0x4c1d   :  { %v3601_v27 = vrot.slane %v6442_v26, 4 }
0x4c1f   :  { %3602 = vrot.lane.b32.xlu0 %v3601_v27, %s5666_s7 }
0x4c91   :  { %v3603_v28 = vpop.permute.xlu0 %3602 }
0x4c92   :  { %4881 = vmatmul.mubr.msk.f32.vlgmr.msra.gmra.mrb[32].mxu0 %vm266_vm3, %v3603_v28 }
0x4c93   :  { %5142 = vmatpush3.bf16.msra.mxu0 %v6375_v30  ;;  %4902 = vmatprep.mubr.msk.f32.mxu0 %vm5663_vm0, %v5664_v1 }
0x4c94   :  { %5143 = vmatprep.subr.bf16.mxu0 %v5662_v0 }
0x4c97   :  { %5145 = vmatpush3.bf16.msra.mxu0 %v6381_v19 }
0x4c98   :  { %5152 = vmatprep.subr.bf16.mxu0 %v5662_v0 }
0x4d65   :  { %v3672_v29 = vpop.f32.mrb[32].mxu0 }
0x4d66   :  { %v3677_v18 = vrot.slane %v3672_v29, 2  ;;  %v4882_v32 = vpop.f32.mrb[33].mxu0 }
0x4d68   :  { %v3679_v36 = vadd.f32 %v3677_v18, %v6408_v34 }
0x4d6a   :  { %5403 = vtanh.f32 %v3679_v36  ;;  %v4327_v39 = vmul.f32 -1.442695, %v3679_v36 }
0x4d6c   :  { %5405 = vpow2.f32 %v4327_v39 }
0x4d74   :  { %v5404_v38 = vpop.eup %5403 }
0x4d75   :  { %3692 = vrot.lane.b32.xlu1 %v5404_v38, %s5665_s3 }
0x4d76   :  { %v5406_v40 = vpop.eup %5405 }
0x4d77   :  { %v3683_v41 = vadd.f32 1.0, %v5406_v40 }
0x4d79   :  { %5407 = vrcp.f32 %v3683_v41 }
0x4d83   :  { %v5408_v42 = vpop.eup %5407 }
0x4d84   :  { %v3690_v14 = vmul.f32 %v5408_v42, %v3688_v45 }
0x4de7   :  { %v3693_v43 = vpop.permute.xlu1 %3692 }
0x4de8   :  { %v3695_v44 = vmul.f32 %v5408_v42, %v3693_v43 }
0x4dea   :  { %3697 = vrot.lane.b32.xlu0 %v3695_v44, %s5665_s3 }
0x4e5c   :  { %v3698_v46 = vpop.permute.xlu0 %3697 }
0x4e5d   :  { %v3700_v15 = vadd.f32 %v3698_v46, %v3690_v14 }
0x4e5f   :  { %5409 = vtanh.f32 %v3700_v15  ;;  %v3796_v57 = vrot.slane %v3700_v15, 6 }
0x4e69   :  { %v5410_v34 = vpop.eup %5409 }
0x4e6a   :  { %3703 = vrot.lane.b32.xlu1 %v5410_v34, %s5665_s3 }
0x4edc   :  { %v3704_v47 = vpop.permute.xlu1 %3703 }
0x4edd   :  { %v6457_v37 = vmul.f32 %v5408_v42, %v3704_v47 }
0x4edf   :  { %v3712_v48 = vrot.slane %v6457_v37, 6 }
0x4ee1   :  { %3713 = vrot.lane.b32.xlu0 %v3712_v48, %s5666_s7 }
0x4f53   :  { %v3714_v51 = vpop.permute.xlu0 %3713 }
0x4f54   :  { %4892 = vmatmul.mubr.msk.f32.vlgmr.msra.gmra.mrb[32].mxu1 %vm266_vm3, %v3714_v51 }
0x4f55   :  { %5148 = vmatpush3.bf16.msra.mxu1 %v6375_v30  ;;  %4913 = vmatprep.mubr.msk.f32.mxu1 %vm5663_vm0, %v5664_v1 }
0x4f56   :  { %5149 = vmatprep.subr.bf16.mxu1 %v5662_v0 }
0x4f59   :  { %5151 = vmatpush3.bf16.msra.mxu1 %v6381_v19 }
0x5027   :  { %v3783_v52 = vpop.f32.mrb[32].mxu1 }
0x5028   :  { %v3787_v50 = vadd.f32 %v3783_v52, %v6406_v31  ;;  %v4893_v17 = vpop.f32.mrb[33].mxu1 }
0x502a   :  { %5411 = vtanh.f32 %v3787_v50  ;;  %v4329_v33 = vmul.f32 -1.442695, %v3787_v50 }
0x502c   :  { %5413 = vpow2.f32 %v4329_v33 }
0x5034   :  { %v5412_v53 = vpop.eup %5411 }
0x5035   :  { %3800 = vrot.lane.b32.xlu1 %v5412_v53, %s5665_s3 }
0x5036   :  { %v5414_v6 = vpop.eup %5413 }
0x5037   :  { %v3791_v54 = vadd.f32 1.0, %v5414_v6 }
0x5039   :  { %5415 = vrcp.f32 %v3791_v54 }
0x5043   :  { %v5416_v55 = vpop.eup %5415 }
0x5044   :  { %v3798_v58 = vmul.f32 %v5416_v55, %v3796_v57 }
0x50a7   :  { %v3801_v56 = vpop.permute.xlu1 %3800 }
0x50a8   :  { %v3803_v11 = vmul.f32 %v5416_v55, %v3801_v56 }
0x50aa   :  { %3805 = vrot.lane.b32.xlu0 %v3803_v11, %s5665_s3 }
0x511c   :  { %v3806_v35 = vpop.permute.xlu0 %3805 }
0x511d   :  { %v3808_v59 = vadd.f32 %v3806_v35, %v3798_v58 }
0x511f   :  { %5417 = vtanh.f32 %v3808_v59 }
0x5129   :  { %v5418_v60 = vpop.eup %5417 }
0x512a   :  { %3811 = vrot.lane.b32.xlu1 %v5418_v60, %s5665_s3 }
0x519c   :  { %v3812_v8 = vpop.permute.xlu1 %3811 }
0x519d   :  { %v3814_v61 = vmul.f32 %v5416_v55, %v3812_v8 }
0x519f   :  { %3816 = vrot.lane.b32.xlu0 %v3814_v61, %s5666_s7 }
0x5211   :  { %v3817_v2 = vpop.permute.xlu0 %3816 }
0x5212   :  { %3819 = vst.msk [vmem:[#allocation3 + $0x8] sm:$0x3] %vm369_vm2, %v3817_v2  ;;  %4903 = vmatmul.mubr.msk.f32.vlgmr.msra.gmra.mrb[34].mxu0 %vm266_vm3, %v3817_v2  ;;  %v4154_v2 = vld [vmem:[%s6552_s16 + $0x10] sm:$0xff] }
0x5213   :  { %5154 = vmatpush3.bf16.msra.mxu0 %v6375_v30  ;;  %4924 = vmatprep.mubr.msk.f32.mxu0 %vm5663_vm0, %v5664_v1 }
0x5214   :  { %5155 = vmatprep.subr.bf16.mxu0 %v5662_v0  ;;  %v3904_v0 = vrot.slane %v3808_v59, 6 }
0x5217   :  { %5157 = vmatpush3.bf16.msra.mxu0 %v6381_v19 }
0x52e5   :  { %v3888_v12 = vpop.f32.mrb[34].mxu0 }
0x52e6   :  { %v3893_v63 = vrot.slane %v3888_v12, 6  ;;  %v4904_v49 = vpop.f32.mrb[35].mxu0 }
0x52e8   :  { %v3895_v3 = vadd.f32 %v3893_v63, %v6406_v31 }
0x52ea   :  { %5419 = vtanh.f32 %v3895_v3  ;;  %v4331_v5 = vmul.f32 -1.442695, %v3895_v3 }
0x52ec   :  { %5421 = vpow2.f32 %v4331_v5 }
0x52f4   :  { %v5420_v4 = vpop.eup %5419 }
0x52f5   :  { %3908 = vrot.lane.b32.xlu1 %v5420_v4, %s5665_s3 }
0x52f6   :  { %v5422_v9 = vpop.eup %5421 }
0x52f7   :  { %v3899_v30 = vadd.f32 1.0, %v5422_v9 }
0x52f9   :  { %5423 = vrcp.f32 %v3899_v30 }
0x5303   :  { %v5424_v10 = vpop.eup %5423 }
0x5304   :  { %v3906_v19 = vmul.f32 %v5424_v10, %v3904_v0 }
0x5367   :  { %v3909_v1 = vpop.permute.xlu1 %3908 }
0x5368   :  { %v3911_v13 = vmul.f32 %v5424_v10, %v3909_v1 }
0x536a   :  { %3913 = vrot.lane.b32.xlu0 %v3911_v13, %s5665_s3 }
0x53dc   :  { %v3914_v7 = vpop.permute.xlu0 %3913 }
0x53dd   :  { %v3916_v16 = vadd.f32 %v3914_v7, %v3906_v19 }
0x53df   :  { %5425 = vtanh.f32 %v3916_v16  ;;  %v4015_v42 = vrot.slane %v3916_v16, 6 }
0x53e9   :  { %v5426_v21 = vpop.eup %5425 }
0x53ea   :  { %3919 = vrot.lane.b32.xlu1 %v5426_v21, %s5665_s3 }
0x545c   :  { %v3920_v22 = vpop.permute.xlu1 %3919 }
0x545d   :  { %v6483_v20 = vmul.f32 %v5424_v10, %v3920_v22  ;;  %v4336_v10 = vld [vmem:[#allocation17] ss:$0 sm:$0xff] }
0x545f   :  { %v3928_v23 = vrot.slane %v6483_v20, 2 }
0x5461   :  { %3929 = vrot.lane.b32.xlu0 %v3928_v23, %s5666_s7 }
0x54d3   :  { %v3930_v24 = vpop.permute.xlu0 %3929 }
0x54d4   :  { %4914 = vmatmul.mubr.msk.f32.vlgmr.msra.gmra.mrb[34].mxu1 %vm266_vm3, %v3930_v24 }
0x55a7   :  { %v3999_v25 = vpop.f32.mrb[34].mxu1 }
0x55a8   :  { %v4004_v27 = vrot.slane %v3999_v25, 4  ;;  %v4915_v28 = vpop.f32.mrb[35].mxu1 }
0x55aa   :  { %v4006_v29 = vadd.f32 %v4004_v27, %v6406_v31 }
0x55ac   :  { %5427 = vtanh.f32 %v4006_v29  ;;  %v4333_v32 = vmul.f32 -1.442695, %v4006_v29 }
0x55ae   :  { %5429 = vpow2.f32 %v4333_v32 }
0x55b6   :  { %v5428_v18 = vpop.eup %5427 }
0x55b7   :  { %4019 = vrot.lane.b32.xlu1 %v5428_v18, %s5665_s3 }
0x55b8   :  { %v5430_v36 = vpop.eup %5429 }
0x55b9   :  { %v4010_v38 = vadd.f32 1.0, %v5430_v36 }
0x55bb   :  { %5431 = vrcp.f32 %v4010_v38 }
0x55c5   :  { %v5432_v39 = vpop.eup %5431 }
0x55c6   :  { %v4017_v43 = vmul.f32 %v5432_v39, %v4015_v42 }
0x5629   :  { %v4020_v40 = vpop.permute.xlu1 %4019 }
0x562a   :  { %v4022_v41 = vmul.f32 %v5432_v39, %v4020_v40 }
0x562c   :  { %4024 = vrot.lane.b32.xlu0 %v4022_v41, %s5665_s3 }
0x569e   :  { %v4025_v44 = vpop.permute.xlu0 %4024 }
0x569f   :  { %v4027_v45 = vadd.f32 %v4025_v44, %v4017_v43 }
0x56a1   :  { %5433 = vtanh.f32 %v4027_v45 }
0x56ab   :  { %v5434_v14 = vpop.eup %5433 }
0x56ac   :  { %4030 = vrot.lane.b32.xlu1 %v5434_v14, %s5665_s3 }
0x571e   :  { %v4031_v46 = vpop.permute.xlu1 %4030 }
0x571f   :  { %v4033_v15 = vmul.f32 %v5432_v39, %v4031_v46 }
0x5721   :  { %v4039_v34 = vrot.slane %v4033_v15, 4 }
0x5723   :  { %4040 = vrot.lane.b32.xlu0 %v4039_v34, %s5666_s7 }
0x5795   :  { %v4041_v47 = vpop.permute.xlu0 %4040 }
0x5796   :  { %4925 = vmatmul.mubr.msk.f32.vlgmr.msra.gmra.mrb[36].mxu0 %vm266_vm3, %v4041_v47 }
0x5869   :  { %v4110_v48 = vpop.f32.mrb[36].mxu0 }
0x586a   :  { %v4115_v51 = vrot.slane %v4110_v48, 2  ;;  %v4926_v52 = vpop.f32.mrb[37].mxu0 }
0x586c   :  { %v4117_v50 = vadd.f32 %v4115_v51, %v6406_v31  ;;  %v4126_v31 = vrot.slane %v4027_v45, 6 }
0x586e   :  { %5435 = vtanh.f32 %v4117_v50  ;;  %v4335_v53 = vmul.f32 -1.442695, %v4117_v50 }
0x5870   :  { %5437 = vpow2.f32 %v4335_v53 }
0x5878   :  { %v5436_v17 = vpop.eup %5435 }
0x5879   :  { %4130 = vrot.lane.b32.xlu1 %v5436_v17, %s5665_s3 }
0x587a   :  { %v5438_v33 = vpop.eup %5437 }
0x587b   :  { %v4121_v6 = vadd.f32 1.0, %v5438_v33 }
0x587d   :  { %5439 = vrcp.f32 %v4121_v6 }
0x5887   :  { %v5440_v54 = vpop.eup %5439 }
0x5888   :  { %v4128_v11 = vmul.f32 %v5440_v54, %v4126_v31 }
0x58eb   :  { %v4131_v55 = vpop.permute.xlu1 %4130 }
0x58ec   :  { %v4133_v56 = vmul.f32 %v5440_v54, %v4131_v55 }
0x58ee   :  { %4135 = vrot.lane.b32.xlu0 %v4133_v56, %s5665_s3 }
0x58f2   :  { %3486 = vrot.lane.b32.xlu0 %v6427_v62, %s5666_s7  ;;  %v4152_v62 = vld [vmem:[%s6552_s16] sm:$0xff] }
0x58f6   :  { %3708 = vrot.lane.b32.xlu0 %v6457_v37, %s5666_s7  ;;  %v4153_v37 = vld [vmem:[%s6552_s16 + $0x8] sm:$0xff] }
0x58f7   :  { %v5158_v61 = vpack.c.bf16 %v4153_v37, %v4152_v62 }
0x58f9   :  { %5159 = vmatprep.subr.bf16.mxu1 %v5158_v61 }
0x58fa   :  { %4035 = vrot.lane.b32.xlu0 %v4033_v15, %s5666_s7  ;;  %5161 = vmatpush3.bf16.msra.mxu1 %v5158_v61 }
0x5960   :  { %v4136_v57 = vpop.permute.xlu0 %4135 }
0x5961   :  { %v4138_v58 = vadd.f32 %v4136_v57, %v4128_v11 }
0x5963   :  { %5441 = vtanh.f32 %v4138_v58 }
0x5964   :  { %v3487_v35 = vpop.permute.xlu0 %3486 }
0x5965   :  { %3489 = vst.msk [vmem:[#allocation3] sm:$0xc] %vm478_vm4, %v3487_v35 }
0x5968   :  { %v3709_v59 = vpop.permute.xlu0 %3708 }
0x5969   :  { %3711 = vst.msk [vmem:[#allocation3] sm:$0xc0] %vm702_vm5, %v3709_v59 }
0x596c   :  { %v4036_v60 = vpop.permute.xlu0 %4035 }
0x596d   :  { %v5442_v8 = vpop.eup %5441  ;;  %4038 = vst.msk [vmem:[#allocation3 + $0x8] sm:$0x30] %vm590_vm6, %v4036_v60 }
0x596e   :  { %4141 = vrot.lane.b32.xlu1 %v5442_v8, %s5665_s3 }
0x5972   :  { %3597 = vrot.lane.b32.xlu1 %v6442_v26, %s5666_s7  ;;  %v4155_v26 = vld [vmem:[%s6552_s16 + $0x18] sm:$0xff] }
0x5973   :  { %v5162_v12 = vpack.c.bf16 %v4155_v26, %v4154_v2 }
0x5975   :  { %5163 = vmatprep.subr.bf16.mxu1 %v5162_v12 }
0x5976   :  { %3924 = vrot.lane.b32.xlu1 %v6483_v20, %s5666_s7  ;;  %5165 = vmatpush3.bf16.msra.mxu1 %v5162_v12 }
0x59e0   :  { %v4142_v63 = vpop.permute.xlu1 %4141 }
0x59e1   :  { %v4144_v49 = vmul.f32 %v5440_v54, %v4142_v63 }
0x59e3   :  { %4146 = vrot.lane.b32.xlu1 %v4144_v49, %s5666_s7 }
0x59e4   :  { %v3598_v3 = vpop.permute.xlu1 %3597 }
0x59e5   :  { %3600 = vst.msk [vmem:[#allocation3] sm:$0x30] %vm590_vm6, %v3598_v3 }
0x59e8   :  { %v3925_v4 = vpop.permute.xlu1 %3924 }
0x59e9   :  { %3927 = vst.msk [vmem:[#allocation3 + $0x8] sm:$0xc] %vm478_vm4, %v3925_v4 }
0x59ec   :  { %v4150_v5 = vld [vmem:[#allocation3] sm:$0xff] }
0x59ed   :  { %4935 = vmatprep.mubr.msk.f32.mxu1 %vm266_vm3, %v4150_v5 }
0x5a55   :  { %v4147_v9 = vpop.permute.xlu1 %4146 }
0x5a56   :  { %4149 = vst.msk [vmem:[#allocation3 + $0x8] sm:$0xc0] %vm702_vm5, %v4147_v9 }
0x5a5d   :  { %v4151_v30 = vld [vmem:[#allocation3 + $0x8] sm:$0xff] }
0x5a5e   :  { %4936 = vmatmul.mubr.msk.f32.vlgmr.msra.gmra.mrb[36].mxu1 %vm266_vm3, %v4151_v30 }
0x5b31   :  { %v4937_v1 = vpop.f32.mrb[36].mxu1 }
0x5b32   :  { %v4241_v13 = vadd.f32 %v4937_v1, %v4336_v10  ;;  %v4235_v0 = vpop.f32.mrb[37].mxu1 }
0x5b33   :  { %v4236_v19 = vadd.f32 %v4336_v10, %v4235_v0 }
0x5b34   :  { %4245 = vst.msk [vmem:[%s6554_s18 + $0x8] sm:$0xff] %vm184_vm1, %v4241_v13 }
0x5b35   :  { %4244 = vst.msk [vmem:[%s6554_s18] sm:$0xff] %vm184_vm1, %v4236_v19 }
0x5b36   :  { %4256 = vsyncpa [#allocation5], 1 }
0x5b37   :  { %4257 = vsyncpa [#allocation7], 1 }
0x5b38   :  { %4258 = vsyncpa [#allocation10], 1 }
0x5b39   :  { %4259 = vsyncpa [#allocation13], 1 }
0x5b3a   :  { %4260 = vsyncpa [#allocation16], 1 }

</bundles_post_ra>
